<compile_context>
chip_gen: v6e
topology: v6e:2x2x1
jax: 0.10.0
libtpu: 0.0.40
codegen_flags: <defaults>
</compile_context>

<pallas_src>
import math
import jax
import jax.numpy as jnp
from jax.experimental import pallas as pl
from jax.experimental.pallas import tpu as pltpu


def _round_up(x, m):
    return (x + m - 1) // m * m


def _vmem_budget_bytes():
    """Per-core VMEM budget with headroom; generation-aware via get_tpu_info."""
    cap = 64 * 1024 * 1024                      # conservative fallback (v7x physical)
    try:
        cap = int(pltpu.get_tpu_info().vmem_capacity_bytes)
    except Exception:
        pass
    # >=8 MiB headroom for compiler-internal scratch; cap at 112 MiB (v5e/v6e advice).
    return max(16 * 1024 * 1024, min(cap - 8 * 1024 * 1024, 112 * 1024 * 1024))


def _pick_time_chunk(T, Bt, Hp, budget_bytes):
    """Largest Tc that fits the VMEM budget.

    Resident: W_hh bf16 (single-buffered) + b_hh_n f32 + lens + h scratch f32.
    Streamed per timestep (double-buffered, bf16): gx (Bt,3Hp) + out (Bt,Hp).
    """
    G3 = 3 * Hp
    resident = Hp * G3 * 2 + Hp * 4 + 2 * Bt * 4 + Bt * Hp * 4
    per_t = 2 * (Bt * G3 * 2 + Bt * Hp * 2)
    avail = budget_bytes - resident
    tc = (avail // per_t) if avail > 0 else 1
    return int(max(1, min(tc, T, 128)))


def _gru_chunk_kernel(gx_ref, len_ref, whh_ref, bhhn_ref, out_ref, hid_ref, h_scratch):
    """One (batch-block, time-chunk) grid step of the GRU recurrence.

    gx_ref   : (Tc, Bt, 3*Hp) bf16  precomputed x_t @ W_ih + (b_ih + b_hh[r,z])
    len_ref  : (Bt, 1)        int32 sequence lengths (padded rows have length 0)
    whh_ref  : (Hp, 3*Hp)     bf16  fused hidden weights (resident, single-buffered)
    bhhn_ref : (1, Hp)        f32   b_hh for the n gate (inside the r*(...) term)
    out_ref  : (Tc, Bt, Hp)   bf16  outputs for this chunk (time-major)
    hid_ref  : (1, Bt, Hp)    f32   final hidden state (resident along the time axis)
    h_scratch: (Bt, Hp)       f32   running hidden state (persists across time chunks)
    """
    Tc, Bt, G3 = gx_ref.shape
    Hp = G3 // 3
    c = pl.program_id(1)                        # time-chunk index (serial axis)

    @pl.when(c == 0)
    def _():
        h_scratch[...] = jnp.zeros_like(h_scratch)

    lens = len_ref[...]                         # (Bt, 1) int32
    whh = whh_ref[...]                          # (Hp, 3*Hp) bf16, loop-invariant
    bhh_n = bhhn_ref[...]                       # (1, Hp) f32
    t0 = c * Tc                                 # global timestep offset of this chunk

    def step(i, h_prev):
        gx = gx_ref[i].astype(jnp.float32)      # (Bt, 3*Hp) upconvert bf16 -> f32
        # Single fused bf16 MXU matmul for all three hidden-gate projections (f32 acc).
        gh = jnp.dot(h_prev.astype(jnp.bfloat16), whh,
                     preferred_element_type=jnp.float32)
        r = jax.nn.sigmoid(gx[:, 0:Hp] + gh[:, 0:Hp])
        z = jax.nn.sigmoid(gx[:, Hp:2 * Hp] + gh[:, Hp:2 * Hp])
        n = jnp.tanh(gx[:, 2 * Hp:3 * Hp] + r * (gh[:, 2 * Hp:3 * Hp] + bhh_n))
        h_new = (1.0 - z) * n + z * h_prev
        valid = lens > (t0 + i)                 # (Bt, 1) bool
        out_ref[i] = jnp.where(valid, h_new, 0.0).astype(out_ref.dtype)
        return jnp.where(valid, h_new, h_prev)  # freeze finished sequences

    # Partial unroll: a full 32-deep unroll brushes the 64-vreg file at large Hp and
    # spills onto the serial per-step critical path.
    h_final = jax.lax.fori_loop(0, Tc, step, h_scratch[...], unroll=min(8, Tc))
    h_scratch[...] = h_final

    @pl.when(c == pl.num_programs(1) - 1)
    def _():
        hid_ref[0] = h_final


def _build_gru_call(Tp, Bp, Bt, Tc, Hp, vmem_limit, single_buffer_weights):
    G3 = 3 * Hp
    const_kw = dict(pipeline_mode=pl.Buffered(1)) if single_buffer_weights else {}

    grid_spec = pltpu.PrefetchScalarGridSpec(
        num_scalar_prefetch=0,
        grid=(Bp // Bt, Tp // Tc),                 # (batch blocks, time chunks)
        in_specs=[
            pl.BlockSpec((Tc, Bt, G3), lambda b, c: (c, b, 0)),   # streamed gx (bf16)
            # lens index varies with the batch block, so it keeps default buffering
            # (it is only Bt*4 bytes).
            pl.BlockSpec((Bt, 1), lambda b, c: (b, 0)),
            # loop-invariant operands: single-buffered, DMA'd once, stay resident
            pl.BlockSpec((Hp, G3), lambda b, c: (0, 0), **const_kw),
            pl.BlockSpec((1, Hp), lambda b, c: (0, 0), **const_kw),
        ],
        out_specs=[
            pl.BlockSpec((Tc, Bt, Hp), lambda b, c: (c, b, 0)),   # out (time-major)
            pl.BlockSpec((1, Bt, Hp), lambda b, c: (0, b, 0)),    # hid (resident in c)
        ],
        scratch_shapes=[pltpu.VMEM((Bt, Hp), jnp.float32)],
    )
    return pl.pallas_call(
        _gru_chunk_kernel,
        grid_spec=grid_spec,
        out_shape=(
            jax.ShapeDtypeStruct((Tp, Bp, Hp), jnp.bfloat16),
            jax.ShapeDtypeStruct((1, Bp, Hp), jnp.float32),
        ),
        compiler_params=pltpu.CompilerParams(
            dimension_semantics=("parallel", "arbitrary"),  # batch parallel, time serial
            vmem_limit_bytes=int(vmem_limit),
        ),
    )


def gru_pallas(gates_x, lens_p, w_hh_2d, b_hh_n, *, Bt, Tc, vmem_limit):
    """gates_x: (Tp,Bp,3*Hp) bf16; lens_p: (Bp,1) i32. Returns ((Tp,Bp,Hp) bf16, (1,Bp,Hp) f32)."""
    Tp, Bp, G3 = gates_x.shape
    Hp = G3 // 3
    try:
        call = _build_gru_call(Tp, Bp, Bt, Tc, Hp, vmem_limit, True)
        return call(gates_x, lens_p, w_hh_2d, b_hh_n)
    except Exception:
        # Fallback for JAX builds that reject pipeline_mode=pl.Buffered(1).
        call = _build_gru_call(Tp, Bp, Bt, Tc, Hp, vmem_limit, False)
        return call(gates_x, lens_p, w_hh_2d, b_hh_n)


def plain_encoder_forward(x, lengths, emb_table, w_ih, w_hh, b_ih, b_hh, *, time_chunk=None):
    """Forward pass of PlainEncoder.

    x: (B, T) int32 token ids; lengths: (B,) sorted descending, max(lengths) == T.
    w_ih/w_hh: (3, H, H) gate order (r, z, n), laid out as (H_in, H_out).
    b_ih/b_hh: (3, 1, H).  Returns (out (B,T,H), hid (1,B,H)) == `(out, hid[[-1]])`.
    """
    B, T = x.shape
    H = emb_table.shape[1]
    Hp = _round_up(H, 128)          # lane-dense hidden dim
    Bp = _round_up(B, 8)            # sublane-dense batch dim
    G3 = 3 * Hp

    # Embedding gathered directly time-major (fuses the transpose into the gather).
    # nn.Dropout modeled in eval mode (identity).
    # TODO(synk): training-mode dropout would use pltpu.prng_random_bits in-kernel.
    emb_tbh = jnp.take(emb_table, x.T, axis=0)                       # (T, B, H)

    # Fused, lane-padded gate weights (gate order r, z, n).
    w_ih_p = jnp.pad(w_ih, ((0, 0), (0, 0), (0, Hp - H)))            # (3, H, Hp)
    w_ih_2d = jnp.transpose(w_ih_p, (1, 0, 2)).reshape(H, G3)        # (H, 3*Hp)
    b_ih_p = jnp.pad(b_ih, ((0, 0), (0, 0), (0, Hp - H)))            # (3, 1, Hp)
    b_ih_2d = jnp.transpose(b_ih_p, (1, 0, 2)).reshape(1, G3)        # (1, 3*Hp)
    b_hh_p = jnp.pad(b_hh, ((0, 0), (0, 0), (0, Hp - H)))            # (3, 1, Hp)
    # b_hh's r/z parts sit OUTSIDE the r*(...) term -> fold into the x-side bias;
    # only the n part must be added inside the kernel.
    b_hh_rz = jnp.concatenate(
        [b_hh_p[0], b_hh_p[1], jnp.zeros((1, Hp), b_hh_p.dtype)], axis=-1)  # (1, 3*Hp)
    bias_x = b_ih_2d + b_hh_rz
    b_hh_n = b_hh_p[2].astype(jnp.float32)                           # (1, Hp)

    w_hh_p = jnp.pad(w_hh, ((0, 0), (0, Hp - H), (0, Hp - H)))       # (3, Hp, Hp)
    w_hh_2d = jnp.transpose(w_hh_p, (1, 0, 2)).reshape(Hp, G3).astype(jnp.bfloat16)

    # Hoisted input projection: one (T*B,H)x(H,3*Hp) matmul for all timesteps.
    # TODO(synk): on HBM-bound generations (v5e) this projection could be fused into
    # the kernel (stream embeddings + resident W_ih) to avoid the gates_x HBM roundtrip.
    gates_x = (emb_tbh.reshape(T * B, H).astype(jnp.float32) @ w_ih_2d
               + bias_x).reshape(T, B, G3)

    # Batch tiling: split across the 2 TensorCores on v7x when B allows (no-op v5e/v6e).
    Bt = Bp // 2 if (Bp >= 16 and Bp % 16 == 0) else Bp

    budget = _vmem_budget_bytes()
    Tc = int(time_chunk) if time_chunk is not None else _pick_time_chunk(T, Bt, Hp, budget)
    Tc = max(1, min(Tc, T))
    Tp = _round_up(T, Tc)           # pad T so the last chunk never reads garbage

    gates_x = jnp.pad(gates_x, ((0, Tp - T), (0, Bp - B), (0, 0))).astype(jnp.bfloat16)
    # Padded batch rows get length 0 => frozen at zero, zero outputs (sliced off below).
    lens_p = jnp.pad(lengths.astype(jnp.int32), (0, Bp - B)).reshape(Bp, 1)

    out_tbh, hid = gru_pallas(gates_x, lens_p, w_hh_2d, b_hh_n,
                              Bt=Bt, Tc=Tc, vmem_limit=budget)

    out = jnp.transpose(out_tbh[:T, :B, :H], (1, 0, 2)).astype(jnp.float32)  # (B,T,H)
    hid = hid[:, :B, :H]                                                     # (1,B,H)
    return out, hid


def _gru_reference(embedded, lengths, w_ih, w_hh, b_ih, b_hh):
    """Pure-JAX f32 reference of GRU + packed-sequence masking."""
    B, T, H = embedded.shape

    def step(h, inp):
        x_t, t = inp
        xr = x_t @ w_ih[0] + b_ih[0]
        xz = x_t @ w_ih[1] + b_ih[1]
        xn = x_t @ w_ih[2] + b_ih[2]
        hr = h @ w_hh[0] + b_hh[0]
        hz = h @ w_hh[1] + b_hh[1]
        hn = h @ w_hh[2] + b_hh[2]
        r = jax.nn.sigmoid(xr + hr)
        z = jax.nn.sigmoid(xz + hz)
        n = jnp.tanh(xn + r * hn)
        h_new = (1.0 - z) * n + z * h
        valid = (lengths > t)[:, None]
        return jnp.where(valid, h_new, h), jnp.where(valid, h_new, 0.0)

    h0 = jnp.zeros((B, H), jnp.float32)
    h_last, outs = jax.lax.scan(
        step, h0, (jnp.transpose(embedded, (1, 0, 2)), jnp.arange(T)))
    return jnp.transpose(outs, (1, 0, 2)), h_last[None]


if __name__ == "__main__":
    V, B, T, H = 50, 2, 8, 32   # vocab, batch, seq, hidden (small synthetic shapes)

    key = jax.random.PRNGKey(0)
    k_emb, k_wih, k_whh, k_bih, k_bhh, k_x = jax.random.split(key, 6)
    bound = 1.0 / math.sqrt(H)  # PyTorch GRU default init bound

    emb_table = jax.random.normal(k_emb, (V, H), jnp.float32)
    w_ih = jax.random.uniform(k_wih, (3, H, H), jnp.float32, -bound, bound)
    w_hh = jax.random.uniform(k_whh, (3, H, H), jnp.float32, -bound, bound)
    b_ih = jax.random.uniform(k_bih, (3, 1, H), jnp.float32, -bound, bound)
    b_hh = jax.random.uniform(k_bhh, (3, 1, H), jnp.float32, -bound, bound)

    x = jax.random.randint(k_x, (B, T), 0, V)
    # pack_padded_sequence(enforce_sorted=True) => lengths sorted descending;
    # lengths[0] == T so pad_packed_sequence returns the full T timesteps.
    lengths = jnp.array([T, 5], dtype=jnp.int32)

    out, hid = plain_encoder_forward(x, lengths, emb_table, w_ih, w_hh, b_ih, b_hh)
    jax.block_until_ready((out, hid))

    # Sanity check against a pure-JAX f32 reference (bf16 streaming => loose tolerance).
    embedded = jnp.take(emb_table, x, axis=0)
    out_ref, hid_ref = _gru_reference(embedded, lengths, w_ih, w_hh, b_ih, b_hh)
    assert out.shape == (B, T, H) and hid.shape == (1, B, H)
    assert jnp.allclose(out, out_ref, rtol=3e-2, atol=3e-2)
    assert jnp.allclose(hid, hid_ref, rtol=3e-2, atol=3e-2)

    print("KERNEL_OK")
</pallas_src>

<mosaic_0001>
module attributes {stable_mosaic.version = 11 : i64} {
  func.func @_gru_chunk_kernel(%arg0: i32, %arg1: i32, %arg2: memref<8x8x384xbf16, #tpu.memory_space<vmem>>, %arg3: memref<8x1xi32, #tpu.memory_space<vmem>>, %arg4: memref<128x384xbf16, #tpu.memory_space<vmem>>, %arg5: memref<1x128xf32, #tpu.memory_space<vmem>>, %arg6: memref<8x8x128xbf16, #tpu.memory_space<vmem>>, %arg7: memref<1x8x128xf32, #tpu.memory_space<vmem>>, %arg8: memref<8x128xf32, #tpu.memory_space<vmem>>) attributes {dimension_semantics = [#tpu.dimension_semantics<parallel>, #tpu.dimension_semantics<arbitrary>], iteration_bounds = array<i64: 1, 1>, scalar_prefetch = 0 : i64, scratch_operands = 1 : i64, tpu.core_type = #tpu.core_type<tc>, window_params = [{transform_indices = @transform_0, window_bounds = array<i64: 8, 8, 384>}, {transform_indices = @transform_1, window_bounds = array<i64: 8, 1>}, {pipeline_mode = #tpu.pipeline_mode<synchronous>, transform_indices = @transform_2, window_bounds = array<i64: 128, 384>}, {pipeline_mode = #tpu.pipeline_mode<synchronous>, transform_indices = @transform_3, window_bounds = array<i64: 1, 128>}, {transform_indices = @transform_4, window_bounds = array<i64: 8, 8, 128>}, {transform_indices = @transform_5, window_bounds = array<i64: 1, 8, 128>}]} {
    %c0_i32 = arith.constant 0 : i32
    %0 = arith.cmpi eq, %arg1, %c0_i32 : i32
    %1 = arith.extui %0 : i1 to i32
    %c0_i32_0 = arith.constant 0 : i32
    %2 = arith.cmpi ne, %1, %c0_i32_0 : i32
    scf.if %2 {
      %cst_85 = arith.constant 0.000000e+00 : f32
      %404 = vector.broadcast %cst_85 : f32 to vector<8x128xf32>
      %c0_86 = arith.constant 0 : index
      %c0_87 = arith.constant 0 : index
      %405 = vector.load %arg8[%c0_86, %c0_87] : memref<8x128xf32, #tpu.memory_space<vmem>>, vector<8x128xf32>
      tpu.vector_store %arg8[%c0_86, %c0_87], %404 {strides = array<i32>} : memref<8x128xf32, #tpu.memory_space<vmem>>, vector<8x128xf32>,
    } else {
    }
    %c0 = arith.constant 0 : index
    %c0_1 = arith.constant 0 : index
    %3 = vector.load %arg3[%c0, %c0_1] : memref<8x1xi32, #tpu.memory_space<vmem>>, vector<8x1xi32>
    %c0_2 = arith.constant 0 : index
    %c0_3 = arith.constant 0 : index
    %4 = vector.load %arg4[%c0_2, %c0_3] : memref<128x384xbf16, #tpu.memory_space<vmem>>, vector<128x384xbf16>
    %c0_4 = arith.constant 0 : index
    %c0_5 = arith.constant 0 : index
    %5 = vector.load %arg5[%c0_4, %c0_5] : memref<1x128xf32, #tpu.memory_space<vmem>>, vector<1x128xf32>
    %c8_i32 = arith.constant 8 : i32
    %6 = arith.muli %arg1, %c8_i32 : i32
    %c0_6 = arith.constant 0 : index
    %c0_7 = arith.constant 0 : index
    %7 = vector.load %arg8[%c0_6, %c0_7] : memref<8x128xf32, #tpu.memory_space<vmem>>, vector<8x128xf32>
    %c0_i32_8 = arith.constant 0 : i32
    %8 = arith.index_cast %c0_i32_8 : i32 to index
    %c0_9 = arith.constant 0 : index
    %c0_10 = arith.constant 0 : index
    %9 = vector.load %arg2[%8, %c0_9, %c0_10] : memref<8x8x384xbf16, #tpu.memory_space<vmem>>, vector<1x8x384xbf16>
    %10 = vector.shape_cast %9 : vector<1x8x384xbf16> to vector<8x384xbf16>
    %11 = arith.extf %10 : vector<8x384xbf16> to vector<8x384xf32>
    %12 = arith.truncf %7 : vector<8x128xf32> to vector<8x128xbf16>
    %cst = arith.constant dense<0.000000e+00> : vector<8x384xf32>
    %13 = tpu.matmul %12, %4, %cst {dimension_numbers = #tpu.dot_dimension_numbers<[1], [0], [0], [1], [0, 0, 1, 1], [], []>} : vector<8x128xbf16>, vector<128x384xbf16>, vector<8x384xf32> -> vector<8x384xf32>
    %14 = vector.extract_strided_slice %11 {offsets = [0, 0], sizes = [8, 128], strides = [1, 1]} : vector<8x384xf32> to vector<8x128xf32>
    %15 = vector.extract_strided_slice %13 {offsets = [0, 0], sizes = [8, 128], strides = [1, 1]} : vector<8x384xf32> to vector<8x128xf32>
    %16 = arith.addf %14, %15 : vector<8x128xf32>
    %17 = arith.negf %16 : vector<8x128xf32>
    %18 = math.exp %17 : vector<8x128xf32>
    %cst_11 = arith.constant 1.000000e+00 : f32
    %19 = vector.broadcast %cst_11 : f32 to vector<8x128xf32>
    %20 = arith.addf %19, %18 : vector<8x128xf32>
    %21 = arith.divf %19, %20 : vector<8x128xf32>
    %22 = vector.extract_strided_slice %11 {offsets = [0, 128], sizes = [8, 128], strides = [1, 1]} : vector<8x384xf32> to vector<8x128xf32>
    %23 = vector.extract_strided_slice %13 {offsets = [0, 128], sizes = [8, 128], strides = [1, 1]} : vector<8x384xf32> to vector<8x128xf32>
    %24 = arith.addf %22, %23 : vector<8x128xf32>
    %25 = arith.negf %24 : vector<8x128xf32>
    %26 = math.exp %25 : vector<8x128xf32>
    %cst_12 = arith.constant 1.000000e+00 : f32
    %27 = vector.broadcast %cst_12 : f32 to vector<8x128xf32>
    %28 = arith.addf %27, %26 : vector<8x128xf32>
    %29 = arith.divf %27, %28 : vector<8x128xf32>
    %30 = vector.extract_strided_slice %11 {offsets = [0, 256], sizes = [8, 128], strides = [1, 1]} : vector<8x384xf32> to vector<8x128xf32>
    %31 = vector.extract_strided_slice %13 {offsets = [0, 256], sizes = [8, 128], strides = [1, 1]} : vector<8x384xf32> to vector<8x128xf32>
    %32 = vector.broadcast %5 : vector<1x128xf32> to vector<8x128xf32>
    %33 = arith.addf %31, %32 : vector<8x128xf32>
    %34 = arith.mulf %21, %33 : vector<8x128xf32>
    %35 = arith.addf %30, %34 : vector<8x128xf32>
    %36 = math.tanh %35 : vector<8x128xf32>
    %cst_13 = arith.constant 1.000000e+00 : f32
    %37 = vector.broadcast %cst_13 : f32 to vector<8x128xf32>
    %38 = arith.subf %37, %29 : vector<8x128xf32>
    %39 = arith.mulf %38, %36 : vector<8x128xf32>
    %40 = arith.mulf %29, %7 : vector<8x128xf32>
    %41 = arith.addf %39, %40 : vector<8x128xf32>
    %42 = arith.addi %6, %c0_i32_8 : i32
    %43 = vector.broadcast %42 : i32 to vector<8x1xi32>
    %44 = arith.cmpi sgt, %3, %43 : vector<8x1xi32>
    %cst_14 = arith.constant 0.000000e+00 : f32
    %45 = vector.shape_cast %44 : vector<8x1xi1> to vector<8x1xi1>
    %46 = vector.broadcast %45 : vector<8x1xi1> to vector<8x128xi1>
    %47 = vector.broadcast %cst_14 : f32 to vector<8x128xf32>
    %48 = arith.select %46, %41, %47 : vector<8x128xi1>, vector<8x128xf32>
    %49 = arith.truncf %48 : vector<8x128xf32> to vector<8x128xbf16>
    %50 = arith.index_cast %c0_i32_8 : i32 to index
    %c0_15 = arith.constant 0 : index
    %c0_16 = arith.constant 0 : index
    %51 = vector.load %arg6[%50, %c0_15, %c0_16] : memref<8x8x128xbf16, #tpu.memory_space<vmem>>, vector<1x8x128xbf16>
    %52 = vector.shape_cast %51 : vector<1x8x128xbf16> to vector<8x128xbf16>
    %53 = vector.shape_cast %49 : vector<8x128xbf16> to vector<1x8x128xbf16>
    tpu.vector_store %arg6[%50, %c0_15, %c0_16], %53 {strides = array<i32>} : memref<8x8x128xbf16, #tpu.memory_space<vmem>>, vector<1x8x128xbf16>,
    %54 = vector.shape_cast %44 : vector<8x1xi1> to vector<8x1xi1>
    %55 = vector.broadcast %54 : vector<8x1xi1> to vector<8x128xi1>
    %56 = arith.select %55, %41, %7 : vector<8x128xi1>, vector<8x128xf32>
    %c1_i32 = arith.constant 1 : i32
    %57 = arith.index_cast %c1_i32 : i32 to index
    %c0_17 = arith.constant 0 : index
    %c0_18 = arith.constant 0 : index
    %58 = vector.load %arg2[%57, %c0_17, %c0_18] : memref<8x8x384xbf16, #tpu.memory_space<vmem>>, vector<1x8x384xbf16>
    %59 = vector.shape_cast %58 : vector<1x8x384xbf16> to vector<8x384xbf16>
    %60 = arith.extf %59 : vector<8x384xbf16> to vector<8x384xf32>
    %61 = arith.truncf %56 : vector<8x128xf32> to vector<8x128xbf16>
    %cst_19 = arith.constant dense<0.000000e+00> : vector<8x384xf32>
    %62 = tpu.matmul %61, %4, %cst_19 {dimension_numbers = #tpu.dot_dimension_numbers<[1], [0], [0], [1], [0, 0, 1, 1], [], []>} : vector<8x128xbf16>, vector<128x384xbf16>, vector<8x384xf32> -> vector<8x384xf32>
    %63 = vector.extract_strided_slice %60 {offsets = [0, 0], sizes = [8, 128], strides = [1, 1]} : vector<8x384xf32> to vector<8x128xf32>
    %64 = vector.extract_strided_slice %62 {offsets = [0, 0], sizes = [8, 128], strides = [1, 1]} : vector<8x384xf32> to vector<8x128xf32>
    %65 = arith.addf %63, %64 : vector<8x128xf32>
    %66 = arith.negf %65 : vector<8x128xf32>
    %67 = math.exp %66 : vector<8x128xf32>
    %cst_20 = arith.constant 1.000000e+00 : f32
    %68 = vector.broadcast %cst_20 : f32 to vector<8x128xf32>
    %69 = arith.addf %68, %67 : vector<8x128xf32>
    %70 = arith.divf %68, %69 : vector<8x128xf32>
    %71 = vector.extract_strided_slice %60 {offsets = [0, 128], sizes = [8, 128], strides = [1, 1]} : vector<8x384xf32> to vector<8x128xf32>
    %72 = vector.extract_strided_slice %62 {offsets = [0, 128], sizes = [8, 128], strides = [1, 1]} : vector<8x384xf32> to vector<8x128xf32>
    %73 = arith.addf %71, %72 : vector<8x128xf32>
    %74 = arith.negf %73 : vector<8x128xf32>
    %75 = math.exp %74 : vector<8x128xf32>
    %cst_21 = arith.constant 1.000000e+00 : f32
    %76 = vector.broadcast %cst_21 : f32 to vector<8x128xf32>
    %77 = arith.addf %76, %75 : vector<8x128xf32>
    %78 = arith.divf %76, %77 : vector<8x128xf32>
    %79 = vector.extract_strided_slice %60 {offsets = [0, 256], sizes = [8, 128], strides = [1, 1]} : vector<8x384xf32> to vector<8x128xf32>
    %80 = vector.extract_strided_slice %62 {offsets = [0, 256], sizes = [8, 128], strides = [1, 1]} : vector<8x384xf32> to vector<8x128xf32>
    %81 = vector.broadcast %5 : vector<1x128xf32> to vector<8x128xf32>
    %82 = arith.addf %80, %81 : vector<8x128xf32>
    %83 = arith.mulf %70, %82 : vector<8x128xf32>
    %84 = arith.addf %79, %83 : vector<8x128xf32>
    %85 = math.tanh %84 : vector<8x128xf32>
    %cst_22 = arith.constant 1.000000e+00 : f32
    %86 = vector.broadcast %cst_22 : f32 to vector<8x128xf32>
    %87 = arith.subf %86, %78 : vector<8x128xf32>
    %88 = arith.mulf %87, %85 : vector<8x128xf32>
    %89 = arith.mulf %78, %56 : vector<8x128xf32>
    %90 = arith.addf %88, %89 : vector<8x128xf32>
    %91 = arith.addi %6, %c1_i32 : i32
    %92 = vector.broadcast %91 : i32 to vector<8x1xi32>
    %93 = arith.cmpi sgt, %3, %92 : vector<8x1xi32>
    %cst_23 = arith.constant 0.000000e+00 : f32
    %94 = vector.shape_cast %93 : vector<8x1xi1> to vector<8x1xi1>
    %95 = vector.broadcast %94 : vector<8x1xi1> to vector<8x128xi1>
    %96 = vector.broadcast %cst_23 : f32 to vector<8x128xf32>
    %97 = arith.select %95, %90, %96 : vector<8x128xi1>, vector<8x128xf32>
    %98 = arith.truncf %97 : vector<8x128xf32> to vector<8x128xbf16>
    %99 = arith.index_cast %c1_i32 : i32 to index
    %c0_24 = arith.constant 0 : index
    %c0_25 = arith.constant 0 : index
    %100 = vector.load %arg6[%99, %c0_24, %c0_25] : memref<8x8x128xbf16, #tpu.memory_space<vmem>>, vector<1x8x128xbf16>
    %101 = vector.shape_cast %100 : vector<1x8x128xbf16> to vector<8x128xbf16>
    %102 = vector.shape_cast %98 : vector<8x128xbf16> to vector<1x8x128xbf16>
    tpu.vector_store %arg6[%99, %c0_24, %c0_25], %102 {strides = array<i32>} : memref<8x8x128xbf16, #tpu.memory_space<vmem>>, vector<1x8x128xbf16>,
    %103 = vector.shape_cast %93 : vector<8x1xi1> to vector<8x1xi1>
    %104 = vector.broadcast %103 : vector<8x1xi1> to vector<8x128xi1>
    %105 = arith.select %104, %90, %56 : vector<8x128xi1>, vector<8x128xf32>
    %c2_i32 = arith.constant 2 : i32
    %106 = arith.index_cast %c2_i32 : i32 to index
    %c0_26 = arith.constant 0 : index
    %c0_27 = arith.constant 0 : index
    %107 = vector.load %arg2[%106, %c0_26, %c0_27] : memref<8x8x384xbf16, #tpu.memory_space<vmem>>, vector<1x8x384xbf16>
    %108 = vector.shape_cast %107 : vector<1x8x384xbf16> to vector<8x384xbf16>
    %109 = arith.extf %108 : vector<8x384xbf16> to vector<8x384xf32>
    %110 = arith.truncf %105 : vector<8x128xf32> to vector<8x128xbf16>
    %cst_28 = arith.constant dense<0.000000e+00> : vector<8x384xf32>
    %111 = tpu.matmul %110, %4, %cst_28 {dimension_numbers = #tpu.dot_dimension_numbers<[1], [0], [0], [1], [0, 0, 1, 1], [], []>} : vector<8x128xbf16>, vector<128x384xbf16>, vector<8x384xf32> -> vector<8x384xf32>
    %112 = vector.extract_strided_slice %109 {offsets = [0, 0], sizes = [8, 128], strides = [1, 1]} : vector<8x384xf32> to vector<8x128xf32>
    %113 = vector.extract_strided_slice %111 {offsets = [0, 0], sizes = [8, 128], strides = [1, 1]} : vector<8x384xf32> to vector<8x128xf32>
    %114 = arith.addf %112, %113 : vector<8x128xf32>
    %115 = arith.negf %114 : vector<8x128xf32>
    %116 = math.exp %115 : vector<8x128xf32>
    %cst_29 = arith.constant 1.000000e+00 : f32
    %117 = vector.broadcast %cst_29 : f32 to vector<8x128xf32>
    %118 = arith.addf %117, %116 : vector<8x128xf32>
    %119 = arith.divf %117, %118 : vector<8x128xf32>
    %120 = vector.extract_strided_slice %109 {offsets = [0, 128], sizes = [8, 128], strides = [1, 1]} : vector<8x384xf32> to vector<8x128xf32>
    %121 = vector.extract_strided_slice %111 {offsets = [0, 128], sizes = [8, 128], strides = [1, 1]} : vector<8x384xf32> to vector<8x128xf32>
    %122 = arith.addf %120, %121 : vector<8x128xf32>
    %123 = arith.negf %122 : vector<8x128xf32>
    %124 = math.exp %123 : vector<8x128xf32>
    %cst_30 = arith.constant 1.000000e+00 : f32
    %125 = vector.broadcast %cst_30 : f32 to vector<8x128xf32>
    %126 = arith.addf %125, %124 : vector<8x128xf32>
    %127 = arith.divf %125, %126 : vector<8x128xf32>
    %128 = vector.extract_strided_slice %109 {offsets = [0, 256], sizes = [8, 128], strides = [1, 1]} : vector<8x384xf32> to vector<8x128xf32>
    %129 = vector.extract_strided_slice %111 {offsets = [0, 256], sizes = [8, 128], strides = [1, 1]} : vector<8x384xf32> to vector<8x128xf32>
    %130 = vector.broadcast %5 : vector<1x128xf32> to vector<8x128xf32>
    %131 = arith.addf %129, %130 : vector<8x128xf32>
    %132 = arith.mulf %119, %131 : vector<8x128xf32>
    %133 = arith.addf %128, %132 : vector<8x128xf32>
    %134 = math.tanh %133 : vector<8x128xf32>
    %cst_31 = arith.constant 1.000000e+00 : f32
    %135 = vector.broadcast %cst_31 : f32 to vector<8x128xf32>
    %136 = arith.subf %135, %127 : vector<8x128xf32>
    %137 = arith.mulf %136, %134 : vector<8x128xf32>
    %138 = arith.mulf %127, %105 : vector<8x128xf32>
    %139 = arith.addf %137, %138 : vector<8x128xf32>
    %140 = arith.addi %6, %c2_i32 : i32
    %141 = vector.broadcast %140 : i32 to vector<8x1xi32>
    %142 = arith.cmpi sgt, %3, %141 : vector<8x1xi32>
    %cst_32 = arith.constant 0.000000e+00 : f32
    %143 = vector.shape_cast %142 : vector<8x1xi1> to vector<8x1xi1>
    %144 = vector.broadcast %143 : vector<8x1xi1> to vector<8x128xi1>
    %145 = vector.broadcast %cst_32 : f32 to vector<8x128xf32>
    %146 = arith.select %144, %139, %145 : vector<8x128xi1>, vector<8x128xf32>
    %147 = arith.truncf %146 : vector<8x128xf32> to vector<8x128xbf16>
    %148 = arith.index_cast %c2_i32 : i32 to index
    %c0_33 = arith.constant 0 : index
    %c0_34 = arith.constant 0 : index
    %149 = vector.load %arg6[%148, %c0_33, %c0_34] : memref<8x8x128xbf16, #tpu.memory_space<vmem>>, vector<1x8x128xbf16>
    %150 = vector.shape_cast %149 : vector<1x8x128xbf16> to vector<8x128xbf16>
    %151 = vector.shape_cast %147 : vector<8x128xbf16> to vector<1x8x128xbf16>
    tpu.vector_store %arg6[%148, %c0_33, %c0_34], %151 {strides = array<i32>} : memref<8x8x128xbf16, #tpu.memory_space<vmem>>, vector<1x8x128xbf16>,
    %152 = vector.shape_cast %142 : vector<8x1xi1> to vector<8x1xi1>
    %153 = vector.broadcast %152 : vector<8x1xi1> to vector<8x128xi1>
    %154 = arith.select %153, %139, %105 : vector<8x128xi1>, vector<8x128xf32>
    %c3_i32 = arith.constant 3 : i32
    %155 = arith.index_cast %c3_i32 : i32 to index
    %c0_35 = arith.constant 0 : index
    %c0_36 = arith.constant 0 : index
    %156 = vector.load %arg2[%155, %c0_35, %c0_36] : memref<8x8x384xbf16, #tpu.memory_space<vmem>>, vector<1x8x384xbf16>
    %157 = vector.shape_cast %156 : vector<1x8x384xbf16> to vector<8x384xbf16>
    %158 = arith.extf %157 : vector<8x384xbf16> to vector<8x384xf32>
    %159 = arith.truncf %154 : vector<8x128xf32> to vector<8x128xbf16>
    %cst_37 = arith.constant dense<0.000000e+00> : vector<8x384xf32>
    %160 = tpu.matmul %159, %4, %cst_37 {dimension_numbers = #tpu.dot_dimension_numbers<[1], [0], [0], [1], [0, 0, 1, 1], [], []>} : vector<8x128xbf16>, vector<128x384xbf16>, vector<8x384xf32> -> vector<8x384xf32>
    %161 = vector.extract_strided_slice %158 {offsets = [0, 0], sizes = [8, 128], strides = [1, 1]} : vector<8x384xf32> to vector<8x128xf32>
    %162 = vector.extract_strided_slice %160 {offsets = [0, 0], sizes = [8, 128], strides = [1, 1]} : vector<8x384xf32> to vector<8x128xf32>
    %163 = arith.addf %161, %162 : vector<8x128xf32>
    %164 = arith.negf %163 : vector<8x128xf32>
    %165 = math.exp %164 : vector<8x128xf32>
    %cst_38 = arith.constant 1.000000e+00 : f32
    %166 = vector.broadcast %cst_38 : f32 to vector<8x128xf32>
    %167 = arith.addf %166, %165 : vector<8x128xf32>
    %168 = arith.divf %166, %167 : vector<8x128xf32>
    %169 = vector.extract_strided_slice %158 {offsets = [0, 128], sizes = [8, 128], strides = [1, 1]} : vector<8x384xf32> to vector<8x128xf32>
    %170 = vector.extract_strided_slice %160 {offsets = [0, 128], sizes = [8, 128], strides = [1, 1]} : vector<8x384xf32> to vector<8x128xf32>
    %171 = arith.addf %169, %170 : vector<8x128xf32>
    %172 = arith.negf %171 : vector<8x128xf32>
    %173 = math.exp %172 : vector<8x128xf32>
    %cst_39 = arith.constant 1.000000e+00 : f32
    %174 = vector.broadcast %cst_39 : f32 to vector<8x128xf32>
    %175 = arith.addf %174, %173 : vector<8x128xf32>
    %176 = arith.divf %174, %175 : vector<8x128xf32>
    %177 = vector.extract_strided_slice %158 {offsets = [0, 256], sizes = [8, 128], strides = [1, 1]} : vector<8x384xf32> to vector<8x128xf32>
    %178 = vector.extract_strided_slice %160 {offsets = [0, 256], sizes = [8, 128], strides = [1, 1]} : vector<8x384xf32> to vector<8x128xf32>
    %179 = vector.broadcast %5 : vector<1x128xf32> to vector<8x128xf32>
    %180 = arith.addf %178, %179 : vector<8x128xf32>
    %181 = arith.mulf %168, %180 : vector<8x128xf32>
    %182 = arith.addf %177, %181 : vector<8x128xf32>
    %183 = math.tanh %182 : vector<8x128xf32>
    %cst_40 = arith.constant 1.000000e+00 : f32
    %184 = vector.broadcast %cst_40 : f32 to vector<8x128xf32>
    %185 = arith.subf %184, %176 : vector<8x128xf32>
    %186 = arith.mulf %185, %183 : vector<8x128xf32>
    %187 = arith.mulf %176, %154 : vector<8x128xf32>
    %188 = arith.addf %186, %187 : vector<8x128xf32>
    %189 = arith.addi %6, %c3_i32 : i32
    %190 = vector.broadcast %189 : i32 to vector<8x1xi32>
    %191 = arith.cmpi sgt, %3, %190 : vector<8x1xi32>
    %cst_41 = arith.constant 0.000000e+00 : f32
    %192 = vector.shape_cast %191 : vector<8x1xi1> to vector<8x1xi1>
    %193 = vector.broadcast %192 : vector<8x1xi1> to vector<8x128xi1>
    %194 = vector.broadcast %cst_41 : f32 to vector<8x128xf32>
    %195 = arith.select %193, %188, %194 : vector<8x128xi1>, vector<8x128xf32>
    %196 = arith.truncf %195 : vector<8x128xf32> to vector<8x128xbf16>
    %197 = arith.index_cast %c3_i32 : i32 to index
    %c0_42 = arith.constant 0 : index
    %c0_43 = arith.constant 0 : index
    %198 = vector.load %arg6[%197, %c0_42, %c0_43] : memref<8x8x128xbf16, #tpu.memory_space<vmem>>, vector<1x8x128xbf16>
    %199 = vector.shape_cast %198 : vector<1x8x128xbf16> to vector<8x128xbf16>
    %200 = vector.shape_cast %196 : vector<8x128xbf16> to vector<1x8x128xbf16>
    tpu.vector_store %arg6[%197, %c0_42, %c0_43], %200 {strides = array<i32>} : memref<8x8x128xbf16, #tpu.memory_space<vmem>>, vector<1x8x128xbf16>,
    %201 = vector.shape_cast %191 : vector<8x1xi1> to vector<8x1xi1>
    %202 = vector.broadcast %201 : vector<8x1xi1> to vector<8x128xi1>
    %203 = arith.select %202, %188, %154 : vector<8x128xi1>, vector<8x128xf32>
    %c4_i32 = arith.constant 4 : i32
    %204 = arith.index_cast %c4_i32 : i32 to index
    %c0_44 = arith.constant 0 : index
    %c0_45 = arith.constant 0 : index
    %205 = vector.load %arg2[%204, %c0_44, %c0_45] : memref<8x8x384xbf16, #tpu.memory_space<vmem>>, vector<1x8x384xbf16>
    %206 = vector.shape_cast %205 : vector<1x8x384xbf16> to vector<8x384xbf16>
    %207 = arith.extf %206 : vector<8x384xbf16> to vector<8x384xf32>
    %208 = arith.truncf %203 : vector<8x128xf32> to vector<8x128xbf16>
    %cst_46 = arith.constant dense<0.000000e+00> : vector<8x384xf32>
    %209 = tpu.matmul %208, %4, %cst_46 {dimension_numbers = #tpu.dot_dimension_numbers<[1], [0], [0], [1], [0, 0, 1, 1], [], []>} : vector<8x128xbf16>, vector<128x384xbf16>, vector<8x384xf32> -> vector<8x384xf32>
    %210 = vector.extract_strided_slice %207 {offsets = [0, 0], sizes = [8, 128], strides = [1, 1]} : vector<8x384xf32> to vector<8x128xf32>
    %211 = vector.extract_strided_slice %209 {offsets = [0, 0], sizes = [8, 128], strides = [1, 1]} : vector<8x384xf32> to vector<8x128xf32>
    %212 = arith.addf %210, %211 : vector<8x128xf32>
    %213 = arith.negf %212 : vector<8x128xf32>
    %214 = math.exp %213 : vector<8x128xf32>
    %cst_47 = arith.constant 1.000000e+00 : f32
    %215 = vector.broadcast %cst_47 : f32 to vector<8x128xf32>
    %216 = arith.addf %215, %214 : vector<8x128xf32>
    %217 = arith.divf %215, %216 : vector<8x128xf32>
    %218 = vector.extract_strided_slice %207 {offsets = [0, 128], sizes = [8, 128], strides = [1, 1]} : vector<8x384xf32> to vector<8x128xf32>
    %219 = vector.extract_strided_slice %209 {offsets = [0, 128], sizes = [8, 128], strides = [1, 1]} : vector<8x384xf32> to vector<8x128xf32>
    %220 = arith.addf %218, %219 : vector<8x128xf32>
    %221 = arith.negf %220 : vector<8x128xf32>
    %222 = math.exp %221 : vector<8x128xf32>
    %cst_48 = arith.constant 1.000000e+00 : f32
    %223 = vector.broadcast %cst_48 : f32 to vector<8x128xf32>
    %224 = arith.addf %223, %222 : vector<8x128xf32>
    %225 = arith.divf %223, %224 : vector<8x128xf32>
    %226 = vector.extract_strided_slice %207 {offsets = [0, 256], sizes = [8, 128], strides = [1, 1]} : vector<8x384xf32> to vector<8x128xf32>
    %227 = vector.extract_strided_slice %209 {offsets = [0, 256], sizes = [8, 128], strides = [1, 1]} : vector<8x384xf32> to vector<8x128xf32>
    %228 = vector.broadcast %5 : vector<1x128xf32> to vector<8x128xf32>
    %229 = arith.addf %227, %228 : vector<8x128xf32>
    %230 = arith.mulf %217, %229 : vector<8x128xf32>
    %231 = arith.addf %226, %230 : vector<8x128xf32>
    %232 = math.tanh %231 : vector<8x128xf32>
    %cst_49 = arith.constant 1.000000e+00 : f32
    %233 = vector.broadcast %cst_49 : f32 to vector<8x128xf32>
    %234 = arith.subf %233, %225 : vector<8x128xf32>
    %235 = arith.mulf %234, %232 : vector<8x128xf32>
    %236 = arith.mulf %225, %203 : vector<8x128xf32>
    %237 = arith.addf %235, %236 : vector<8x128xf32>
    %238 = arith.addi %6, %c4_i32 : i32
    %239 = vector.broadcast %238 : i32 to vector<8x1xi32>
    %240 = arith.cmpi sgt, %3, %239 : vector<8x1xi32>
    %cst_50 = arith.constant 0.000000e+00 : f32
    %241 = vector.shape_cast %240 : vector<8x1xi1> to vector<8x1xi1>
    %242 = vector.broadcast %241 : vector<8x1xi1> to vector<8x128xi1>
    %243 = vector.broadcast %cst_50 : f32 to vector<8x128xf32>
    %244 = arith.select %242, %237, %243 : vector<8x128xi1>, vector<8x128xf32>
    %245 = arith.truncf %244 : vector<8x128xf32> to vector<8x128xbf16>
    %246 = arith.index_cast %c4_i32 : i32 to index
    %c0_51 = arith.constant 0 : index
    %c0_52 = arith.constant 0 : index
    %247 = vector.load %arg6[%246, %c0_51, %c0_52] : memref<8x8x128xbf16, #tpu.memory_space<vmem>>, vector<1x8x128xbf16>
    %248 = vector.shape_cast %247 : vector<1x8x128xbf16> to vector<8x128xbf16>
    %249 = vector.shape_cast %245 : vector<8x128xbf16> to vector<1x8x128xbf16>
    tpu.vector_store %arg6[%246, %c0_51, %c0_52], %249 {strides = array<i32>} : memref<8x8x128xbf16, #tpu.memory_space<vmem>>, vector<1x8x128xbf16>,
    %250 = vector.shape_cast %240 : vector<8x1xi1> to vector<8x1xi1>
    %251 = vector.broadcast %250 : vector<8x1xi1> to vector<8x128xi1>
    %252 = arith.select %251, %237, %203 : vector<8x128xi1>, vector<8x128xf32>
    %c5_i32 = arith.constant 5 : i32
    %253 = arith.index_cast %c5_i32 : i32 to index
    %c0_53 = arith.constant 0 : index
    %c0_54 = arith.constant 0 : index
    %254 = vector.load %arg2[%253, %c0_53, %c0_54] : memref<8x8x384xbf16, #tpu.memory_space<vmem>>, vector<1x8x384xbf16>
    %255 = vector.shape_cast %254 : vector<1x8x384xbf16> to vector<8x384xbf16>
    %256 = arith.extf %255 : vector<8x384xbf16> to vector<8x384xf32>
    %257 = arith.truncf %252 : vector<8x128xf32> to vector<8x128xbf16>
    %cst_55 = arith.constant dense<0.000000e+00> : vector<8x384xf32>
    %258 = tpu.matmul %257, %4, %cst_55 {dimension_numbers = #tpu.dot_dimension_numbers<[1], [0], [0], [1], [0, 0, 1, 1], [], []>} : vector<8x128xbf16>, vector<128x384xbf16>, vector<8x384xf32> -> vector<8x384xf32>
    %259 = vector.extract_strided_slice %256 {offsets = [0, 0], sizes = [8, 128], strides = [1, 1]} : vector<8x384xf32> to vector<8x128xf32>
    %260 = vector.extract_strided_slice %258 {offsets = [0, 0], sizes = [8, 128], strides = [1, 1]} : vector<8x384xf32> to vector<8x128xf32>
    %261 = arith.addf %259, %260 : vector<8x128xf32>
    %262 = arith.negf %261 : vector<8x128xf32>
    %263 = math.exp %262 : vector<8x128xf32>
    %cst_56 = arith.constant 1.000000e+00 : f32
    %264 = vector.broadcast %cst_56 : f32 to vector<8x128xf32>
    %265 = arith.addf %264, %263 : vector<8x128xf32>
    %266 = arith.divf %264, %265 : vector<8x128xf32>
    %267 = vector.extract_strided_slice %256 {offsets = [0, 128], sizes = [8, 128], strides = [1, 1]} : vector<8x384xf32> to vector<8x128xf32>
    %268 = vector.extract_strided_slice %258 {offsets = [0, 128], sizes = [8, 128], strides = [1, 1]} : vector<8x384xf32> to vector<8x128xf32>
    %269 = arith.addf %267, %268 : vector<8x128xf32>
    %270 = arith.negf %269 : vector<8x128xf32>
    %271 = math.exp %270 : vector<8x128xf32>
    %cst_57 = arith.constant 1.000000e+00 : f32
    %272 = vector.broadcast %cst_57 : f32 to vector<8x128xf32>
    %273 = arith.addf %272, %271 : vector<8x128xf32>
    %274 = arith.divf %272, %273 : vector<8x128xf32>
    %275 = vector.extract_strided_slice %256 {offsets = [0, 256], sizes = [8, 128], strides = [1, 1]} : vector<8x384xf32> to vector<8x128xf32>
    %276 = vector.extract_strided_slice %258 {offsets = [0, 256], sizes = [8, 128], strides = [1, 1]} : vector<8x384xf32> to vector<8x128xf32>
    %277 = vector.broadcast %5 : vector<1x128xf32> to vector<8x128xf32>
    %278 = arith.addf %276, %277 : vector<8x128xf32>
    %279 = arith.mulf %266, %278 : vector<8x128xf32>
    %280 = arith.addf %275, %279 : vector<8x128xf32>
    %281 = math.tanh %280 : vector<8x128xf32>
    %cst_58 = arith.constant 1.000000e+00 : f32
    %282 = vector.broadcast %cst_58 : f32 to vector<8x128xf32>
    %283 = arith.subf %282, %274 : vector<8x128xf32>
    %284 = arith.mulf %283, %281 : vector<8x128xf32>
    %285 = arith.mulf %274, %252 : vector<8x128xf32>
    %286 = arith.addf %284, %285 : vector<8x128xf32>
    %287 = arith.addi %6, %c5_i32 : i32
    %288 = vector.broadcast %287 : i32 to vector<8x1xi32>
    %289 = arith.cmpi sgt, %3, %288 : vector<8x1xi32>
    %cst_59 = arith.constant 0.000000e+00 : f32
    %290 = vector.shape_cast %289 : vector<8x1xi1> to vector<8x1xi1>
    %291 = vector.broadcast %290 : vector<8x1xi1> to vector<8x128xi1>
    %292 = vector.broadcast %cst_59 : f32 to vector<8x128xf32>
    %293 = arith.select %291, %286, %292 : vector<8x128xi1>, vector<8x128xf32>
    %294 = arith.truncf %293 : vector<8x128xf32> to vector<8x128xbf16>
    %295 = arith.index_cast %c5_i32 : i32 to index
    %c0_60 = arith.constant 0 : index
    %c0_61 = arith.constant 0 : index
    %296 = vector.load %arg6[%295, %c0_60, %c0_61] : memref<8x8x128xbf16, #tpu.memory_space<vmem>>, vector<1x8x128xbf16>
    %297 = vector.shape_cast %296 : vector<1x8x128xbf16> to vector<8x128xbf16>
    %298 = vector.shape_cast %294 : vector<8x128xbf16> to vector<1x8x128xbf16>
    tpu.vector_store %arg6[%295, %c0_60, %c0_61], %298 {strides = array<i32>} : memref<8x8x128xbf16, #tpu.memory_space<vmem>>, vector<1x8x128xbf16>,
    %299 = vector.shape_cast %289 : vector<8x1xi1> to vector<8x1xi1>
    %300 = vector.broadcast %299 : vector<8x1xi1> to vector<8x128xi1>
    %301 = arith.select %300, %286, %252 : vector<8x128xi1>, vector<8x128xf32>
    %c6_i32 = arith.constant 6 : i32
    %302 = arith.index_cast %c6_i32 : i32 to index
    %c0_62 = arith.constant 0 : index
    %c0_63 = arith.constant 0 : index
    %303 = vector.load %arg2[%302, %c0_62, %c0_63] : memref<8x8x384xbf16, #tpu.memory_space<vmem>>, vector<1x8x384xbf16>
    %304 = vector.shape_cast %303 : vector<1x8x384xbf16> to vector<8x384xbf16>
    %305 = arith.extf %304 : vector<8x384xbf16> to vector<8x384xf32>
    %306 = arith.truncf %301 : vector<8x128xf32> to vector<8x128xbf16>
    %cst_64 = arith.constant dense<0.000000e+00> : vector<8x384xf32>
    %307 = tpu.matmul %306, %4, %cst_64 {dimension_numbers = #tpu.dot_dimension_numbers<[1], [0], [0], [1], [0, 0, 1, 1], [], []>} : vector<8x128xbf16>, vector<128x384xbf16>, vector<8x384xf32> -> vector<8x384xf32>
    %308 = vector.extract_strided_slice %305 {offsets = [0, 0], sizes = [8, 128], strides = [1, 1]} : vector<8x384xf32> to vector<8x128xf32>
    %309 = vector.extract_strided_slice %307 {offsets = [0, 0], sizes = [8, 128], strides = [1, 1]} : vector<8x384xf32> to vector<8x128xf32>
    %310 = arith.addf %308, %309 : vector<8x128xf32>
    %311 = arith.negf %310 : vector<8x128xf32>
    %312 = math.exp %311 : vector<8x128xf32>
    %cst_65 = arith.constant 1.000000e+00 : f32
    %313 = vector.broadcast %cst_65 : f32 to vector<8x128xf32>
    %314 = arith.addf %313, %312 : vector<8x128xf32>
    %315 = arith.divf %313, %314 : vector<8x128xf32>
    %316 = vector.extract_strided_slice %305 {offsets = [0, 128], sizes = [8, 128], strides = [1, 1]} : vector<8x384xf32> to vector<8x128xf32>
    %317 = vector.extract_strided_slice %307 {offsets = [0, 128], sizes = [8, 128], strides = [1, 1]} : vector<8x384xf32> to vector<8x128xf32>
    %318 = arith.addf %316, %317 : vector<8x128xf32>
    %319 = arith.negf %318 : vector<8x128xf32>
    %320 = math.exp %319 : vector<8x128xf32>
    %cst_66 = arith.constant 1.000000e+00 : f32
    %321 = vector.broadcast %cst_66 : f32 to vector<8x128xf32>
    %322 = arith.addf %321, %320 : vector<8x128xf32>
    %323 = arith.divf %321, %322 : vector<8x128xf32>
    %324 = vector.extract_strided_slice %305 {offsets = [0, 256], sizes = [8, 128], strides = [1, 1]} : vector<8x384xf32> to vector<8x128xf32>
    %325 = vector.extract_strided_slice %307 {offsets = [0, 256], sizes = [8, 128], strides = [1, 1]} : vector<8x384xf32> to vector<8x128xf32>
    %326 = vector.broadcast %5 : vector<1x128xf32> to vector<8x128xf32>
    %327 = arith.addf %325, %326 : vector<8x128xf32>
    %328 = arith.mulf %315, %327 : vector<8x128xf32>
    %329 = arith.addf %324, %328 : vector<8x128xf32>
    %330 = math.tanh %329 : vector<8x128xf32>
    %cst_67 = arith.constant 1.000000e+00 : f32
    %331 = vector.broadcast %cst_67 : f32 to vector<8x128xf32>
    %332 = arith.subf %331, %323 : vector<8x128xf32>
    %333 = arith.mulf %332, %330 : vector<8x128xf32>
    %334 = arith.mulf %323, %301 : vector<8x128xf32>
    %335 = arith.addf %333, %334 : vector<8x128xf32>
    %336 = arith.addi %6, %c6_i32 : i32
    %337 = vector.broadcast %336 : i32 to vector<8x1xi32>
    %338 = arith.cmpi sgt, %3, %337 : vector<8x1xi32>
    %cst_68 = arith.constant 0.000000e+00 : f32
    %339 = vector.shape_cast %338 : vector<8x1xi1> to vector<8x1xi1>
    %340 = vector.broadcast %339 : vector<8x1xi1> to vector<8x128xi1>
    %341 = vector.broadcast %cst_68 : f32 to vector<8x128xf32>
    %342 = arith.select %340, %335, %341 : vector<8x128xi1>, vector<8x128xf32>
    %343 = arith.truncf %342 : vector<8x128xf32> to vector<8x128xbf16>
    %344 = arith.index_cast %c6_i32 : i32 to index
    %c0_69 = arith.constant 0 : index
    %c0_70 = arith.constant 0 : index
    %345 = vector.load %arg6[%344, %c0_69, %c0_70] : memref<8x8x128xbf16, #tpu.memory_space<vmem>>, vector<1x8x128xbf16>
    %346 = vector.shape_cast %345 : vector<1x8x128xbf16> to vector<8x128xbf16>
    %347 = vector.shape_cast %343 : vector<8x128xbf16> to vector<1x8x128xbf16>
    tpu.vector_store %arg6[%344, %c0_69, %c0_70], %347 {strides = array<i32>} : memref<8x8x128xbf16, #tpu.memory_space<vmem>>, vector<1x8x128xbf16>,
    %348 = vector.shape_cast %338 : vector<8x1xi1> to vector<8x1xi1>
    %349 = vector.broadcast %348 : vector<8x1xi1> to vector<8x128xi1>
    %350 = arith.select %349, %335, %301 : vector<8x128xi1>, vector<8x128xf32>
    %c7_i32 = arith.constant 7 : i32
    %351 = arith.index_cast %c7_i32 : i32 to index
    %c0_71 = arith.constant 0 : index
    %c0_72 = arith.constant 0 : index
    %352 = vector.load %arg2[%351, %c0_71, %c0_72] : memref<8x8x384xbf16, #tpu.memory_space<vmem>>, vector<1x8x384xbf16>
    %353 = vector.shape_cast %352 : vector<1x8x384xbf16> to vector<8x384xbf16>
    %354 = arith.extf %353 : vector<8x384xbf16> to vector<8x384xf32>
    %355 = arith.truncf %350 : vector<8x128xf32> to vector<8x128xbf16>
    %cst_73 = arith.constant dense<0.000000e+00> : vector<8x384xf32>
    %356 = tpu.matmul %355, %4, %cst_73 {dimension_numbers = #tpu.dot_dimension_numbers<[1], [0], [0], [1], [0, 0, 1, 1], [], []>} : vector<8x128xbf16>, vector<128x384xbf16>, vector<8x384xf32> -> vector<8x384xf32>
    %357 = vector.extract_strided_slice %354 {offsets = [0, 0], sizes = [8, 128], strides = [1, 1]} : vector<8x384xf32> to vector<8x128xf32>
    %358 = vector.extract_strided_slice %356 {offsets = [0, 0], sizes = [8, 128], strides = [1, 1]} : vector<8x384xf32> to vector<8x128xf32>
    %359 = arith.addf %357, %358 : vector<8x128xf32>
    %360 = arith.negf %359 : vector<8x128xf32>
    %361 = math.exp %360 : vector<8x128xf32>
    %cst_74 = arith.constant 1.000000e+00 : f32
    %362 = vector.broadcast %cst_74 : f32 to vector<8x128xf32>
    %363 = arith.addf %362, %361 : vector<8x128xf32>
    %364 = arith.divf %362, %363 : vector<8x128xf32>
    %365 = vector.extract_strided_slice %354 {offsets = [0, 128], sizes = [8, 128], strides = [1, 1]} : vector<8x384xf32> to vector<8x128xf32>
    %366 = vector.extract_strided_slice %356 {offsets = [0, 128], sizes = [8, 128], strides = [1, 1]} : vector<8x384xf32> to vector<8x128xf32>
    %367 = arith.addf %365, %366 : vector<8x128xf32>
    %368 = arith.negf %367 : vector<8x128xf32>
    %369 = math.exp %368 : vector<8x128xf32>
    %cst_75 = arith.constant 1.000000e+00 : f32
    %370 = vector.broadcast %cst_75 : f32 to vector<8x128xf32>
    %371 = arith.addf %370, %369 : vector<8x128xf32>
    %372 = arith.divf %370, %371 : vector<8x128xf32>
    %373 = vector.extract_strided_slice %354 {offsets = [0, 256], sizes = [8, 128], strides = [1, 1]} : vector<8x384xf32> to vector<8x128xf32>
    %374 = vector.extract_strided_slice %356 {offsets = [0, 256], sizes = [8, 128], strides = [1, 1]} : vector<8x384xf32> to vector<8x128xf32>
    %375 = vector.broadcast %5 : vector<1x128xf32> to vector<8x128xf32>
    %376 = arith.addf %374, %375 : vector<8x128xf32>
    %377 = arith.mulf %364, %376 : vector<8x128xf32>
    %378 = arith.addf %373, %377 : vector<8x128xf32>
    %379 = math.tanh %378 : vector<8x128xf32>
    %cst_76 = arith.constant 1.000000e+00 : f32
    %380 = vector.broadcast %cst_76 : f32 to vector<8x128xf32>
    %381 = arith.subf %380, %372 : vector<8x128xf32>
    %382 = arith.mulf %381, %379 : vector<8x128xf32>
    %383 = arith.mulf %372, %350 : vector<8x128xf32>
    %384 = arith.addf %382, %383 : vector<8x128xf32>
    %385 = arith.addi %6, %c7_i32 : i32
    %386 = vector.broadcast %385 : i32 to vector<8x1xi32>
    %387 = arith.cmpi sgt, %3, %386 : vector<8x1xi32>
    %cst_77 = arith.constant 0.000000e+00 : f32
    %388 = vector.shape_cast %387 : vector<8x1xi1> to vector<8x1xi1>
    %389 = vector.broadcast %388 : vector<8x1xi1> to vector<8x128xi1>
    %390 = vector.broadcast %cst_77 : f32 to vector<8x128xf32>
    %391 = arith.select %389, %384, %390 : vector<8x128xi1>, vector<8x128xf32>
    %392 = arith.truncf %391 : vector<8x128xf32> to vector<8x128xbf16>
    %393 = arith.index_cast %c7_i32 : i32 to index
    %c0_78 = arith.constant 0 : index
    %c0_79 = arith.constant 0 : index
    %394 = vector.load %arg6[%393, %c0_78, %c0_79] : memref<8x8x128xbf16, #tpu.memory_space<vmem>>, vector<1x8x128xbf16>
    %395 = vector.shape_cast %394 : vector<1x8x128xbf16> to vector<8x128xbf16>
    %396 = vector.shape_cast %392 : vector<8x128xbf16> to vector<1x8x128xbf16>
    tpu.vector_store %arg6[%393, %c0_78, %c0_79], %396 {strides = array<i32>} : memref<8x8x128xbf16, #tpu.memory_space<vmem>>, vector<1x8x128xbf16>,
    %397 = vector.shape_cast %387 : vector<8x1xi1> to vector<8x1xi1>
    %398 = vector.broadcast %397 : vector<8x1xi1> to vector<8x128xi1>
    %399 = arith.select %398, %384, %350 : vector<8x128xi1>, vector<8x128xf32>
    %c8_i32_80 = arith.constant 8 : i32
    %c0_81 = arith.constant 0 : index
    %c0_82 = arith.constant 0 : index
    %400 = vector.load %arg8[%c0_81, %c0_82] : memref<8x128xf32, #tpu.memory_space<vmem>>, vector<8x128xf32>
    tpu.vector_store %arg8[%c0_81, %c0_82], %399 {strides = array<i32>} : memref<8x128xf32, #tpu.memory_space<vmem>>, vector<8x128xf32>,
    %c0_i32_83 = arith.constant 0 : i32
    %401 = arith.cmpi eq, %arg1, %c0_i32_83 : i32
    %402 = arith.extui %401 : i1 to i32
    %c0_i32_84 = arith.constant 0 : i32
    %403 = arith.cmpi ne, %402, %c0_i32_84 : i32
    scf.if %403 {
      %c0_85 = arith.constant 0 : index
      %c0_86 = arith.constant 0 : index
      %c0_87 = arith.constant 0 : index
      %404 = vector.load %arg7[%c0_85, %c0_86, %c0_87] : memref<1x8x128xf32, #tpu.memory_space<vmem>>, vector<1x8x128xf32>
      %405 = vector.shape_cast %404 : vector<1x8x128xf32> to vector<8x128xf32>
      %406 = vector.shape_cast %399 : vector<8x128xf32> to vector<1x8x128xf32>
      tpu.vector_store %arg7[%c0_85, %c0_86, %c0_87], %406 {strides = array<i32>} : memref<1x8x128xf32, #tpu.memory_space<vmem>>, vector<1x8x128xf32>,
    } else {
    }
    return
  }
  func.func @transform_0(%arg0: i32, %arg1: i32) -> (i32, i32, i32) {
    %c0_i32 = arith.constant 0 : i32
    %c0_i32_0 = arith.constant 0 : i32
    return %arg1, %arg0, %c0_i32 : i32, i32, i32
  }
  func.func @transform_1(%arg0: i32, %arg1: i32) -> (i32, i32) {
    %c0_i32 = arith.constant 0 : i32
    %c0_i32_0 = arith.constant 0 : i32
    return %arg0, %c0_i32 : i32, i32
  }
  func.func @transform_2(%arg0: i32, %arg1: i32) -> (i32, i32) {
    %c0_i32 = arith.constant 0 : i32
    %c0_i32_0 = arith.constant 0 : i32
    %c0_i32_1 = arith.constant 0 : i32
    return %c0_i32, %c0_i32_0 : i32, i32
  }
  func.func @transform_3(%arg0: i32, %arg1: i32) -> (i32, i32) {
    %c0_i32 = arith.constant 0 : i32
    %c0_i32_0 = arith.constant 0 : i32
    %c0_i32_1 = arith.constant 0 : i32
    return %c0_i32, %c0_i32_0 : i32, i32
  }
  func.func @transform_4(%arg0: i32, %arg1: i32) -> (i32, i32, i32) {
    %c0_i32 = arith.constant 0 : i32
    %c0_i32_0 = arith.constant 0 : i32
    return %arg1, %arg0, %c0_i32 : i32, i32, i32
  }
  func.func @transform_5(%arg0: i32, %arg1: i32) -> (i32, i32, i32) {
    %c0_i32 = arith.constant 0 : i32
    %c0_i32_0 = arith.constant 0 : i32
    %c0_i32_1 = arith.constant 0 : i32
    return %c0_i32, %arg0, %c0_i32_0 : i32, i32, i32
  }
}

module attributes {stable_mosaic.version = 11 : i64} {
  func.func @_gru_chunk_kernel(%arg0: i32, %arg1: i32, %arg2: memref<8x8x384xbf16, #tpu.memory_space<vmem>>, %arg3: memref<8x1xi32, #tpu.memory_space<vmem>>, %arg4: memref<128x384xbf16, #tpu.memory_space<vmem>>, %arg5: memref<1x128xf32, #tpu.memory_space<vmem>>, %arg6: memref<8x8x128xbf16, #tpu.memory_space<vmem>>, %arg7: memref<1x8x128xf32, #tpu.memory_space<vmem>>, %arg8: memref<8x128xf32, #tpu.memory_space<vmem>>) attributes {dimension_semantics = [#tpu.dimension_semantics<parallel>, #tpu.dimension_semantics<arbitrary>], iteration_bounds = array<i64: 1, 1>, scalar_prefetch = 0 : i64, scratch_operands = 1 : i64, tpu.core_type = #tpu.core_type<tc>, window_params = [{transform_indices = @transform_0, window_bounds = array<i64: 8, 8, 384>}, {transform_indices = @transform_1, window_bounds = array<i64: 8, 1>}, {pipeline_mode = #tpu.pipeline_mode<synchronous>, transform_indices = @transform_2, window_bounds = array<i64: 128, 384>}, {pipeline_mode = #tpu.pipeline_mode<synchronous>, transform_indices = @transform_3, window_bounds = array<i64: 1, 128>}, {transform_indices = @transform_4, window_bounds = array<i64: 8, 8, 128>}, {transform_indices = @transform_5, window_bounds = array<i64: 1, 8, 128>}]} {
    %c0_i32 = arith.constant 0 : i32
    %0 = arith.cmpi eq, %arg1, %c0_i32 : i32
    %1 = arith.extui %0 : i1 to i32
    %c0_i32_0 = arith.constant 0 : i32
    %2 = arith.cmpi ne, %1, %c0_i32_0 : i32
    scf.if %2 {
      %cst_85 = arith.constant 0.000000e+00 : f32
      %404 = vector.broadcast %cst_85 : f32 to vector<8x128xf32>
      %c0_86 = arith.constant 0 : index
      %c0_87 = arith.constant 0 : index
      %405 = vector.load %arg8[%c0_86, %c0_87] : memref<8x128xf32, #tpu.memory_space<vmem>>, vector<8x128xf32>
      tpu.vector_store %arg8[%c0_86, %c0_87], %404 {strides = array<i32>} : memref<8x128xf32, #tpu.memory_space<vmem>>, vector<8x128xf32>,
    } else {
    }
    %c0 = arith.constant 0 : index
    %c0_1 = arith.constant 0 : index
    %3 = vector.load %arg3[%c0, %c0_1] : memref<8x1xi32, #tpu.memory_space<vmem>>, vector<8x1xi32>
    %c0_2 = arith.constant 0 : index
    %c0_3 = arith.constant 0 : index
    %4 = vector.load %arg4[%c0_2, %c0_3] : memref<128x384xbf16, #tpu.memory_space<vmem>>, vector<128x384xbf16>
    %c0_4 = arith.constant 0 : index
    %c0_5 = arith.constant 0 : index
    %5 = vector.load %arg5[%c0_4, %c0_5] : memref<1x128xf32, #tpu.memory_space<vmem>>, vector<1x128xf32>
    %c8_i32 = arith.constant 8 : i32
    %6 = arith.muli %arg1, %c8_i32 : i32
    %c0_6 = arith.constant 0 : index
    %c0_7 = arith.constant 0 : index
    %7 = vector.load %arg8[%c0_6, %c0_7] : memref<8x128xf32, #tpu.memory_space<vmem>>, vector<8x128xf32>
    %c0_i32_8 = arith.constant 0 : i32
    %8 = arith.index_cast %c0_i32_8 : i32 to index
    %c0_9 = arith.constant 0 : index
    %c0_10 = arith.constant 0 : index
    %9 = vector.load %arg2[%8, %c0_9, %c0_10] : memref<8x8x384xbf16, #tpu.memory_space<vmem>>, vector<1x8x384xbf16>
    %10 = vector.shape_cast %9 : vector<1x8x384xbf16> to vector<8x384xbf16>
    %11 = arith.extf %10 : vector<8x384xbf16> to vector<8x384xf32>
    %12 = arith.truncf %7 : vector<8x128xf32> to vector<8x128xbf16>
    %cst = arith.constant dense<0.000000e+00> : vector<8x384xf32>
    %13 = tpu.matmul %12, %4, %cst {dimension_numbers = #tpu.dot_dimension_numbers<[1], [0], [0], [1], [0, 0, 1, 1], [], []>} : vector<8x128xbf16>, vector<128x384xbf16>, vector<8x384xf32> -> vector<8x384xf32>
    %14 = vector.extract_strided_slice %11 {offsets = [0, 0], sizes = [8, 128], strides = [1, 1]} : vector<8x384xf32> to vector<8x128xf32>
    %15 = vector.extract_strided_slice %13 {offsets = [0, 0], sizes = [8, 128], strides = [1, 1]} : vector<8x384xf32> to vector<8x128xf32>
    %16 = arith.addf %14, %15 : vector<8x128xf32>
    %17 = arith.negf %16 : vector<8x128xf32>
    %18 = math.exp %17 : vector<8x128xf32>
    %cst_11 = arith.constant 1.000000e+00 : f32
    %19 = vector.broadcast %cst_11 : f32 to vector<8x128xf32>
    %20 = arith.addf %19, %18 : vector<8x128xf32>
    %21 = arith.divf %19, %20 : vector<8x128xf32>
    %22 = vector.extract_strided_slice %11 {offsets = [0, 128], sizes = [8, 128], strides = [1, 1]} : vector<8x384xf32> to vector<8x128xf32>
    %23 = vector.extract_strided_slice %13 {offsets = [0, 128], sizes = [8, 128], strides = [1, 1]} : vector<8x384xf32> to vector<8x128xf32>
    %24 = arith.addf %22, %23 : vector<8x128xf32>
    %25 = arith.negf %24 : vector<8x128xf32>
    %26 = math.exp %25 : vector<8x128xf32>
    %cst_12 = arith.constant 1.000000e+00 : f32
    %27 = vector.broadcast %cst_12 : f32 to vector<8x128xf32>
    %28 = arith.addf %27, %26 : vector<8x128xf32>
    %29 = arith.divf %27, %28 : vector<8x128xf32>
    %30 = vector.extract_strided_slice %11 {offsets = [0, 256], sizes = [8, 128], strides = [1, 1]} : vector<8x384xf32> to vector<8x128xf32>
    %31 = vector.extract_strided_slice %13 {offsets = [0, 256], sizes = [8, 128], strides = [1, 1]} : vector<8x384xf32> to vector<8x128xf32>
    %32 = vector.broadcast %5 : vector<1x128xf32> to vector<8x128xf32>
    %33 = arith.addf %31, %32 : vector<8x128xf32>
    %34 = arith.mulf %21, %33 : vector<8x128xf32>
    %35 = arith.addf %30, %34 : vector<8x128xf32>
    %36 = math.tanh %35 : vector<8x128xf32>
    %cst_13 = arith.constant 1.000000e+00 : f32
    %37 = vector.broadcast %cst_13 : f32 to vector<8x128xf32>
    %38 = arith.subf %37, %29 : vector<8x128xf32>
    %39 = arith.mulf %38, %36 : vector<8x128xf32>
    %40 = arith.mulf %29, %7 : vector<8x128xf32>
    %41 = arith.addf %39, %40 : vector<8x128xf32>
    %42 = arith.addi %6, %c0_i32_8 : i32
    %43 = vector.broadcast %42 : i32 to vector<8x1xi32>
    %44 = arith.cmpi sgt, %3, %43 : vector<8x1xi32>
    %cst_14 = arith.constant 0.000000e+00 : f32
    %45 = vector.shape_cast %44 : vector<8x1xi1> to vector<8x1xi1>
    %46 = vector.broadcast %45 : vector<8x1xi1> to vector<8x128xi1>
    %47 = vector.broadcast %cst_14 : f32 to vector<8x128xf32>
    %48 = arith.select %46, %41, %47 : vector<8x128xi1>, vector<8x128xf32>
    %49 = arith.truncf %48 : vector<8x128xf32> to vector<8x128xbf16>
    %50 = arith.index_cast %c0_i32_8 : i32 to index
    %c0_15 = arith.constant 0 : index
    %c0_16 = arith.constant 0 : index
    %51 = vector.load %arg6[%50, %c0_15, %c0_16] : memref<8x8x128xbf16, #tpu.memory_space<vmem>>, vector<1x8x128xbf16>
    %52 = vector.shape_cast %51 : vector<1x8x128xbf16> to vector<8x128xbf16>
    %53 = vector.shape_cast %49 : vector<8x128xbf16> to vector<1x8x128xbf16>
    tpu.vector_store %arg6[%50, %c0_15, %c0_16], %53 {strides = array<i32>} : memref<8x8x128xbf16, #tpu.memory_space<vmem>>, vector<1x8x128xbf16>,
    %54 = vector.shape_cast %44 : vector<8x1xi1> to vector<8x1xi1>
    %55 = vector.broadcast %54 : vector<8x1xi1> to vector<8x128xi1>
    %56 = arith.select %55, %41, %7 : vector<8x128xi1>, vector<8x128xf32>
    %c1_i32 = arith.constant 1 : i32
    %57 = arith.index_cast %c1_i32 : i32 to index
    %c0_17 = arith.constant 0 : index
    %c0_18 = arith.constant 0 : index
    %58 = vector.load %arg2[%57, %c0_17, %c0_18] : memref<8x8x384xbf16, #tpu.memory_space<vmem>>, vector<1x8x384xbf16>
    %59 = vector.shape_cast %58 : vector<1x8x384xbf16> to vector<8x384xbf16>
    %60 = arith.extf %59 : vector<8x384xbf16> to vector<8x384xf32>
    %61 = arith.truncf %56 : vector<8x128xf32> to vector<8x128xbf16>
    %cst_19 = arith.constant dense<0.000000e+00> : vector<8x384xf32>
    %62 = tpu.matmul %61, %4, %cst_19 {dimension_numbers = #tpu.dot_dimension_numbers<[1], [0], [0], [1], [0, 0, 1, 1], [], []>} : vector<8x128xbf16>, vector<128x384xbf16>, vector<8x384xf32> -> vector<8x384xf32>
    %63 = vector.extract_strided_slice %60 {offsets = [0, 0], sizes = [8, 128], strides = [1, 1]} : vector<8x384xf32> to vector<8x128xf32>
    %64 = vector.extract_strided_slice %62 {offsets = [0, 0], sizes = [8, 128], strides = [1, 1]} : vector<8x384xf32> to vector<8x128xf32>
    %65 = arith.addf %63, %64 : vector<8x128xf32>
    %66 = arith.negf %65 : vector<8x128xf32>
    %67 = math.exp %66 : vector<8x128xf32>
    %cst_20 = arith.constant 1.000000e+00 : f32
    %68 = vector.broadcast %cst_20 : f32 to vector<8x128xf32>
    %69 = arith.addf %68, %67 : vector<8x128xf32>
    %70 = arith.divf %68, %69 : vector<8x128xf32>
    %71 = vector.extract_strided_slice %60 {offsets = [0, 128], sizes = [8, 128], strides = [1, 1]} : vector<8x384xf32> to vector<8x128xf32>
    %72 = vector.extract_strided_slice %62 {offsets = [0, 128], sizes = [8, 128], strides = [1, 1]} : vector<8x384xf32> to vector<8x128xf32>
    %73 = arith.addf %71, %72 : vector<8x128xf32>
    %74 = arith.negf %73 : vector<8x128xf32>
    %75 = math.exp %74 : vector<8x128xf32>
    %cst_21 = arith.constant 1.000000e+00 : f32
    %76 = vector.broadcast %cst_21 : f32 to vector<8x128xf32>
    %77 = arith.addf %76, %75 : vector<8x128xf32>
    %78 = arith.divf %76, %77 : vector<8x128xf32>
    %79 = vector.extract_strided_slice %60 {offsets = [0, 256], sizes = [8, 128], strides = [1, 1]} : vector<8x384xf32> to vector<8x128xf32>
    %80 = vector.extract_strided_slice %62 {offsets = [0, 256], sizes = [8, 128], strides = [1, 1]} : vector<8x384xf32> to vector<8x128xf32>
    %81 = vector.broadcast %5 : vector<1x128xf32> to vector<8x128xf32>
    %82 = arith.addf %80, %81 : vector<8x128xf32>
    %83 = arith.mulf %70, %82 : vector<8x128xf32>
    %84 = arith.addf %79, %83 : vector<8x128xf32>
    %85 = math.tanh %84 : vector<8x128xf32>
    %cst_22 = arith.constant 1.000000e+00 : f32
    %86 = vector.broadcast %cst_22 : f32 to vector<8x128xf32>
    %87 = arith.subf %86, %78 : vector<8x128xf32>
    %88 = arith.mulf %87, %85 : vector<8x128xf32>
    %89 = arith.mulf %78, %56 : vector<8x128xf32>
    %90 = arith.addf %88, %89 : vector<8x128xf32>
    %91 = arith.addi %6, %c1_i32 : i32
    %92 = vector.broadcast %91 : i32 to vector<8x1xi32>
    %93 = arith.cmpi sgt, %3, %92 : vector<8x1xi32>
    %cst_23 = arith.constant 0.000000e+00 : f32
    %94 = vector.shape_cast %93 : vector<8x1xi1> to vector<8x1xi1>
    %95 = vector.broadcast %94 : vector<8x1xi1> to vector<8x128xi1>
    %96 = vector.broadcast %cst_23 : f32 to vector<8x128xf32>
    %97 = arith.select %95, %90, %96 : vector<8x128xi1>, vector<8x128xf32>
    %98 = arith.truncf %97 : vector<8x128xf32> to vector<8x128xbf16>
    %99 = arith.index_cast %c1_i32 : i32 to index
    %c0_24 = arith.constant 0 : index
    %c0_25 = arith.constant 0 : index
    %100 = vector.load %arg6[%99, %c0_24, %c0_25] : memref<8x8x128xbf16, #tpu.memory_space<vmem>>, vector<1x8x128xbf16>
    %101 = vector.shape_cast %100 : vector<1x8x128xbf16> to vector<8x128xbf16>
    %102 = vector.shape_cast %98 : vector<8x128xbf16> to vector<1x8x128xbf16>
    tpu.vector_store %arg6[%99, %c0_24, %c0_25], %102 {strides = array<i32>} : memref<8x8x128xbf16, #tpu.memory_space<vmem>>, vector<1x8x128xbf16>,
    %103 = vector.shape_cast %93 : vector<8x1xi1> to vector<8x1xi1>
    %104 = vector.broadcast %103 : vector<8x1xi1> to vector<8x128xi1>
    %105 = arith.select %104, %90, %56 : vector<8x128xi1>, vector<8x128xf32>
    %c2_i32 = arith.constant 2 : i32
    %106 = arith.index_cast %c2_i32 : i32 to index
    %c0_26 = arith.constant 0 : index
    %c0_27 = arith.constant 0 : index
    %107 = vector.load %arg2[%106, %c0_26, %c0_27] : memref<8x8x384xbf16, #tpu.memory_space<vmem>>, vector<1x8x384xbf16>
    %108 = vector.shape_cast %107 : vector<1x8x384xbf16> to vector<8x384xbf16>
    %109 = arith.extf %108 : vector<8x384xbf16> to vector<8x384xf32>
    %110 = arith.truncf %105 : vector<8x128xf32> to vector<8x128xbf16>
    %cst_28 = arith.constant dense<0.000000e+00> : vector<8x384xf32>
    %111 = tpu.matmul %110, %4, %cst_28 {dimension_numbers = #tpu.dot_dimension_numbers<[1], [0], [0], [1], [0, 0, 1, 1], [], []>} : vector<8x128xbf16>, vector<128x384xbf16>, vector<8x384xf32> -> vector<8x384xf32>
    %112 = vector.extract_strided_slice %109 {offsets = [0, 0], sizes = [8, 128], strides = [1, 1]} : vector<8x384xf32> to vector<8x128xf32>
    %113 = vector.extract_strided_slice %111 {offsets = [0, 0], sizes = [8, 128], strides = [1, 1]} : vector<8x384xf32> to vector<8x128xf32>
    %114 = arith.addf %112, %113 : vector<8x128xf32>
    %115 = arith.negf %114 : vector<8x128xf32>
    %116 = math.exp %115 : vector<8x128xf32>
    %cst_29 = arith.constant 1.000000e+00 : f32
    %117 = vector.broadcast %cst_29 : f32 to vector<8x128xf32>
    %118 = arith.addf %117, %116 : vector<8x128xf32>
    %119 = arith.divf %117, %118 : vector<8x128xf32>
    %120 = vector.extract_strided_slice %109 {offsets = [0, 128], sizes = [8, 128], strides = [1, 1]} : vector<8x384xf32> to vector<8x128xf32>
    %121 = vector.extract_strided_slice %111 {offsets = [0, 128], sizes = [8, 128], strides = [1, 1]} : vector<8x384xf32> to vector<8x128xf32>
    %122 = arith.addf %120, %121 : vector<8x128xf32>
    %123 = arith.negf %122 : vector<8x128xf32>
    %124 = math.exp %123 : vector<8x128xf32>
    %cst_30 = arith.constant 1.000000e+00 : f32
    %125 = vector.broadcast %cst_30 : f32 to vector<8x128xf32>
    %126 = arith.addf %125, %124 : vector<8x128xf32>
    %127 = arith.divf %125, %126 : vector<8x128xf32>
    %128 = vector.extract_strided_slice %109 {offsets = [0, 256], sizes = [8, 128], strides = [1, 1]} : vector<8x384xf32> to vector<8x128xf32>
    %129 = vector.extract_strided_slice %111 {offsets = [0, 256], sizes = [8, 128], strides = [1, 1]} : vector<8x384xf32> to vector<8x128xf32>
    %130 = vector.broadcast %5 : vector<1x128xf32> to vector<8x128xf32>
    %131 = arith.addf %129, %130 : vector<8x128xf32>
    %132 = arith.mulf %119, %131 : vector<8x128xf32>
    %133 = arith.addf %128, %132 : vector<8x128xf32>
    %134 = math.tanh %133 : vector<8x128xf32>
    %cst_31 = arith.constant 1.000000e+00 : f32
    %135 = vector.broadcast %cst_31 : f32 to vector<8x128xf32>
    %136 = arith.subf %135, %127 : vector<8x128xf32>
    %137 = arith.mulf %136, %134 : vector<8x128xf32>
    %138 = arith.mulf %127, %105 : vector<8x128xf32>
    %139 = arith.addf %137, %138 : vector<8x128xf32>
    %140 = arith.addi %6, %c2_i32 : i32
    %141 = vector.broadcast %140 : i32 to vector<8x1xi32>
    %142 = arith.cmpi sgt, %3, %141 : vector<8x1xi32>
    %cst_32 = arith.constant 0.000000e+00 : f32
    %143 = vector.shape_cast %142 : vector<8x1xi1> to vector<8x1xi1>
    %144 = vector.broadcast %143 : vector<8x1xi1> to vector<8x128xi1>
    %145 = vector.broadcast %cst_32 : f32 to vector<8x128xf32>
    %146 = arith.select %144, %139, %145 : vector<8x128xi1>, vector<8x128xf32>
    %147 = arith.truncf %146 : vector<8x128xf32> to vector<8x128xbf16>
    %148 = arith.index_cast %c2_i32 : i32 to index
    %c0_33 = arith.constant 0 : index
    %c0_34 = arith.constant 0 : index
    %149 = vector.load %arg6[%148, %c0_33, %c0_34] : memref<8x8x128xbf16, #tpu.memory_space<vmem>>, vector<1x8x128xbf16>
    %150 = vector.shape_cast %149 : vector<1x8x128xbf16> to vector<8x128xbf16>
    %151 = vector.shape_cast %147 : vector<8x128xbf16> to vector<1x8x128xbf16>
    tpu.vector_store %arg6[%148, %c0_33, %c0_34], %151 {strides = array<i32>} : memref<8x8x128xbf16, #tpu.memory_space<vmem>>, vector<1x8x128xbf16>,
    %152 = vector.shape_cast %142 : vector<8x1xi1> to vector<8x1xi1>
    %153 = vector.broadcast %152 : vector<8x1xi1> to vector<8x128xi1>
    %154 = arith.select %153, %139, %105 : vector<8x128xi1>, vector<8x128xf32>
    %c3_i32 = arith.constant 3 : i32
    %155 = arith.index_cast %c3_i32 : i32 to index
    %c0_35 = arith.constant 0 : index
    %c0_36 = arith.constant 0 : index
    %156 = vector.load %arg2[%155, %c0_35, %c0_36] : memref<8x8x384xbf16, #tpu.memory_space<vmem>>, vector<1x8x384xbf16>
    %157 = vector.shape_cast %156 : vector<1x8x384xbf16> to vector<8x384xbf16>
    %158 = arith.extf %157 : vector<8x384xbf16> to vector<8x384xf32>
    %159 = arith.truncf %154 : vector<8x128xf32> to vector<8x128xbf16>
    %cst_37 = arith.constant dense<0.000000e+00> : vector<8x384xf32>
    %160 = tpu.matmul %159, %4, %cst_37 {dimension_numbers = #tpu.dot_dimension_numbers<[1], [0], [0], [1], [0, 0, 1, 1], [], []>} : vector<8x128xbf16>, vector<128x384xbf16>, vector<8x384xf32> -> vector<8x384xf32>
    %161 = vector.extract_strided_slice %158 {offsets = [0, 0], sizes = [8, 128], strides = [1, 1]} : vector<8x384xf32> to vector<8x128xf32>
    %162 = vector.extract_strided_slice %160 {offsets = [0, 0], sizes = [8, 128], strides = [1, 1]} : vector<8x384xf32> to vector<8x128xf32>
    %163 = arith.addf %161, %162 : vector<8x128xf32>
    %164 = arith.negf %163 : vector<8x128xf32>
    %165 = math.exp %164 : vector<8x128xf32>
    %cst_38 = arith.constant 1.000000e+00 : f32
    %166 = vector.broadcast %cst_38 : f32 to vector<8x128xf32>
    %167 = arith.addf %166, %165 : vector<8x128xf32>
    %168 = arith.divf %166, %167 : vector<8x128xf32>
    %169 = vector.extract_strided_slice %158 {offsets = [0, 128], sizes = [8, 128], strides = [1, 1]} : vector<8x384xf32> to vector<8x128xf32>
    %170 = vector.extract_strided_slice %160 {offsets = [0, 128], sizes = [8, 128], strides = [1, 1]} : vector<8x384xf32> to vector<8x128xf32>
    %171 = arith.addf %169, %170 : vector<8x128xf32>
    %172 = arith.negf %171 : vector<8x128xf32>
    %173 = math.exp %172 : vector<8x128xf32>
    %cst_39 = arith.constant 1.000000e+00 : f32
    %174 = vector.broadcast %cst_39 : f32 to vector<8x128xf32>
    %175 = arith.addf %174, %173 : vector<8x128xf32>
    %176 = arith.divf %174, %175 : vector<8x128xf32>
    %177 = vector.extract_strided_slice %158 {offsets = [0, 256], sizes = [8, 128], strides = [1, 1]} : vector<8x384xf32> to vector<8x128xf32>
    %178 = vector.extract_strided_slice %160 {offsets = [0, 256], sizes = [8, 128], strides = [1, 1]} : vector<8x384xf32> to vector<8x128xf32>
    %179 = vector.broadcast %5 : vector<1x128xf32> to vector<8x128xf32>
    %180 = arith.addf %178, %179 : vector<8x128xf32>
    %181 = arith.mulf %168, %180 : vector<8x128xf32>
    %182 = arith.addf %177, %181 : vector<8x128xf32>
    %183 = math.tanh %182 : vector<8x128xf32>
    %cst_40 = arith.constant 1.000000e+00 : f32
    %184 = vector.broadcast %cst_40 : f32 to vector<8x128xf32>
    %185 = arith.subf %184, %176 : vector<8x128xf32>
    %186 = arith.mulf %185, %183 : vector<8x128xf32>
    %187 = arith.mulf %176, %154 : vector<8x128xf32>
    %188 = arith.addf %186, %187 : vector<8x128xf32>
    %189 = arith.addi %6, %c3_i32 : i32
    %190 = vector.broadcast %189 : i32 to vector<8x1xi32>
    %191 = arith.cmpi sgt, %3, %190 : vector<8x1xi32>
    %cst_41 = arith.constant 0.000000e+00 : f32
    %192 = vector.shape_cast %191 : vector<8x1xi1> to vector<8x1xi1>
    %193 = vector.broadcast %192 : vector<8x1xi1> to vector<8x128xi1>
    %194 = vector.broadcast %cst_41 : f32 to vector<8x128xf32>
    %195 = arith.select %193, %188, %194 : vector<8x128xi1>, vector<8x128xf32>
    %196 = arith.truncf %195 : vector<8x128xf32> to vector<8x128xbf16>
    %197 = arith.index_cast %c3_i32 : i32 to index
    %c0_42 = arith.constant 0 : index
    %c0_43 = arith.constant 0 : index
    %198 = vector.load %arg6[%197, %c0_42, %c0_43] : memref<8x8x128xbf16, #tpu.memory_space<vmem>>, vector<1x8x128xbf16>
    %199 = vector.shape_cast %198 : vector<1x8x128xbf16> to vector<8x128xbf16>
    %200 = vector.shape_cast %196 : vector<8x128xbf16> to vector<1x8x128xbf16>
    tpu.vector_store %arg6[%197, %c0_42, %c0_43], %200 {strides = array<i32>} : memref<8x8x128xbf16, #tpu.memory_space<vmem>>, vector<1x8x128xbf16>,
    %201 = vector.shape_cast %191 : vector<8x1xi1> to vector<8x1xi1>
    %202 = vector.broadcast %201 : vector<8x1xi1> to vector<8x128xi1>
    %203 = arith.select %202, %188, %154 : vector<8x128xi1>, vector<8x128xf32>
    %c4_i32 = arith.constant 4 : i32
    %204 = arith.index_cast %c4_i32 : i32 to index
    %c0_44 = arith.constant 0 : index
    %c0_45 = arith.constant 0 : index
    %205 = vector.load %arg2[%204, %c0_44, %c0_45] : memref<8x8x384xbf16, #tpu.memory_space<vmem>>, vector<1x8x384xbf16>
    %206 = vector.shape_cast %205 : vector<1x8x384xbf16> to vector<8x384xbf16>
    %207 = arith.extf %206 : vector<8x384xbf16> to vector<8x384xf32>
    %208 = arith.truncf %203 : vector<8x128xf32> to vector<8x128xbf16>
    %cst_46 = arith.constant dense<0.000000e+00> : vector<8x384xf32>
    %209 = tpu.matmul %208, %4, %cst_46 {dimension_numbers = #tpu.dot_dimension_numbers<[1], [0], [0], [1], [0, 0, 1, 1], [], []>} : vector<8x128xbf16>, vector<128x384xbf16>, vector<8x384xf32> -> vector<8x384xf32>
    %210 = vector.extract_strided_slice %207 {offsets = [0, 0], sizes = [8, 128], strides = [1, 1]} : vector<8x384xf32> to vector<8x128xf32>
    %211 = vector.extract_strided_slice %209 {offsets = [0, 0], sizes = [8, 128], strides = [1, 1]} : vector<8x384xf32> to vector<8x128xf32>
    %212 = arith.addf %210, %211 : vector<8x128xf32>
    %213 = arith.negf %212 : vector<8x128xf32>
    %214 = math.exp %213 : vector<8x128xf32>
    %cst_47 = arith.constant 1.000000e+00 : f32
    %215 = vector.broadcast %cst_47 : f32 to vector<8x128xf32>
    %216 = arith.addf %215, %214 : vector<8x128xf32>
    %217 = arith.divf %215, %216 : vector<8x128xf32>
    %218 = vector.extract_strided_slice %207 {offsets = [0, 128], sizes = [8, 128], strides = [1, 1]} : vector<8x384xf32> to vector<8x128xf32>
    %219 = vector.extract_strided_slice %209 {offsets = [0, 128], sizes = [8, 128], strides = [1, 1]} : vector<8x384xf32> to vector<8x128xf32>
    %220 = arith.addf %218, %219 : vector<8x128xf32>
    %221 = arith.negf %220 : vector<8x128xf32>
    %222 = math.exp %221 : vector<8x128xf32>
    %cst_48 = arith.constant 1.000000e+00 : f32
    %223 = vector.broadcast %cst_48 : f32 to vector<8x128xf32>
    %224 = arith.addf %223, %222 : vector<8x128xf32>
    %225 = arith.divf %223, %224 : vector<8x128xf32>
    %226 = vector.extract_strided_slice %207 {offsets = [0, 256], sizes = [8, 128], strides = [1, 1]} : vector<8x384xf32> to vector<8x128xf32>
    %227 = vector.extract_strided_slice %209 {offsets = [0, 256], sizes = [8, 128], strides = [1, 1]} : vector<8x384xf32> to vector<8x128xf32>
    %228 = vector.broadcast %5 : vector<1x128xf32> to vector<8x128xf32>
    %229 = arith.addf %227, %228 : vector<8x128xf32>
    %230 = arith.mulf %217, %229 : vector<8x128xf32>
    %231 = arith.addf %226, %230 : vector<8x128xf32>
    %232 = math.tanh %231 : vector<8x128xf32>
    %cst_49 = arith.constant 1.000000e+00 : f32
    %233 = vector.broadcast %cst_49 : f32 to vector<8x128xf32>
    %234 = arith.subf %233, %225 : vector<8x128xf32>
    %235 = arith.mulf %234, %232 : vector<8x128xf32>
    %236 = arith.mulf %225, %203 : vector<8x128xf32>
    %237 = arith.addf %235, %236 : vector<8x128xf32>
    %238 = arith.addi %6, %c4_i32 : i32
    %239 = vector.broadcast %238 : i32 to vector<8x1xi32>
    %240 = arith.cmpi sgt, %3, %239 : vector<8x1xi32>
    %cst_50 = arith.constant 0.000000e+00 : f32
    %241 = vector.shape_cast %240 : vector<8x1xi1> to vector<8x1xi1>
    %242 = vector.broadcast %241 : vector<8x1xi1> to vector<8x128xi1>
    %243 = vector.broadcast %cst_50 : f32 to vector<8x128xf32>
    %244 = arith.select %242, %237, %243 : vector<8x128xi1>, vector<8x128xf32>
    %245 = arith.truncf %244 : vector<8x128xf32> to vector<8x128xbf16>
    %246 = arith.index_cast %c4_i32 : i32 to index
    %c0_51 = arith.constant 0 : index
    %c0_52 = arith.constant 0 : index
    %247 = vector.load %arg6[%246, %c0_51, %c0_52] : memref<8x8x128xbf16, #tpu.memory_space<vmem>>, vector<1x8x128xbf16>
    %248 = vector.shape_cast %247 : vector<1x8x128xbf16> to vector<8x128xbf16>
    %249 = vector.shape_cast %245 : vector<8x128xbf16> to vector<1x8x128xbf16>
    tpu.vector_store %arg6[%246, %c0_51, %c0_52], %249 {strides = array<i32>} : memref<8x8x128xbf16, #tpu.memory_space<vmem>>, vector<1x8x128xbf16>,
    %250 = vector.shape_cast %240 : vector<8x1xi1> to vector<8x1xi1>
    %251 = vector.broadcast %250 : vector<8x1xi1> to vector<8x128xi1>
    %252 = arith.select %251, %237, %203 : vector<8x128xi1>, vector<8x128xf32>
    %c5_i32 = arith.constant 5 : i32
    %253 = arith.index_cast %c5_i32 : i32 to index
    %c0_53 = arith.constant 0 : index
    %c0_54 = arith.constant 0 : index
    %254 = vector.load %arg2[%253, %c0_53, %c0_54] : memref<8x8x384xbf16, #tpu.memory_space<vmem>>, vector<1x8x384xbf16>
    %255 = vector.shape_cast %254 : vector<1x8x384xbf16> to vector<8x384xbf16>
    %256 = arith.extf %255 : vector<8x384xbf16> to vector<8x384xf32>
    %257 = arith.truncf %252 : vector<8x128xf32> to vector<8x128xbf16>
    %cst_55 = arith.constant dense<0.000000e+00> : vector<8x384xf32>
    %258 = tpu.matmul %257, %4, %cst_55 {dimension_numbers = #tpu.dot_dimension_numbers<[1], [0], [0], [1], [0, 0, 1, 1], [], []>} : vector<8x128xbf16>, vector<128x384xbf16>, vector<8x384xf32> -> vector<8x384xf32>
    %259 = vector.extract_strided_slice %256 {offsets = [0, 0], sizes = [8, 128], strides = [1, 1]} : vector<8x384xf32> to vector<8x128xf32>
    %260 = vector.extract_strided_slice %258 {offsets = [0, 0], sizes = [8, 128], strides = [1, 1]} : vector<8x384xf32> to vector<8x128xf32>
    %261 = arith.addf %259, %260 : vector<8x128xf32>
    %262 = arith.negf %261 : vector<8x128xf32>
    %263 = math.exp %262 : vector<8x128xf32>
    %cst_56 = arith.constant 1.000000e+00 : f32
    %264 = vector.broadcast %cst_56 : f32 to vector<8x128xf32>
    %265 = arith.addf %264, %263 : vector<8x128xf32>
    %266 = arith.divf %264, %265 : vector<8x128xf32>
    %267 = vector.extract_strided_slice %256 {offsets = [0, 128], sizes = [8, 128], strides = [1, 1]} : vector<8x384xf32> to vector<8x128xf32>
    %268 = vector.extract_strided_slice %258 {offsets = [0, 128], sizes = [8, 128], strides = [1, 1]} : vector<8x384xf32> to vector<8x128xf32>
    %269 = arith.addf %267, %268 : vector<8x128xf32>
    %270 = arith.negf %269 : vector<8x128xf32>
    %271 = math.exp %270 : vector<8x128xf32>
    %cst_57 = arith.constant 1.000000e+00 : f32
    %272 = vector.broadcast %cst_57 : f32 to vector<8x128xf32>
    %273 = arith.addf %272, %271 : vector<8x128xf32>
    %274 = arith.divf %272, %273 : vector<8x128xf32>
    %275 = vector.extract_strided_slice %256 {offsets = [0, 256], sizes = [8, 128], strides = [1, 1]} : vector<8x384xf32> to vector<8x128xf32>
    %276 = vector.extract_strided_slice %258 {offsets = [0, 256], sizes = [8, 128], strides = [1, 1]} : vector<8x384xf32> to vector<8x128xf32>
    %277 = vector.broadcast %5 : vector<1x128xf32> to vector<8x128xf32>
    %278 = arith.addf %276, %277 : vector<8x128xf32>
    %279 = arith.mulf %266, %278 : vector<8x128xf32>
    %280 = arith.addf %275, %279 : vector<8x128xf32>
    %281 = math.tanh %280 : vector<8x128xf32>
    %cst_58 = arith.constant 1.000000e+00 : f32
    %282 = vector.broadcast %cst_58 : f32 to vector<8x128xf32>
    %283 = arith.subf %282, %274 : vector<8x128xf32>
    %284 = arith.mulf %283, %281 : vector<8x128xf32>
    %285 = arith.mulf %274, %252 : vector<8x128xf32>
    %286 = arith.addf %284, %285 : vector<8x128xf32>
    %287 = arith.addi %6, %c5_i32 : i32
    %288 = vector.broadcast %287 : i32 to vector<8x1xi32>
    %289 = arith.cmpi sgt, %3, %288 : vector<8x1xi32>
    %cst_59 = arith.constant 0.000000e+00 : f32
    %290 = vector.shape_cast %289 : vector<8x1xi1> to vector<8x1xi1>
    %291 = vector.broadcast %290 : vector<8x1xi1> to vector<8x128xi1>
    %292 = vector.broadcast %cst_59 : f32 to vector<8x128xf32>
    %293 = arith.select %291, %286, %292 : vector<8x128xi1>, vector<8x128xf32>
    %294 = arith.truncf %293 : vector<8x128xf32> to vector<8x128xbf16>
    %295 = arith.index_cast %c5_i32 : i32 to index
    %c0_60 = arith.constant 0 : index
    %c0_61 = arith.constant 0 : index
    %296 = vector.load %arg6[%295, %c0_60, %c0_61] : memref<8x8x128xbf16, #tpu.memory_space<vmem>>, vector<1x8x128xbf16>
    %297 = vector.shape_cast %296 : vector<1x8x128xbf16> to vector<8x128xbf16>
    %298 = vector.shape_cast %294 : vector<8x128xbf16> to vector<1x8x128xbf16>
    tpu.vector_store %arg6[%295, %c0_60, %c0_61], %298 {strides = array<i32>} : memref<8x8x128xbf16, #tpu.memory_space<vmem>>, vector<1x8x128xbf16>,
    %299 = vector.shape_cast %289 : vector<8x1xi1> to vector<8x1xi1>
    %300 = vector.broadcast %299 : vector<8x1xi1> to vector<8x128xi1>
    %301 = arith.select %300, %286, %252 : vector<8x128xi1>, vector<8x128xf32>
    %c6_i32 = arith.constant 6 : i32
    %302 = arith.index_cast %c6_i32 : i32 to index
    %c0_62 = arith.constant 0 : index
    %c0_63 = arith.constant 0 : index
    %303 = vector.load %arg2[%302, %c0_62, %c0_63] : memref<8x8x384xbf16, #tpu.memory_space<vmem>>, vector<1x8x384xbf16>
    %304 = vector.shape_cast %303 : vector<1x8x384xbf16> to vector<8x384xbf16>
    %305 = arith.extf %304 : vector<8x384xbf16> to vector<8x384xf32>
    %306 = arith.truncf %301 : vector<8x128xf32> to vector<8x128xbf16>
    %cst_64 = arith.constant dense<0.000000e+00> : vector<8x384xf32>
    %307 = tpu.matmul %306, %4, %cst_64 {dimension_numbers = #tpu.dot_dimension_numbers<[1], [0], [0], [1], [0, 0, 1, 1], [], []>} : vector<8x128xbf16>, vector<128x384xbf16>, vector<8x384xf32> -> vector<8x384xf32>
    %308 = vector.extract_strided_slice %305 {offsets = [0, 0], sizes = [8, 128], strides = [1, 1]} : vector<8x384xf32> to vector<8x128xf32>
    %309 = vector.extract_strided_slice %307 {offsets = [0, 0], sizes = [8, 128], strides = [1, 1]} : vector<8x384xf32> to vector<8x128xf32>
    %310 = arith.addf %308, %309 : vector<8x128xf32>
    %311 = arith.negf %310 : vector<8x128xf32>
    %312 = math.exp %311 : vector<8x128xf32>
    %cst_65 = arith.constant 1.000000e+00 : f32
    %313 = vector.broadcast %cst_65 : f32 to vector<8x128xf32>
    %314 = arith.addf %313, %312 : vector<8x128xf32>
    %315 = arith.divf %313, %314 : vector<8x128xf32>
    %316 = vector.extract_strided_slice %305 {offsets = [0, 128], sizes = [8, 128], strides = [1, 1]} : vector<8x384xf32> to vector<8x128xf32>
    %317 = vector.extract_strided_slice %307 {offsets = [0, 128], sizes = [8, 128], strides = [1, 1]} : vector<8x384xf32> to vector<8x128xf32>
    %318 = arith.addf %316, %317 : vector<8x128xf32>
    %319 = arith.negf %318 : vector<8x128xf32>
    %320 = math.exp %319 : vector<8x128xf32>
    %cst_66 = arith.constant 1.000000e+00 : f32
    %321 = vector.broadcast %cst_66 : f32 to vector<8x128xf32>
    %322 = arith.addf %321, %320 : vector<8x128xf32>
    %323 = arith.divf %321, %322 : vector<8x128xf32>
    %324 = vector.extract_strided_slice %305 {offsets = [0, 256], sizes = [8, 128], strides = [1, 1]} : vector<8x384xf32> to vector<8x128xf32>
    %325 = vector.extract_strided_slice %307 {offsets = [0, 256], sizes = [8, 128], strides = [1, 1]} : vector<8x384xf32> to vector<8x128xf32>
    %326 = vector.broadcast %5 : vector<1x128xf32> to vector<8x128xf32>
    %327 = arith.addf %325, %326 : vector<8x128xf32>
    %328 = arith.mulf %315, %327 : vector<8x128xf32>
    %329 = arith.addf %324, %328 : vector<8x128xf32>
    %330 = math.tanh %329 : vector<8x128xf32>
    %cst_67 = arith.constant 1.000000e+00 : f32
    %331 = vector.broadcast %cst_67 : f32 to vector<8x128xf32>
    %332 = arith.subf %331, %323 : vector<8x128xf32>
    %333 = arith.mulf %332, %330 : vector<8x128xf32>
    %334 = arith.mulf %323, %301 : vector<8x128xf32>
    %335 = arith.addf %333, %334 : vector<8x128xf32>
    %336 = arith.addi %6, %c6_i32 : i32
    %337 = vector.broadcast %336 : i32 to vector<8x1xi32>
    %338 = arith.cmpi sgt, %3, %337 : vector<8x1xi32>
    %cst_68 = arith.constant 0.000000e+00 : f32
    %339 = vector.shape_cast %338 : vector<8x1xi1> to vector<8x1xi1>
    %340 = vector.broadcast %339 : vector<8x1xi1> to vector<8x128xi1>
    %341 = vector.broadcast %cst_68 : f32 to vector<8x128xf32>
    %342 = arith.select %340, %335, %341 : vector<8x128xi1>, vector<8x128xf32>
    %343 = arith.truncf %342 : vector<8x128xf32> to vector<8x128xbf16>
    %344 = arith.index_cast %c6_i32 : i32 to index
    %c0_69 = arith.constant 0 : index
    %c0_70 = arith.constant 0 : index
    %345 = vector.load %arg6[%344, %c0_69, %c0_70] : memref<8x8x128xbf16, #tpu.memory_space<vmem>>, vector<1x8x128xbf16>
    %346 = vector.shape_cast %345 : vector<1x8x128xbf16> to vector<8x128xbf16>
    %347 = vector.shape_cast %343 : vector<8x128xbf16> to vector<1x8x128xbf16>
    tpu.vector_store %arg6[%344, %c0_69, %c0_70], %347 {strides = array<i32>} : memref<8x8x128xbf16, #tpu.memory_space<vmem>>, vector<1x8x128xbf16>,
    %348 = vector.shape_cast %338 : vector<8x1xi1> to vector<8x1xi1>
    %349 = vector.broadcast %348 : vector<8x1xi1> to vector<8x128xi1>
    %350 = arith.select %349, %335, %301 : vector<8x128xi1>, vector<8x128xf32>
    %c7_i32 = arith.constant 7 : i32
    %351 = arith.index_cast %c7_i32 : i32 to index
    %c0_71 = arith.constant 0 : index
    %c0_72 = arith.constant 0 : index
    %352 = vector.load %arg2[%351, %c0_71, %c0_72] : memref<8x8x384xbf16, #tpu.memory_space<vmem>>, vector<1x8x384xbf16>
    %353 = vector.shape_cast %352 : vector<1x8x384xbf16> to vector<8x384xbf16>
    %354 = arith.extf %353 : vector<8x384xbf16> to vector<8x384xf32>
    %355 = arith.truncf %350 : vector<8x128xf32> to vector<8x128xbf16>
    %cst_73 = arith.constant dense<0.000000e+00> : vector<8x384xf32>
    %356 = tpu.matmul %355, %4, %cst_73 {dimension_numbers = #tpu.dot_dimension_numbers<[1], [0], [0], [1], [0, 0, 1, 1], [], []>} : vector<8x128xbf16>, vector<128x384xbf16>, vector<8x384xf32> -> vector<8x384xf32>
    %357 = vector.extract_strided_slice %354 {offsets = [0, 0], sizes = [8, 128], strides = [1, 1]} : vector<8x384xf32> to vector<8x128xf32>
    %358 = vector.extract_strided_slice %356 {offsets = [0, 0], sizes = [8, 128], strides = [1, 1]} : vector<8x384xf32> to vector<8x128xf32>
    %359 = arith.addf %357, %358 : vector<8x128xf32>
    %360 = arith.negf %359 : vector<8x128xf32>
    %361 = math.exp %360 : vector<8x128xf32>
    %cst_74 = arith.constant 1.000000e+00 : f32
    %362 = vector.broadcast %cst_74 : f32 to vector<8x128xf32>
    %363 = arith.addf %362, %361 : vector<8x128xf32>
    %364 = arith.divf %362, %363 : vector<8x128xf32>
    %365 = vector.extract_strided_slice %354 {offsets = [0, 128], sizes = [8, 128], strides = [1, 1]} : vector<8x384xf32> to vector<8x128xf32>
    %366 = vector.extract_strided_slice %356 {offsets = [0, 128], sizes = [8, 128], strides = [1, 1]} : vector<8x384xf32> to vector<8x128xf32>
    %367 = arith.addf %365, %366 : vector<8x128xf32>
    %368 = arith.negf %367 : vector<8x128xf32>
    %369 = math.exp %368 : vector<8x128xf32>
    %cst_75 = arith.constant 1.000000e+00 : f32
    %370 = vector.broadcast %cst_75 : f32 to vector<8x128xf32>
    %371 = arith.addf %370, %369 : vector<8x128xf32>
    %372 = arith.divf %370, %371 : vector<8x128xf32>
    %373 = vector.extract_strided_slice %354 {offsets = [0, 256], sizes = [8, 128], strides = [1, 1]} : vector<8x384xf32> to vector<8x128xf32>
    %374 = vector.extract_strided_slice %356 {offsets = [0, 256], sizes = [8, 128], strides = [1, 1]} : vector<8x384xf32> to vector<8x128xf32>
    %375 = vector.broadcast %5 : vector<1x128xf32> to vector<8x128xf32>
    %376 = arith.addf %374, %375 : vector<8x128xf32>
    %377 = arith.mulf %364, %376 : vector<8x128xf32>
    %378 = arith.addf %373, %377 : vector<8x128xf32>
    %379 = math.tanh %378 : vector<8x128xf32>
    %cst_76 = arith.constant 1.000000e+00 : f32
    %380 = vector.broadcast %cst_76 : f32 to vector<8x128xf32>
    %381 = arith.subf %380, %372 : vector<8x128xf32>
    %382 = arith.mulf %381, %379 : vector<8x128xf32>
    %383 = arith.mulf %372, %350 : vector<8x128xf32>
    %384 = arith.addf %382, %383 : vector<8x128xf32>
    %385 = arith.addi %6, %c7_i32 : i32
    %386 = vector.broadcast %385 : i32 to vector<8x1xi32>
    %387 = arith.cmpi sgt, %3, %386 : vector<8x1xi32>
    %cst_77 = arith.constant 0.000000e+00 : f32
    %388 = vector.shape_cast %387 : vector<8x1xi1> to vector<8x1xi1>
    %389 = vector.broadcast %388 : vector<8x1xi1> to vector<8x128xi1>
    %390 = vector.broadcast %cst_77 : f32 to vector<8x128xf32>
    %391 = arith.select %389, %384, %390 : vector<8x128xi1>, vector<8x128xf32>
    %392 = arith.truncf %391 : vector<8x128xf32> to vector<8x128xbf16>
    %393 = arith.index_cast %c7_i32 : i32 to index
    %c0_78 = arith.constant 0 : index
    %c0_79 = arith.constant 0 : index
    %394 = vector.load %arg6[%393, %c0_78, %c0_79] : memref<8x8x128xbf16, #tpu.memory_space<vmem>>, vector<1x8x128xbf16>
    %395 = vector.shape_cast %394 : vector<1x8x128xbf16> to vector<8x128xbf16>
    %396 = vector.shape_cast %392 : vector<8x128xbf16> to vector<1x8x128xbf16>
    tpu.vector_store %arg6[%393, %c0_78, %c0_79], %396 {strides = array<i32>} : memref<8x8x128xbf16, #tpu.memory_space<vmem>>, vector<1x8x128xbf16>,
    %397 = vector.shape_cast %387 : vector<8x1xi1> to vector<8x1xi1>
    %398 = vector.broadcast %397 : vector<8x1xi1> to vector<8x128xi1>
    %399 = arith.select %398, %384, %350 : vector<8x128xi1>, vector<8x128xf32>
    %c8_i32_80 = arith.constant 8 : i32
    %c0_81 = arith.constant 0 : index
    %c0_82 = arith.constant 0 : index
    %400 = vector.load %arg8[%c0_81, %c0_82] : memref<8x128xf32, #tpu.memory_space<vmem>>, vector<8x128xf32>
    tpu.vector_store %arg8[%c0_81, %c0_82], %399 {strides = array<i32>} : memref<8x128xf32, #tpu.memory_space<vmem>>, vector<8x128xf32>,
    %c0_i32_83 = arith.constant 0 : i32
    %401 = arith.cmpi eq, %arg1, %c0_i32_83 : i32
    %402 = arith.extui %401 : i1 to i32
    %c0_i32_84 = arith.constant 0 : i32
    %403 = arith.cmpi ne, %402, %c0_i32_84 : i32
    scf.if %403 {
      %c0_85 = arith.constant 0 : index
      %c0_86 = arith.constant 0 : index
      %c0_87 = arith.constant 0 : index
      %404 = vector.load %arg7[%c0_85, %c0_86, %c0_87] : memref<1x8x128xf32, #tpu.memory_space<vmem>>, vector<1x8x128xf32>
      %405 = vector.shape_cast %404 : vector<1x8x128xf32> to vector<8x128xf32>
      %406 = vector.shape_cast %399 : vector<8x128xf32> to vector<1x8x128xf32>
      tpu.vector_store %arg7[%c0_85, %c0_86, %c0_87], %406 {strides = array<i32>} : memref<1x8x128xf32, #tpu.memory_space<vmem>>, vector<1x8x128xf32>,
    } else {
    }
    return
  }
  func.func @transform_0(%arg0: i32, %arg1: i32) -> (i32, i32, i32) {
    %c0_i32 = arith.constant 0 : i32
    %c0_i32_0 = arith.constant 0 : i32
    return %arg1, %arg0, %c0_i32 : i32, i32, i32
  }
  func.func @transform_1(%arg0: i32, %arg1: i32) -> (i32, i32) {
    %c0_i32 = arith.constant 0 : i32
    %c0_i32_0 = arith.constant 0 : i32
    return %arg0, %c0_i32 : i32, i32
  }
  func.func @transform_2(%arg0: i32, %arg1: i32) -> (i32, i32) {
    %c0_i32 = arith.constant 0 : i32
    %c0_i32_0 = arith.constant 0 : i32
    %c0_i32_1 = arith.constant 0 : i32
    return %c0_i32, %c0_i32_0 : i32, i32
  }
  func.func @transform_3(%arg0: i32, %arg1: i32) -> (i32, i32) {
    %c0_i32 = arith.constant 0 : i32
    %c0_i32_0 = arith.constant 0 : i32
    %c0_i32_1 = arith.constant 0 : i32
    return %c0_i32, %c0_i32_0 : i32, i32
  }
  func.func @transform_4(%arg0: i32, %arg1: i32) -> (i32, i32, i32) {
    %c0_i32 = arith.constant 0 : i32
    %c0_i32_0 = arith.constant 0 : i32
    return %arg1, %arg0, %c0_i32 : i32, i32, i32
  }
  func.func @transform_5(%arg0: i32, %arg1: i32) -> (i32, i32, i32) {
    %c0_i32 = arith.constant 0 : i32
    %c0_i32_0 = arith.constant 0 : i32
    %c0_i32_1 = arith.constant 0 : i32
    return %c0_i32, %arg0, %c0_i32_0 : i32, i32, i32
  }
}

</mosaic_0001>

<bundles_post_ra>
// kernel: tpu_custom_call.1
= control target key start
LH: loop header
LB: loop body
LE: loop exit
PB: predicated region body
PF: predicated region fallthrough
CT: control target
= control target key end

     0   :  { %11 = vsyncpa [#allocation4], 0  ;;  %s2205_s0 = inlined_call_operand.hbm [shape: bf16[8,8,384], index: 0, kind: input, shape index: {}]   ;;  %s2206_s1 = inlined_call_operand.vmem [shape: s32[8,1], index: 1, kind: input, shape index: {}]   ;;  %s2207_s2 = inlined_call_operand.hbm [shape: bf16[128,384], index: 2, kind: input, shape index: {}]   ;;  %s2208_s3 = inlined_call_operand.vmem [shape: f32[1,128], index: 3, kind: input, shape index: {}]   ;;  %s2209_s4 = inlined_call_operand.hbm [shape: bf16[8,8,128], index: 4, kind: output, shape index: {0}]   ;;  %s2210_s5 = inlined_call_operand.hbm [shape: f32[1,8,128], index: 5, kind: output, shape index: {1}]  }
   0x1   :  { %12 = vsyncpa [#allocation7], 0 }
   0x2   :  { %13 = vsyncpa [#allocation5], 0 }
   0x3   :  { %14 = vsyncpa [#allocation10], 0  ;;  %s1761_s18 = smov [#allocation3]  }
   0x4   :  { %s20_s19 = sshll.u32 %s1761_s18, 4  ;;  %s21_s19 = int_to_ptr.vmem [resolvable:$true] %s20_s19 }
   0x5   :  { %s1681_s20 = scalar_lea.vmem %s21_s19, 1536  ;;  %p1686_p1 = scmp.lt.s32.totalorder %s21_s19, %s21_s19 }
   0x6   :  { %p1682_p0 = scmp.ne.s32.totalorder %s21_s19, %s1681_s20  ;;  %p1687_p2 = scmp.lt.s32.totalorder %s1681_s20, %s1681_s20 }
   0x8   :  { %p1688_p3 = por %p1687_p2, %p1686_p1 }
   0xa   :  { %p1689_p4 = pnand %p1688_p3, %p1682_p0 }
   0xc   :  { %1692 = shalt.err (!%p1689_p4)
}
   0xd   :  { %s1762_s21 = smov 192   ;;  %s1763_s22 = smov 12  }
   0xe   :  { %26 = dma.hbm_to_vmem [thread:$0]  %s2205_s0, 1536, %s21_s19, [#allocation4], %s1762_s21, %s1762_s21, %s1763_s22  }
   0xf   :  { %s1764_s25 = smov [#allocation6]  }
  0x10   :  { %s34_s26 = sshll.u32 %s1764_s25, 4  ;;  %s35_s26 = int_to_ptr.vmem [resolvable:$true] %s34_s26 }
  0x11   :  { %s1701_s27 = scalar_lea.vmem %s35_s26, 3072  ;;  %p1706_p6 = scmp.lt.s32.totalorder %s35_s26, %s35_s26 }
  0x12   :  { %p1702_p5 = scmp.ne.s32.totalorder %s35_s26, %s1701_s27  ;;  %p1707_p7 = scmp.lt.s32.totalorder %s1701_s27, %s1701_s27 }
  0x14   :  { %p1708_p8 = por %p1707_p7, %p1706_p6 }
  0x16   :  { %p1709_p9 = pnand %p1708_p8, %p1702_p5 }
  0x18   :  { %1712 = shalt.err (!%p1709_p9)
}
  0x19   :  { %40 = dma.hbm_to_vmem [thread:$0]  %s2207_s2, 3072, %s35_s26, [#allocation7], %s1762_s21, %s1762_s21, %s1763_s22  }
  0x1a   :  { %1753 = dma.done.wait [#allocation4], 1536  }
  0x1b   :  { %1754 = vsyncadd [#allocation4], 4294965760 }
  0x1c   :  { %1755 = dma.done.wait [#allocation7], 3072  }
  0x1d   :  { %1756 = vsyncadd [#allocation7], 4294964224  ;;  %v1765_v0 = vmov 0.0   ;;  %v1766_v1 = vmov 0   ;;  %vm1767_vm0 = vmmov 0   ;;  %v1859_v16 = vld [vmem:[%s2206_s1] sm:$0xff] }
  0x1e   :  { %1362 = vmatprep.subr.bf16.mxu1 %v1765_v0  ;;  %257 = vmatprep.mubr.bf16.mxu0 %v1766_v1  ;;  %v1815_v2 = vld [vmem:[#allocation6 + $0xac] ss:$12 sps:$4 sm:$0xff]   ;;  %v1817_v3 = vld [vmem:[#allocation6 + $0xa8] ss:$12 sps:$4 sm:$0xff]   ;;  %v1823_v5 = vld [vmem:[#allocation6 + $0x90] ss:$12 sps:$4 sm:$0xff]  }
  0x1f   :  { %1378 = vmatprep.mubr.msk.bf16.mxu1 %vm1767_vm0, %v1765_v0  ;;  %1534 = vset.pattern.permute.xlu0 %v1766_v1  ;;  %v1820_v4 = vld [vmem:[#allocation6 + $0x94] ss:$12 sps:$4 sm:$0xff]   ;;  %v1826_v6 = vld [vmem:[#allocation6 + $0x7c] ss:$12 sps:$4 sm:$0xff]   ;;  %v1829_v7 = vld [vmem:[#allocation6 + $0x78] ss:$12 sps:$4 sm:$0xff]  }
  0x20   :  { %1535 = vset.pattern.permute.xlu1 %v1766_v1  ;;  %225 = vmatprep.subr.bf16.mxu0 %v1815_v2  ;;  %v1832_v8 = vld [vmem:[#allocation6 + $0x64] ss:$12 sps:$4 sm:$0xff]   ;;  %v1837_v10 = vld [vmem:[#allocation6 + $0x60] ss:$12 sps:$4 sm:$0xff]   ;;  %v1846_v13 = vld [vmem:[#allocation6 + $0x48] ss:$12 sps:$4 sm:$0xff]  }
  0x21   :  { %226 = vmatpush1.bf16.msra.mxu0 %v1817_v3  ;;  %v1834_v9 = vld [vmem:[#allocation6 + $0xb0] ss:$12 sps:$4 sm:$0xff]   ;;  %v1839_v11 = vld [vmem:[#allocation6 + $0x4c] ss:$12 sps:$4 sm:$0xff]   ;;  %v1849_v14 = vld [vmem:[#allocation6 + $0x34] ss:$12 sps:$4 sm:$0xff]  }
  0x22   :  { %227 = vmatprep.subr.bf16.mxu0 %v1820_v4  ;;  %1363 = vmatpush3.bf16.msra.mxu1 %v1834_v9  ;;  %v1843_v12 = vld [vmem:[#allocation6 + $0x98] ss:$12 sps:$4 sm:$0xff]   ;;  %v1853_v15 = vld [vmem:[#allocation6 + $0x80] ss:$12 sps:$4 sm:$0xff]   ;;  %v1862_v17 = vld [vmem:[#allocation6 + $0x30] ss:$12 sps:$4 sm:$0xff]  }
  0x23   :  { %1364 = vmatprep.subr.bf16.mxu1 %v1765_v0  ;;  %vm335_vm1 = vcmp.gt.s32.totalorder %v1859_v16, 0  ;;  %vm457_vm2 = vcmp.gt.s32.totalorder %v1859_v16, 1  ;;  %v1867_v18 = vld [vmem:[#allocation6 + $0x1c] ss:$12 sps:$4 sm:$0xff]   ;;  %v1876_v22 = vld [vmem:[#allocation6 + $0x18] ss:$12 sps:$4 sm:$0xff]  }
  0x24   :  { %v1870_v19 = vld [vmem:[#allocation6 + $0x68] ss:$12 sps:$4 sm:$0xff]   ;;  %v336_v20 = vsel %vm335_vm1, 1, %v1766_v1  ;;  %v458_v21 = vsel %vm457_vm2, 1, %v1766_v1  ;;  %vm826_vm3 = vcmp.gt.s32.totalorder %v1859_v16, 4  ;;  %vm1072_vm4 = vcmp.gt.s32.totalorder %v1859_v16, 6 }
  0x25   :  { %228 = vmatpush1.bf16.msra.mxu0 %v1823_v5  ;;  %338 = vperm.xlu0 %1534, %v336_v20   ;;  %v1880_v23 = vld [vmem:[#allocation6 + $0x4] ss:$12 sps:$4 sm:$0xff]   ;;  %v827_v25 = vsel %vm826_vm3, 1, %v1766_v1  ;;  %v1888_v26 = vld [vmem:[#allocation6] ss:$12 sps:$4 sm:$0xff]   ;;  %v1073_v28 = vsel %vm1072_vm4, 1, %v1766_v1 }
  0x26   :  { %229 = vmatprep.subr.bf16.mxu0 %v1826_v6  ;;  %1365 = vmatpush3.bf16.msra.mxu1 %v1843_v12  ;;  %v1883_v24 = vld [vmem:[#allocation6 + $0x50] ss:$12 sps:$4 sm:$0xff]   ;;  %v1893_v27 = vld [vmem:[#allocation6 + $0x38] ss:$12 sps:$4 sm:$0xff]   ;;  %v1899_v29 = vld [vmem:[#allocation6 + $0x20] ss:$12 sps:$4 sm:$0xff]  }
  0x27   :  { %1366 = vmatprep.subr.bf16.mxu1 %v1765_v0  ;;  %v1768_v30 = vmov 0.0|0.0   ;;  %v1906_v31 = vld [vmem:[#allocation6 + $0x8] ss:$12 sps:$4 sm:$0xff]   ;;  %v91_v32 = vld [vmem:[#allocation3] sm:$0xff]  ;;  %vm580_vm7 = vcmp.gt.s32.totalorder %v1859_v16, 2  ;;  %vm703_vm8 = vcmp.gt.s32.totalorder %v1859_v16, 3 }
  0x28   :  { %v93_v33 = vunpack.c.l.bf16 %v91_v32  ;;  %v94_v38 = vunpack.c.h.bf16 %v91_v32  ;;  %v1947_v50 = vld [vmem:[%s2208_s3] ss:$0 sm:$0xff]  ;;  %v1949_v51 = vld [vmem:[#allocation3 + $0x8] ss:$12 sps:$4 sm:$0xff]   ;;  %v704_v32 = vsel %vm703_vm8, 1, %v1766_v1  ;;  %vm949_vm9 = vcmp.gt.s32.totalorder %v1859_v16, 5 }
  0x29   :  { %230 = vmatpush1.bf16.msra.mxu0 %v1829_v7  ;;  %460 = vperm.xlu0 %1534, %v458_v21   ;;  %v95_v54 = vunpack.c.l.bf16 %v1949_v51  ;;  %vm1195_vm10 = vcmp.gt.s32.totalorder %v1859_v16, 7  ;;  %s1769_s8 = smov [#allocation9]   ;;  %s1770_s10 = smov [#allocation8]  }
  0x2a   :  { %231 = vmatprep.subr.bf16.mxu0 %v1832_v8  ;;  %1367 = vmatpush3.bf16.msra.mxu1 %v1853_v15  ;;  %s1229_s9 = sshll.u32 %s1769_s8, 4  ;;  %s1216_s11 = sshll.u32 %s1770_s10, 4  ;;  %s1230_s9 = int_to_ptr.vmem [resolvable:$true] %s1229_s9  ;;  %s1217_s11 = int_to_ptr.vmem [resolvable:$true] %s1216_s11 }
  0x2b   :  { %1368 = vmatprep.subr.bf16.mxu1 %v1765_v0  ;;  %p1718_p11 = scmp.lt.s32.totalorder %s1230_s9, %s1230_s9 }
  0x2d   :  { %232 = vmatpush1.bf16.msra.mxu0 %v1837_v10  ;;  %829 = vperm.xlu0 %1534, %v827_v25  }
  0x2e   :  { %233 = vmatprep.subr.bf16.mxu0 %v1839_v11  ;;  %1369 = vmatpush3.bf16.msra.mxu1 %v1870_v19 }
  0x2f   :  { %1370 = vmatprep.subr.bf16.mxu1 %v1765_v0 }
  0x31   :  { %234 = vmatpush1.bf16.msra.mxu0 %v1846_v13  ;;  %1075 = vperm.xlu0 %1534, %v1073_v28  }
  0x32   :  { %235 = vmatprep.subr.bf16.mxu0 %v1849_v14  ;;  %1371 = vmatpush3.bf16.msra.mxu1 %v1883_v24 }
  0x33   :  { %1372 = vmatprep.subr.bf16.mxu1 %v1765_v0 }
  0x35   :  { %236 = vmatpush1.bf16.msra.mxu0 %v1862_v17 }
  0x36   :  { %237 = vmatprep.subr.bf16.mxu0 %v1867_v18  ;;  %1373 = vmatpush3.bf16.msra.mxu1 %v1893_v27 }
  0x37   :  { %1374 = vmatprep.subr.bf16.mxu1 %v1765_v0 }
  0x39   :  { %238 = vmatpush1.bf16.msra.mxu0 %v1876_v22 }
  0x3a   :  { %239 = vmatprep.subr.bf16.mxu0 %v1880_v23  ;;  %1375 = vmatpush3.bf16.msra.mxu1 %v1899_v29 }
  0x3b   :  { %1376 = vmatprep.subr.bf16.mxu1 %v1765_v0 }
  0x3d   :  { %240 = vmatpush1.bf16.msra.mxu0 %v1888_v26 }
  0x3e   :  { %352 = vmatprep.subr.bf16.mxu0 %v1815_v2  ;;  %1377 = vmatpush3.bf16.msra.mxu1 %v1906_v31 }
  0x3f   :  { %1382 = vmatprep.subr.bf16.mxu1 %v1765_v0 }
  0x40   :  { %258 = vmatmul.mubr.bf16.vlgmr.msra.gmra.mxu0 %v1768_v30 }
  0x41   :  { %353 = vmatpush1.bf16.msra.mxu0 %v1817_v3  ;;  %384 = vmatprep.mubr.bf16.mxu0 %v1766_v1 }
  0x42   :  { %354 = vmatprep.subr.bf16.mxu0 %v1820_v4  ;;  %1379 = vmatmul.mubr.bf16.vlgmr.msra.gmra.mxu1 %v1768_v30  ;;  %v581_v30 = vsel %vm580_vm7, 1, %v1766_v1 }
  0x43   :  { %1383 = vmatpush3.bf16.msra.mxu1 %v1834_v9  ;;  %1398 = vmatprep.mubr.msk.bf16.mxu1 %vm1767_vm0, %v1765_v0 }
  0x44   :  { %1384 = vmatprep.subr.bf16.mxu1 %v1765_v0  ;;  %583 = vperm.xlu1 %1535, %v581_v30  }
  0x45   :  { %355 = vmatpush1.bf16.msra.mxu0 %v1823_v5 }
  0x46   :  { %356 = vmatprep.subr.bf16.mxu0 %v1826_v6 }
  0x47   :  { %1385 = vmatpush3.bf16.msra.mxu1 %v1843_v12 }
  0x48   :  { %1386 = vmatprep.subr.bf16.mxu1 %v1765_v0  ;;  %706 = vperm.xlu1 %1535, %v704_v32  }
  0x49   :  { %357 = vmatpush1.bf16.msra.mxu0 %v1829_v7 }
  0x4a   :  { %358 = vmatprep.subr.bf16.mxu0 %v1832_v8 }
  0x4b   :  { %1387 = vmatpush3.bf16.msra.mxu1 %v1853_v15 }
  0x4c   :  { %1388 = vmatprep.subr.bf16.mxu1 %v1765_v0 }
  0x4d   :  { %359 = vmatpush1.bf16.msra.mxu0 %v1837_v10 }
  0x4e   :  { %360 = vmatprep.subr.bf16.mxu0 %v1839_v11 }
  0x4f   :  { %1389 = vmatpush3.bf16.msra.mxu1 %v1870_v19 }
  0x50   :  { %1390 = vmatprep.subr.bf16.mxu1 %v1765_v0 }
  0x51   :  { %361 = vmatpush1.bf16.msra.mxu0 %v1846_v13 }
  0x52   :  { %362 = vmatprep.subr.bf16.mxu0 %v1849_v14 }
  0x53   :  { %1391 = vmatpush3.bf16.msra.mxu1 %v1883_v24 }
  0x54   :  { %1392 = vmatprep.subr.bf16.mxu1 %v1765_v0 }
  0x55   :  { %363 = vmatpush1.bf16.msra.mxu0 %v1862_v17 }
  0x56   :  { %364 = vmatprep.subr.bf16.mxu0 %v1867_v18 }
  0x57   :  { %1393 = vmatpush3.bf16.msra.mxu1 %v1893_v27 }
  0x58   :  { %1394 = vmatprep.subr.bf16.mxu1 %v1765_v0 }
  0x59   :  { %365 = vmatpush1.bf16.msra.mxu0 %v1876_v22 }
  0x5a   :  { %366 = vmatprep.subr.bf16.mxu0 %v1880_v23 }
  0x5b   :  { %1395 = vmatpush3.bf16.msra.mxu1 %v1899_v29 }
  0x5c   :  { %1396 = vmatprep.subr.bf16.mxu1 %v1765_v0 }
  0x5d   :  { %367 = vmatpush1.bf16.msra.mxu0 %v1888_v26 }
  0x5e   :  { %475 = vmatprep.subr.bf16.mxu0 %v1815_v2 }
  0x5f   :  { %1397 = vmatpush3.bf16.msra.mxu1 %v1906_v31 }
  0x60   :  { %1402 = vmatprep.subr.bf16.mxu1 %v1765_v0 }
  0xa0   :  { %v339_v61 = vpop.permute.xlu0 %338 }
  0xa1   :  { %vm340_vm5 = vcmp.eq.s32.totalorder %v339_v61, 1 }
  0xa2   :  { %vm1284_vm6 = vmpackc.low %vm340_vm5, %vm340_vm5 }
 0x100   :  { %v259_v34 = vpop.f32.mrf.mxu0 }
 0x101   :  { %v306_v35 = vadd.f32 %v259_v34, %v93_v33  ;;  %v950_v33 = vsel %vm949_vm9, 1, %v1766_v1  ;;  %v1196_v34 = vsel %vm1195_vm10, 1, %v1766_v1 }
 0x102   :  { %v261_v36 = vpop.f32.mrf.mxu0  ;;  %v300_v42 = vpop.f32.mrf.mxu1  ;;  %952 = vperm.xlu1 %1535, %v950_v33  }
 0x103   :  { %v1267_v37 = vmul.f32 -1.442695, %v306_v35  ;;  %v313_v41 = vadd.f32 %v261_v36, %v94_v38  ;;  %v326_v53 = vadd.f32 %v1947_v50, %v300_v42  ;;  %v346_v35 = vld [vmem:[#allocation3 + $0xc] sm:$0xff] }
 0x104   :  { %v263_v39 = vpop.f32.mrf.mxu0  ;;  %v1380_v44 = vpop.f32.mrf.mxu1  ;;  %v348_v36 = vunpack.c.l.bf16 %v346_v35 }
 0x105   :  { %1568 = vpow2.f32 %v1267_v37  ;;  %v1268_v43 = vmul.f32 -1.442695, %v313_v41 }
 0x106   :  { %v264_v40 = vpop.f32.mrf.mxu0  ;;  %v303_v45 = vpop.f32.mrf.mxu1  ;;  %1198 = vperm.xlu1 %1535, %v1196_v34  }
 0x107   :  { %1570 = vpow2.f32 %v1268_v43  ;;  %v349_v43 = vunpack.c.h.bf16 %v346_v35 }
 0x108   :  { %v1381_v46 = vpop.f32.mrf.mxu1 }
 0x112   :  { %v1569_v47 = vpop.eup %1568 }
 0x113   :  { %v310_v48 = vadd.f32 1.0, %v1569_v47 }
 0x114   :  { %v1571_v49 = vpop.eup %1570 }
 0x115   :  { %1572 = vrcp.f32 %v310_v48  ;;  %v317_v52 = vadd.f32 1.0, %v1571_v49 }
 0x117   :  { %1574 = vrcp.f32 %v317_v52 }
 0x122   :  { %v1573_v55 = vpop.eup %1572 }
 0x123   :  { %v327_v56 = vmul.f32 %v1573_v55, %v326_v53  ;;  %v350_v55 = vunpack.c.h.bf16 %v1949_v51 }
 0x124   :  { %v1575_v58 = vpop.eup %1574 }
 0x125   :  { %v328_v57 = vadd.f32 %v327_v56, %v95_v54  ;;  %v330_v59 = vsub.f32 1.0, %v1575_v58  ;;  %v332_v63 = vmul.f32 0.0, %v1575_v58 }
 0x127   :  { %1576 = vtanh.f32 %v328_v57 }
 0x134   :  { %v1577_v60 = vpop.eup %1576 }
 0x135   :  { %v331_v62 = vmul.f32 %v1577_v60, %v330_v59 }
 0x137   :  { %v333_v20 = vadd.f32 %v332_v63, %v331_v62 }
 0x139   :  { %v1285_v21 = vpack.c.bf16 %v333_v20, %v333_v20  ;;  %v1953_v25 = vsel %vm340_vm5, %v333_v20, 0.0 }
 0x13a   :  { %v342_v28 = vpack.c.bf16 %v1953_v25, %v1953_v25 }
 0x13b   :  { %1286 = vmatmul.mubr.msk.bf16.vlgmr.msra.gmra.mxu0 %vm1284_vm6, %v1285_v21  ;;  %1399 = vmatmul.mubr.msk.bf16.vlgmr.msra.gmra.mxu1 %vm1284_vm6, %v1285_v21  ;;  %v461_v21 = vpop.permute.xlu0 %460 }
 0x13c   :  { %343 = vst [vmem:[#allocation8] sm:$0xf] %v342_v28  ;;  %476 = vmatpush1.bf16.msra.mxu0 %v1817_v3  ;;  %1403 = vmatpush3.bf16.msra.mxu1 %v1834_v9  ;;  %vm462_vm11 = vcmp.eq.s32.totalorder %v461_v21, 1 }
 0x13d   :  { %477 = vmatprep.subr.bf16.mxu0 %v1820_v4  ;;  %1404 = vmatprep.subr.bf16.mxu1 %v1765_v0 }
 0x13e   :  { %507 = vmatprep.mubr.bf16.mxu0 %v1766_v1  ;;  %1418 = vmatprep.mubr.msk.bf16.mxu1 %vm1767_vm0, %v1765_v0 }
 0x140   :  { %478 = vmatpush1.bf16.msra.mxu0 %v1823_v5  ;;  %1405 = vmatpush3.bf16.msra.mxu1 %v1843_v12 }
 0x141   :  { %479 = vmatprep.subr.bf16.mxu0 %v1826_v6  ;;  %1406 = vmatprep.subr.bf16.mxu1 %v1765_v0 }
 0x144   :  { %480 = vmatpush1.bf16.msra.mxu0 %v1829_v7  ;;  %1407 = vmatpush3.bf16.msra.mxu1 %v1853_v15 }
 0x145   :  { %481 = vmatprep.subr.bf16.mxu0 %v1832_v8  ;;  %1408 = vmatprep.subr.bf16.mxu1 %v1765_v0 }
 0x148   :  { %482 = vmatpush1.bf16.msra.mxu0 %v1837_v10  ;;  %1409 = vmatpush3.bf16.msra.mxu1 %v1870_v19 }
 0x149   :  { %483 = vmatprep.subr.bf16.mxu0 %v1839_v11  ;;  %1410 = vmatprep.subr.bf16.mxu1 %v1765_v0 }
 0x14c   :  { %484 = vmatpush1.bf16.msra.mxu0 %v1846_v13  ;;  %1411 = vmatpush3.bf16.msra.mxu1 %v1883_v24 }
 0x14d   :  { %485 = vmatprep.subr.bf16.mxu0 %v1849_v14  ;;  %1412 = vmatprep.subr.bf16.mxu1 %v1765_v0 }
 0x150   :  { %486 = vmatpush1.bf16.msra.mxu0 %v1862_v17  ;;  %1413 = vmatpush3.bf16.msra.mxu1 %v1893_v27 }
 0x151   :  { %487 = vmatprep.subr.bf16.mxu0 %v1867_v18  ;;  %1414 = vmatprep.subr.bf16.mxu1 %v1765_v0 }
 0x154   :  { %488 = vmatpush1.bf16.msra.mxu0 %v1876_v22  ;;  %1415 = vmatpush3.bf16.msra.mxu1 %v1899_v29 }
 0x155   :  { %489 = vmatprep.subr.bf16.mxu0 %v1880_v23  ;;  %1416 = vmatprep.subr.bf16.mxu1 %v1765_v0 }
 0x158   :  { %490 = vmatpush1.bf16.msra.mxu0 %v1888_v26  ;;  %1417 = vmatpush3.bf16.msra.mxu1 %v1906_v31 }
 0x159   :  { %598 = vmatprep.subr.bf16.mxu0 %v1815_v2  ;;  %1422 = vmatprep.subr.bf16.mxu1 %v1765_v0 }
 0x1fb   :  { %v386_v37 = vpop.f32.mrf.mxu0  ;;  %v427_v38 = vpop.f32.mrf.mxu1 }
 0x1fc   :  { %v433_v39 = vadd.f32 %v386_v37, %v348_v36  ;;  %v447_v56 = vadd.f32 %v1947_v50, %v427_v38 }
 0x1fd   :  { %v388_v40 = vpop.f32.mrf.mxu0  ;;  %v1400_v41 = vpop.f32.mrf.mxu1 }
 0x1fe   :  { %v1270_v42 = vmul.f32 -1.442695, %v433_v39  ;;  %v440_v48 = vadd.f32 %v388_v40, %v349_v43 }
 0x1ff   :  { %v390_v44 = vpop.f32.mrf.mxu0  ;;  %v430_v45 = vpop.f32.mrf.mxu1 }
 0x200   :  { %1578 = vpow2.f32 %v1270_v42  ;;  %v1271_v16 = vmul.f32 -1.442695, %v440_v48 }
 0x201   :  { %v391_v46 = vpop.f32.mrf.mxu0  ;;  %v1401_v47 = vpop.f32.mrf.mxu1 }
 0x202   :  { %1580 = vpow2.f32 %v1271_v16 }
 0x20d   :  { %v1579_v49 = vpop.eup %1578 }
 0x20e   :  { %v437_v52 = vadd.f32 1.0, %v1579_v49 }
 0x20f   :  { %v1581_v53 = vpop.eup %1580 }
 0x210   :  { %1582 = vrcp.f32 %v437_v52  ;;  %v444_v54 = vadd.f32 1.0, %v1581_v53  ;;  %v2043_v52 = vld [vmem:[#allocation3 + $0x20] ss:$12 sps:$4 sm:$0xff]  }
 0x212   :  { %1584 = vrcp.f32 %v444_v54  ;;  %v473_v54 = vunpack.c.l.bf16 %v2043_v52 }
 0x21d   :  { %v1583_v57 = vpop.eup %1582 }
 0x21e   :  { %v448_v58 = vmul.f32 %v1583_v57, %v447_v56 }
 0x21f   :  { %v1585_v60 = vpop.eup %1584 }
 0x220   :  { %v449_v59 = vadd.f32 %v448_v58, %v350_v55  ;;  %v451_v61 = vsub.f32 1.0, %v1585_v60  ;;  %v453_v20 = vmul.f32 %v1585_v60, %v1953_v25 }
 0x222   :  { %1586 = vtanh.f32 %v449_v59 }
 0x22f   :  { %v1587_v62 = vpop.eup %1586 }
 0x230   :  { %v452_v63 = vmul.f32 %v1587_v62, %v451_v61  ;;  %v584_v62 = vpop.permute.xlu1 %583 }
 0x231   :  { %vm585_vm12 = vcmp.eq.s32.totalorder %v584_v62, 1 }
 0x232   :  { %v454_v28 = vadd.f32 %v453_v20, %v452_v63 }
 0x234   :  { %v463_v30 = vsel %vm462_vm11, %v454_v28, 0.0  ;;  %v2004_v32 = vsel %vm462_vm11, %v454_v28, %v1953_v25  ;;  %v469_v25 = vld [vmem:[#allocation3 + $0x18] sm:$0xff] }
 0x235   :  { %v464_v51 = vpack.c.bf16 %v463_v30, %v463_v30  ;;  %v474_v33 = vpack.c.bf16 %v2004_v32, %v2004_v32  ;;  %v471_v34 = vunpack.c.l.bf16 %v469_v25  ;;  %v472_v41 = vunpack.c.h.bf16 %v469_v25 }
 0x237   :  { %466 = vst [vmem:[#allocation8 + $0x4] sm:$0xf] %v464_v51  ;;  %508 = vmatmul.mubr.bf16.vlgmr.msra.gmra.mxu0 %v474_v33  ;;  %1419 = vmatmul.mubr.bf16.vlgmr.msra.gmra.mxu1 %v474_v33 }
 0x238   :  { %599 = vmatpush1.bf16.msra.mxu0 %v1817_v3  ;;  %1423 = vmatpush3.bf16.msra.mxu1 %v1834_v9 }
 0x239   :  { %600 = vmatprep.subr.bf16.mxu0 %v1820_v4  ;;  %1424 = vmatprep.subr.bf16.mxu1 %v1765_v0 }
 0x23a   :  { %630 = vmatprep.mubr.bf16.mxu0 %v1766_v1  ;;  %1438 = vmatprep.mubr.msk.bf16.mxu1 %vm1767_vm0, %v1765_v0 }
 0x23c   :  { %601 = vmatpush1.bf16.msra.mxu0 %v1823_v5  ;;  %1425 = vmatpush3.bf16.msra.mxu1 %v1843_v12 }
 0x23d   :  { %602 = vmatprep.subr.bf16.mxu0 %v1826_v6  ;;  %1426 = vmatprep.subr.bf16.mxu1 %v1765_v0 }
 0x240   :  { %603 = vmatpush1.bf16.msra.mxu0 %v1829_v7  ;;  %1427 = vmatpush3.bf16.msra.mxu1 %v1853_v15 }
 0x241   :  { %604 = vmatprep.subr.bf16.mxu0 %v1832_v8  ;;  %1428 = vmatprep.subr.bf16.mxu1 %v1765_v0 }
 0x244   :  { %605 = vmatpush1.bf16.msra.mxu0 %v1837_v10  ;;  %1429 = vmatpush3.bf16.msra.mxu1 %v1870_v19 }
 0x245   :  { %606 = vmatprep.subr.bf16.mxu0 %v1839_v11  ;;  %1430 = vmatprep.subr.bf16.mxu1 %v1765_v0 }
 0x248   :  { %607 = vmatpush1.bf16.msra.mxu0 %v1846_v13  ;;  %1431 = vmatpush3.bf16.msra.mxu1 %v1883_v24 }
 0x249   :  { %608 = vmatprep.subr.bf16.mxu0 %v1849_v14  ;;  %1432 = vmatprep.subr.bf16.mxu1 %v1765_v0 }
 0x24c   :  { %609 = vmatpush1.bf16.msra.mxu0 %v1862_v17  ;;  %1433 = vmatpush3.bf16.msra.mxu1 %v1893_v27 }
 0x24d   :  { %610 = vmatprep.subr.bf16.mxu0 %v1867_v18  ;;  %1434 = vmatprep.subr.bf16.mxu1 %v1765_v0 }
 0x250   :  { %611 = vmatpush1.bf16.msra.mxu0 %v1876_v22  ;;  %1435 = vmatpush3.bf16.msra.mxu1 %v1899_v29 }
 0x251   :  { %612 = vmatprep.subr.bf16.mxu0 %v1880_v23  ;;  %1436 = vmatprep.subr.bf16.mxu1 %v1765_v0 }
 0x254   :  { %613 = vmatpush1.bf16.msra.mxu0 %v1888_v26  ;;  %1437 = vmatpush3.bf16.msra.mxu1 %v1906_v31 }
 0x255   :  { %721 = vmatprep.subr.bf16.mxu0 %v1815_v2  ;;  %1442 = vmatprep.subr.bf16.mxu1 %v1765_v0 }
 0x2f7   :  { %v509_v35 = vpop.f32.mrf.mxu0  ;;  %v550_v36 = vpop.f32.mrf.mxu1 }
 0x2f8   :  { %v556_v37 = vadd.f32 %v509_v35, %v471_v34  ;;  %v570_v55 = vadd.f32 %v1947_v50, %v550_v36 }
 0x2f9   :  { %v511_v38 = vpop.f32.mrf.mxu0  ;;  %v1420_v39 = vpop.f32.mrf.mxu1 }
 0x2fa   :  { %v1272_v40 = vmul.f32 -1.442695, %v556_v37  ;;  %v563_v46 = vadd.f32 %v511_v38, %v472_v41 }
 0x2fb   :  { %v513_v42 = vpop.f32.mrf.mxu0  ;;  %v553_v43 = vpop.f32.mrf.mxu1 }
 0x2fc   :  { %1588 = vpow2.f32 %v1272_v40  ;;  %v1273_v47 = vmul.f32 -1.442695, %v563_v46 }
 0x2fd   :  { %v514_v44 = vpop.f32.mrf.mxu0  ;;  %v1421_v45 = vpop.f32.mrf.mxu1 }
 0x2fe   :  { %1590 = vpow2.f32 %v1273_v47 }
 0x309   :  { %v1589_v48 = vpop.eup %1588 }
 0x30a   :  { %v560_v16 = vadd.f32 1.0, %v1589_v48 }
 0x30b   :  { %v1591_v49 = vpop.eup %1590 }
 0x30c   :  { %1592 = vrcp.f32 %v560_v16  ;;  %v567_v53 = vadd.f32 1.0, %v1591_v49 }
 0x30e   :  { %1594 = vrcp.f32 %v567_v53  ;;  %v596_v53 = vunpack.c.h.bf16 %v2043_v52 }
 0x319   :  { %v1593_v56 = vpop.eup %1592 }
 0x31a   :  { %v571_v57 = vmul.f32 %v1593_v56, %v570_v55 }
 0x31b   :  { %v1595_v59 = vpop.eup %1594 }
 0x31c   :  { %v572_v58 = vadd.f32 %v571_v57, %v473_v54  ;;  %v574_v60 = vsub.f32 1.0, %v1595_v59  ;;  %v576_v20 = vmul.f32 %v1595_v59, %v2004_v32 }
 0x31e   :  { %1596 = vtanh.f32 %v572_v58 }
 0x32b   :  { %v1597_v61 = vpop.eup %1596 }
 0x32c   :  { %v575_v63 = vmul.f32 %v1597_v61, %v574_v60 }
 0x32e   :  { %v577_v21 = vadd.f32 %v576_v20, %v575_v63  ;;  %v707_v63 = vpop.permute.xlu1 %706 }
 0x32f   :  { %vm708_vm13 = vcmp.eq.s32.totalorder %v707_v63, 1 }
 0x330   :  { %v586_v28 = vsel %vm585_vm12, %v577_v21, 0.0  ;;  %v2049_v30 = vsel %vm585_vm12, %v577_v21, %v2004_v32  ;;  %v592_v32 = vld [vmem:[#allocation3 + $0x24] sm:$0xff] }
 0x331   :  { %v587_v51 = vpack.c.bf16 %v586_v28, %v586_v28  ;;  %v597_v33 = vpack.c.bf16 %v2049_v30, %v2049_v30  ;;  %v594_v25 = vunpack.c.l.bf16 %v592_v32  ;;  %v595_v40 = vunpack.c.h.bf16 %v592_v32 }
 0x333   :  { %589 = vst [vmem:[#allocation8 + $0x8] sm:$0xf] %v587_v51  ;;  %631 = vmatmul.mubr.bf16.vlgmr.msra.gmra.mxu0 %v597_v33  ;;  %1439 = vmatmul.mubr.bf16.vlgmr.msra.gmra.mxu1 %v597_v33 }
 0x334   :  { %722 = vmatpush1.bf16.msra.mxu0 %v1817_v3  ;;  %1443 = vmatpush3.bf16.msra.mxu1 %v1834_v9 }
 0x335   :  { %723 = vmatprep.subr.bf16.mxu0 %v1820_v4  ;;  %1444 = vmatprep.subr.bf16.mxu1 %v1765_v0 }
 0x336   :  { %753 = vmatprep.mubr.bf16.mxu0 %v1766_v1  ;;  %1458 = vmatprep.mubr.msk.bf16.mxu1 %vm1767_vm0, %v1765_v0 }
 0x338   :  { %724 = vmatpush1.bf16.msra.mxu0 %v1823_v5  ;;  %1445 = vmatpush3.bf16.msra.mxu1 %v1843_v12 }
 0x339   :  { %725 = vmatprep.subr.bf16.mxu0 %v1826_v6  ;;  %1446 = vmatprep.subr.bf16.mxu1 %v1765_v0 }
 0x33c   :  { %726 = vmatpush1.bf16.msra.mxu0 %v1829_v7  ;;  %1447 = vmatpush3.bf16.msra.mxu1 %v1853_v15 }
 0x33d   :  { %727 = vmatprep.subr.bf16.mxu0 %v1832_v8  ;;  %1448 = vmatprep.subr.bf16.mxu1 %v1765_v0 }
 0x340   :  { %728 = vmatpush1.bf16.msra.mxu0 %v1837_v10  ;;  %1449 = vmatpush3.bf16.msra.mxu1 %v1870_v19 }
 0x341   :  { %729 = vmatprep.subr.bf16.mxu0 %v1839_v11  ;;  %1450 = vmatprep.subr.bf16.mxu1 %v1765_v0 }
 0x344   :  { %730 = vmatpush1.bf16.msra.mxu0 %v1846_v13  ;;  %1451 = vmatpush3.bf16.msra.mxu1 %v1883_v24 }
 0x345   :  { %731 = vmatprep.subr.bf16.mxu0 %v1849_v14  ;;  %1452 = vmatprep.subr.bf16.mxu1 %v1765_v0 }
 0x348   :  { %732 = vmatpush1.bf16.msra.mxu0 %v1862_v17  ;;  %1453 = vmatpush3.bf16.msra.mxu1 %v1893_v27 }
 0x349   :  { %733 = vmatprep.subr.bf16.mxu0 %v1867_v18  ;;  %1454 = vmatprep.subr.bf16.mxu1 %v1765_v0 }
 0x34c   :  { %734 = vmatpush1.bf16.msra.mxu0 %v1876_v22  ;;  %1455 = vmatpush3.bf16.msra.mxu1 %v1899_v29 }
 0x34d   :  { %735 = vmatprep.subr.bf16.mxu0 %v1880_v23  ;;  %1456 = vmatprep.subr.bf16.mxu1 %v1765_v0 }
 0x350   :  { %736 = vmatpush1.bf16.msra.mxu0 %v1888_v26  ;;  %1457 = vmatpush3.bf16.msra.mxu1 %v1906_v31 }
 0x351   :  { %844 = vmatprep.subr.bf16.mxu0 %v1815_v2  ;;  %1462 = vmatprep.subr.bf16.mxu1 %v1765_v0 }
 0x3f3   :  { %v632_v34 = vpop.f32.mrf.mxu0  ;;  %v673_v35 = vpop.f32.mrf.mxu1 }
 0x3f4   :  { %v679_v36 = vadd.f32 %v632_v34, %v594_v25  ;;  %v693_v54 = vadd.f32 %v1947_v50, %v673_v35 }
 0x3f5   :  { %v634_v37 = vpop.f32.mrf.mxu0  ;;  %v1440_v38 = vpop.f32.mrf.mxu1 }
 0x3f6   :  { %v1274_v39 = vmul.f32 -1.442695, %v679_v36  ;;  %v686_v45 = vadd.f32 %v634_v37, %v595_v40 }
 0x3f7   :  { %v636_v41 = vpop.f32.mrf.mxu0  ;;  %v676_v42 = vpop.f32.mrf.mxu1 }
 0x3f8   :  { %1598 = vpow2.f32 %v1274_v39  ;;  %v1275_v46 = vmul.f32 -1.442695, %v686_v45 }
 0x3f9   :  { %v637_v43 = vpop.f32.mrf.mxu0  ;;  %v1441_v44 = vpop.f32.mrf.mxu1 }
 0x3fa   :  { %1600 = vpow2.f32 %v1275_v46 }
 0x405   :  { %v1599_v47 = vpop.eup %1598 }
 0x406   :  { %v683_v48 = vadd.f32 1.0, %v1599_v47  ;;  %v2131_v47 = vld [vmem:[#allocation3 + $0x38] ss:$12 sps:$4 sm:$0xff]  }
 0x407   :  { %v1601_v16 = vpop.eup %1600 }
 0x408   :  { %1602 = vrcp.f32 %v683_v48  ;;  %v690_v49 = vadd.f32 1.0, %v1601_v16  ;;  %v719_v16 = vunpack.c.l.bf16 %v2131_v47 }
 0x40a   :  { %1604 = vrcp.f32 %v690_v49 }
 0x415   :  { %v1603_v55 = vpop.eup %1602 }
 0x416   :  { %v694_v56 = vmul.f32 %v1603_v55, %v693_v54 }
 0x417   :  { %v1605_v58 = vpop.eup %1604 }
 0x418   :  { %v695_v57 = vadd.f32 %v694_v56, %v596_v53  ;;  %v697_v59 = vsub.f32 1.0, %v1605_v58  ;;  %v699_v62 = vmul.f32 %v1605_v58, %v2049_v30 }
 0x41a   :  { %1606 = vtanh.f32 %v695_v57 }
 0x427   :  { %v1607_v60 = vpop.eup %1606 }
 0x428   :  { %v698_v61 = vmul.f32 %v1607_v60, %v697_v59 }
 0x42a   :  { %v700_v20 = vadd.f32 %v699_v62, %v698_v61  ;;  %v830_v61 = vpop.permute.xlu0 %829 }
 0x42b   :  { %vm831_vm14 = vcmp.eq.s32.totalorder %v830_v61, 1  ;;  %v1669_v61 = vld [vmem:[#allocation6 + $0x4] ss:$12 sps:$4 sm:$0xff]  }
 0x42c   :  { %v709_v21 = vsel %vm708_vm13, %v700_v20, 0.0  ;;  %v2092_v28 = vsel %vm708_vm13, %v700_v20, %v2049_v30  ;;  %v715_v30 = vld [vmem:[#allocation3 + $0x30] sm:$0xff] }
 0x42d   :  { %v710_v52 = vpack.c.bf16 %v709_v21, %v709_v21  ;;  %v720_v51 = vpack.c.bf16 %v2092_v28, %v2092_v28  ;;  %v717_v33 = vunpack.c.l.bf16 %v715_v30  ;;  %v718_v38 = vunpack.c.h.bf16 %v715_v30 }
 0x42f   :  { %712 = vst [vmem:[#allocation8 + $0xc] sm:$0xf] %v710_v52  ;;  %754 = vmatmul.mubr.bf16.vlgmr.msra.gmra.mxu0 %v720_v51  ;;  %1459 = vmatmul.mubr.bf16.vlgmr.msra.gmra.mxu1 %v720_v51 }
 0x430   :  { %845 = vmatpush1.bf16.msra.mxu0 %v1817_v3  ;;  %1463 = vmatpush3.bf16.msra.mxu1 %v1834_v9 }
 0x431   :  { %846 = vmatprep.subr.bf16.mxu0 %v1820_v4  ;;  %1464 = vmatprep.subr.bf16.mxu1 %v1765_v0 }
 0x432   :  { %876 = vmatprep.mubr.bf16.mxu0 %v1766_v1  ;;  %1478 = vmatprep.mubr.msk.bf16.mxu1 %vm1767_vm0, %v1765_v0 }
 0x434   :  { %847 = vmatpush1.bf16.msra.mxu0 %v1823_v5  ;;  %1465 = vmatpush3.bf16.msra.mxu1 %v1843_v12 }
 0x435   :  { %848 = vmatprep.subr.bf16.mxu0 %v1826_v6  ;;  %1466 = vmatprep.subr.bf16.mxu1 %v1765_v0 }
 0x438   :  { %849 = vmatpush1.bf16.msra.mxu0 %v1829_v7  ;;  %1467 = vmatpush3.bf16.msra.mxu1 %v1853_v15 }
 0x439   :  { %850 = vmatprep.subr.bf16.mxu0 %v1832_v8  ;;  %1468 = vmatprep.subr.bf16.mxu1 %v1765_v0 }
 0x43c   :  { %851 = vmatpush1.bf16.msra.mxu0 %v1837_v10  ;;  %1469 = vmatpush3.bf16.msra.mxu1 %v1870_v19 }
 0x43d   :  { %852 = vmatprep.subr.bf16.mxu0 %v1839_v11  ;;  %1470 = vmatprep.subr.bf16.mxu1 %v1765_v0 }
 0x440   :  { %853 = vmatpush1.bf16.msra.mxu0 %v1846_v13  ;;  %1471 = vmatpush3.bf16.msra.mxu1 %v1883_v24 }
 0x441   :  { %854 = vmatprep.subr.bf16.mxu0 %v1849_v14  ;;  %1472 = vmatprep.subr.bf16.mxu1 %v1765_v0 }
 0x444   :  { %855 = vmatpush1.bf16.msra.mxu0 %v1862_v17  ;;  %1473 = vmatpush3.bf16.msra.mxu1 %v1893_v27 }
 0x445   :  { %856 = vmatprep.subr.bf16.mxu0 %v1867_v18  ;;  %1474 = vmatprep.subr.bf16.mxu1 %v1765_v0 }
 0x448   :  { %857 = vmatpush1.bf16.msra.mxu0 %v1876_v22  ;;  %1475 = vmatpush3.bf16.msra.mxu1 %v1899_v29 }
 0x449   :  { %858 = vmatprep.subr.bf16.mxu0 %v1880_v23  ;;  %1476 = vmatprep.subr.bf16.mxu1 %v1765_v0 }
 0x44c   :  { %859 = vmatpush1.bf16.msra.mxu0 %v1888_v26  ;;  %1477 = vmatpush3.bf16.msra.mxu1 %v1906_v31 }
 0x44d   :  { %967 = vmatprep.subr.bf16.mxu0 %v1815_v2  ;;  %1482 = vmatprep.subr.bf16.mxu1 %v1765_v0 }
 0x4ef   :  { %v755_v32 = vpop.f32.mrf.mxu0  ;;  %v796_v25 = vpop.f32.mrf.mxu1 }
 0x4f0   :  { %v802_v34 = vadd.f32 %v755_v32, %v717_v33  ;;  %v816_v49 = vadd.f32 %v1947_v50, %v796_v25 }
 0x4f1   :  { %v757_v35 = vpop.f32.mrf.mxu0  ;;  %v1460_v36 = vpop.f32.mrf.mxu1 }
 0x4f2   :  { %v1276_v37 = vmul.f32 -1.442695, %v802_v34  ;;  %v809_v43 = vadd.f32 %v757_v35, %v718_v38  ;;  %v953_v35 = vpop.permute.xlu1 %952 }
 0x4f3   :  { %v759_v39 = vpop.f32.mrf.mxu0  ;;  %v799_v40 = vpop.f32.mrf.mxu1  ;;  %vm954_vm15 = vcmp.eq.s32.totalorder %v953_v35, 1 }
 0x4f4   :  { %1608 = vpow2.f32 %v1276_v37  ;;  %v1277_v44 = vmul.f32 -1.442695, %v809_v43  ;;  %v1651_v43 = vld [vmem:[#allocation6 + $0x94] ss:$12 sps:$4 sm:$0xff]  }
 0x4f5   :  { %v760_v41 = vpop.f32.mrf.mxu0  ;;  %v1461_v42 = vpop.f32.mrf.mxu1 }
 0x4f6   :  { %1610 = vpow2.f32 %v1277_v44  ;;  %v1649_v41 = vld [vmem:[#allocation6 + $0xa8] ss:$12 sps:$4 sm:$0xff]   ;;  %v1650_v42 = vld [vmem:[#allocation6 + $0xb0] ss:$12 sps:$4 sm:$0xff]  }
 0x4f7   :  { %v1652_v44 = vld [vmem:[#allocation6 + $0x90] ss:$12 sps:$4 sm:$0xff]  }
 0x501   :  { %v1609_v2 = vpop.eup %1608 }
 0x502   :  { %v806_v45 = vadd.f32 1.0, %v1609_v2  ;;  %v1653_v2 = vld [vmem:[#allocation6 + $0x98] ss:$12 sps:$4 sm:$0xff]  }
 0x503   :  { %v1611_v46 = vpop.eup %1610 }
 0x504   :  { %1612 = vrcp.f32 %v806_v45  ;;  %v813_v48 = vadd.f32 1.0, %v1611_v46  ;;  %v1654_v45 = vld [vmem:[#allocation6 + $0x7c] ss:$12 sps:$4 sm:$0xff]   ;;  %v1655_v46 = vld [vmem:[#allocation6 + $0x78] ss:$12 sps:$4 sm:$0xff]  }
 0x506   :  { %1614 = vrcp.f32 %v813_v48  ;;  %v1657_v48 = vld [vmem:[#allocation6 + $0x64] ss:$12 sps:$4 sm:$0xff]  }
 0x511   :  { %v1613_v53 = vpop.eup %1612 }
 0x512   :  { %v817_v54 = vmul.f32 %v1613_v53, %v816_v49  ;;  %v1660_v49 = vld [vmem:[#allocation6 + $0x4c] ss:$12 sps:$4 sm:$0xff]   ;;  %v1661_v53 = vld [vmem:[#allocation6 + $0x48] ss:$12 sps:$4 sm:$0xff]  }
 0x513   :  { %v1615_v56 = vpop.eup %1614 }
 0x514   :  { %v818_v55 = vadd.f32 %v817_v54, %v719_v16  ;;  %v820_v57 = vsub.f32 1.0, %v1615_v56  ;;  %v822_v60 = vmul.f32 %v1615_v56, %v2092_v28  ;;  %v1659_v16 = vld [vmem:[#allocation6 + $0x68] ss:$12 sps:$4 sm:$0xff]   ;;  %v1662_v54 = vld [vmem:[#allocation6 + $0x50] ss:$12 sps:$4 sm:$0xff]  }
 0x515   :  { %v1664_v56 = vld [vmem:[#allocation6 + $0x30] ss:$12 sps:$4 sm:$0xff]  }
 0x516   :  { %1616 = vtanh.f32 %v818_v55  ;;  %v1663_v55 = vld [vmem:[#allocation6 + $0x34] ss:$12 sps:$4 sm:$0xff]  }
 0x523   :  { %v1617_v58 = vpop.eup %1616 }
 0x524   :  { %v821_v59 = vmul.f32 %v1617_v58, %v820_v57  ;;  %v1665_v57 = vld [vmem:[#allocation6 + $0x38] ss:$12 sps:$4 sm:$0xff]   ;;  %v1666_v58 = vld [vmem:[#allocation6 + $0x1c] ss:$12 sps:$4 sm:$0xff]  }
 0x526   :  { %v823_v62 = vadd.f32 %v822_v60, %v821_v59  ;;  %v1667_v59 = vld [vmem:[#allocation6 + $0x18] ss:$12 sps:$4 sm:$0xff]   ;;  %v1668_v60 = vld [vmem:[#allocation6 + $0x20] ss:$12 sps:$4 sm:$0xff]  }
 0x528   :  { %v832_v63 = vsel %vm831_vm14, %v823_v62, 0.0  ;;  %v2137_v20 = vsel %vm831_vm14, %v823_v62, %v2092_v28  ;;  %v1670_v62 = vld [vmem:[#allocation6] ss:$12 sps:$4 sm:$0xff]  }
 0x529   :  { %v833_v21 = vpack.c.bf16 %v832_v63, %v832_v63  ;;  %v843_v52 = vpack.c.bf16 %v2137_v20, %v2137_v20  ;;  %v1671_v63 = vld [vmem:[#allocation6 + $0x8] ss:$12 sps:$4 sm:$0xff]  }
 0x52b   :  { %835 = vst [vmem:[#allocation8 + $0x10] sm:$0xf] %v833_v21  ;;  %877 = vmatmul.mubr.bf16.vlgmr.msra.gmra.mxu0 %v843_v52  ;;  %1479 = vmatmul.mubr.bf16.vlgmr.msra.gmra.mxu1 %v843_v52 }
 0x52c   :  { %968 = vmatpush1.bf16.msra.mxu0 %v1817_v3  ;;  %1483 = vmatpush3.bf16.msra.mxu1 %v1834_v9  ;;  %v1648_v3 = vld [vmem:[#allocation6 + $0xac] ss:$12 sps:$4 sm:$0xff]  }
 0x52d   :  { %969 = vmatprep.subr.bf16.mxu0 %v1820_v4  ;;  %1484 = vmatprep.subr.bf16.mxu1 %v1765_v0  ;;  %v838_v4 = vld [vmem:[#allocation3 + $0x3c] sm:$0xff] }
 0x52e   :  { %999 = vmatprep.mubr.bf16.mxu0 %v1766_v1  ;;  %1498 = vmatprep.mubr.msk.bf16.mxu1 %vm1767_vm0, %v1765_v0 }
 0x530   :  { %970 = vmatpush1.bf16.msra.mxu0 %v1823_v5  ;;  %1485 = vmatpush3.bf16.msra.mxu1 %v1843_v12  ;;  %v840_v5 = vunpack.c.l.bf16 %v838_v4  ;;  %v841_v12 = vunpack.c.h.bf16 %v838_v4 }
 0x531   :  { %971 = vmatprep.subr.bf16.mxu0 %v1826_v6  ;;  %1486 = vmatprep.subr.bf16.mxu1 %v1765_v0 }
 0x534   :  { %972 = vmatpush1.bf16.msra.mxu0 %v1829_v7  ;;  %1487 = vmatpush3.bf16.msra.mxu1 %v1853_v15 }
 0x535   :  { %973 = vmatprep.subr.bf16.mxu0 %v1832_v8  ;;  %1488 = vmatprep.subr.bf16.mxu1 %v1765_v0 }
 0x538   :  { %974 = vmatpush1.bf16.msra.mxu0 %v1837_v10  ;;  %1489 = vmatpush3.bf16.msra.mxu1 %v1870_v19 }
 0x539   :  { %975 = vmatprep.subr.bf16.mxu0 %v1839_v11  ;;  %1490 = vmatprep.subr.bf16.mxu1 %v1765_v0 }
 0x53c   :  { %976 = vmatpush1.bf16.msra.mxu0 %v1846_v13  ;;  %1491 = vmatpush3.bf16.msra.mxu1 %v1883_v24 }
 0x53d   :  { %977 = vmatprep.subr.bf16.mxu0 %v1849_v14  ;;  %1492 = vmatprep.subr.bf16.mxu1 %v1765_v0 }
 0x540   :  { %978 = vmatpush1.bf16.msra.mxu0 %v1862_v17  ;;  %1493 = vmatpush3.bf16.msra.mxu1 %v1893_v27  ;;  %v842_v27 = vunpack.c.h.bf16 %v2131_v47  ;;  %v1656_v47 = vld [vmem:[#allocation6 + $0x80] ss:$12 sps:$4 sm:$0xff]  }
 0x541   :  { %979 = vmatprep.subr.bf16.mxu0 %v1867_v18  ;;  %1494 = vmatprep.subr.bf16.mxu1 %v1765_v0 }
 0x544   :  { %980 = vmatpush1.bf16.msra.mxu0 %v1876_v22  ;;  %1495 = vmatpush3.bf16.msra.mxu1 %v1899_v29 }
 0x545   :  { %981 = vmatprep.subr.bf16.mxu0 %v1880_v23  ;;  %1496 = vmatprep.subr.bf16.mxu1 %v1765_v0 }
 0x548   :  { %982 = vmatpush1.bf16.msra.mxu0 %v1888_v26  ;;  %1497 = vmatpush3.bf16.msra.mxu1 %v1906_v31 }
 0x549   :  { %1090 = vmatprep.subr.bf16.mxu0 %v1648_v3  ;;  %1502 = vmatprep.subr.bf16.mxu1 %v1765_v0 }
 0x5eb   :  { %v878_v6 = vpop.f32.mrf.mxu0  ;;  %v919_v7 = vpop.f32.mrf.mxu1 }
 0x5ec   :  { %v925_v8 = vadd.f32 %v878_v6, %v840_v5  ;;  %v939_v29 = vadd.f32 %v1947_v50, %v919_v7 }
 0x5ed   :  { %v880_v9 = vpop.f32.mrf.mxu0  ;;  %v1480_v10 = vpop.f32.mrf.mxu1 }
 0x5ee   :  { %v1278_v11 = vmul.f32 -1.442695, %v925_v8  ;;  %v932_v18 = vadd.f32 %v880_v9, %v841_v12 }
 0x5ef   :  { %v882_v13 = vpop.f32.mrf.mxu0  ;;  %v922_v14 = vpop.f32.mrf.mxu1 }
 0x5f0   :  { %1618 = vpow2.f32 %v1278_v11  ;;  %v1279_v19 = vmul.f32 -1.442695, %v932_v18  ;;  %v962_v18 = vld [vmem:[#allocation3 + $0x50] ss:$12 sps:$4 sm:$0xff]  }
 0x5f1   :  { %v883_v15 = vpop.f32.mrf.mxu0  ;;  %v1481_v17 = vpop.f32.mrf.mxu1 }
 0x5f2   :  { %1620 = vpow2.f32 %v1279_v19 }
 0x5fd   :  { %v1619_v22 = vpop.eup %1618 }
 0x5fe   :  { %v929_v23 = vadd.f32 1.0, %v1619_v22  ;;  %v965_v22 = vunpack.c.l.bf16 %v962_v18 }
 0x5ff   :  { %v1621_v24 = vpop.eup %1620 }
 0x600   :  { %1622 = vrcp.f32 %v929_v23  ;;  %v936_v26 = vadd.f32 1.0, %v1621_v24 }
 0x602   :  { %1624 = vrcp.f32 %v936_v26 }
 0x60d   :  { %v1623_v31 = vpop.eup %1622 }
 0x60e   :  { %v940_v28 = vmul.f32 %v1623_v31, %v939_v29 }
 0x60f   :  { %v1625_v30 = vpop.eup %1624 }
 0x610   :  { %v941_v51 = vadd.f32 %v940_v28, %v842_v27  ;;  %v943_v33 = vsub.f32 1.0, %v1625_v30  ;;  %v945_v34 = vmul.f32 %v1625_v30, %v2137_v20 }
 0x612   :  { %1626 = vtanh.f32 %v941_v51  ;;  %v1076_v51 = vpop.permute.xlu0 %1075 }
 0x61f   :  { %v1627_v32 = vpop.eup %1626 }
 0x620   :  { %v944_v25 = vmul.f32 %v1627_v32, %v943_v33 }
 0x622   :  { %v946_v36 = vadd.f32 %v945_v34, %v944_v25 }
 0x624   :  { %v955_v37 = vsel %vm954_vm15, %v946_v36, 0.0  ;;  %v2179_v38 = vsel %vm954_vm15, %v946_v36, %v2137_v20  ;;  %v961_v20 = vld [vmem:[#allocation3 + $0x48] sm:$0xff] }
 0x625   :  { %v956_v39 = vpack.c.bf16 %v955_v37, %v955_v37  ;;  %v966_v40 = vpack.c.bf16 %v2179_v38, %v2179_v38  ;;  %v963_v21 = vunpack.c.l.bf16 %v961_v20  ;;  %v964_v8 = vunpack.c.h.bf16 %v961_v20  ;;  %v1199_v20 = vpop.permute.xlu1 %1198 }
 0x626   :  { %vm1200_vm1 = vcmp.eq.s32.totalorder %v1199_v20, 1 }
 0x627   :  { %958 = vst [vmem:[#allocation8 + $0x14] sm:$0xf] %v956_v39  ;;  %1000 = vmatmul.mubr.bf16.vlgmr.msra.gmra.mxu0 %v966_v40  ;;  %1499 = vmatmul.mubr.bf16.vlgmr.msra.gmra.mxu1 %v966_v40 }
 0x628   :  { %1091 = vmatpush1.bf16.msra.mxu0 %v1649_v41  ;;  %1503 = vmatpush3.bf16.msra.mxu1 %v1650_v42 }
 0x629   :  { %1092 = vmatprep.subr.bf16.mxu0 %v1651_v43  ;;  %1504 = vmatprep.subr.bf16.mxu1 %v1765_v0 }
 0x62a   :  { %1122 = vmatprep.mubr.bf16.mxu0 %v1766_v1  ;;  %1518 = vmatprep.mubr.msk.bf16.mxu1 %vm1767_vm0, %v1765_v0  ;;  %v1658_v1 = vld [vmem:[#allocation6 + $0x60] ss:$12 sps:$4 sm:$0xff]   ;;  %vm1077_vm0 = vcmp.eq.s32.totalorder %v1076_v51, 1 }
 0x62c   :  { %1093 = vmatpush1.bf16.msra.mxu0 %v1652_v44  ;;  %1505 = vmatpush3.bf16.msra.mxu1 %v1653_v2 }
 0x62d   :  { %1094 = vmatprep.subr.bf16.mxu0 %v1654_v45  ;;  %1506 = vmatprep.subr.bf16.mxu1 %v1765_v0 }
 0x630   :  { %1095 = vmatpush1.bf16.msra.mxu0 %v1655_v46  ;;  %1507 = vmatpush3.bf16.msra.mxu1 %v1656_v47 }
 0x631   :  { %1096 = vmatprep.subr.bf16.mxu0 %v1657_v48  ;;  %1508 = vmatprep.subr.bf16.mxu1 %v1765_v0 }
 0x634   :  { %1097 = vmatpush1.bf16.msra.mxu0 %v1658_v1  ;;  %1509 = vmatpush3.bf16.msra.mxu1 %v1659_v16 }
 0x635   :  { %1098 = vmatprep.subr.bf16.mxu0 %v1660_v49  ;;  %1510 = vmatprep.subr.bf16.mxu1 %v1765_v0 }
 0x638   :  { %1099 = vmatpush1.bf16.msra.mxu0 %v1661_v53  ;;  %1511 = vmatpush3.bf16.msra.mxu1 %v1662_v54 }
 0x639   :  { %1100 = vmatprep.subr.bf16.mxu0 %v1663_v55  ;;  %1512 = vmatprep.subr.bf16.mxu1 %v1765_v0  ;;  %v1088_v55 = vunpack.c.h.bf16 %v962_v18 }
 0x63c   :  { %1101 = vmatpush1.bf16.msra.mxu0 %v1664_v56  ;;  %1513 = vmatpush3.bf16.msra.mxu1 %v1665_v57  ;;  %v1672_v56 = vld [vmem:[%s2208_s3] ss:$0 sm:$0xff]  ;;  %s1713_s3 = scalar_lea.vmem %s1230_s9, 128 }
 0x63d   :  { %1102 = vmatprep.subr.bf16.mxu0 %v1666_v58  ;;  %1514 = vmatprep.subr.bf16.mxu1 %v1765_v0  ;;  %p1714_p10 = scmp.ne.s32.totalorder %s1230_s9, %s1713_s3  ;;  %p1719_p12 = scmp.lt.s32.totalorder %s1713_s3, %s1713_s3 }
 0x63f   :  { %p1720_p13 = por %p1719_p12, %p1718_p11 }
 0x640   :  { %1103 = vmatpush1.bf16.msra.mxu0 %v1667_v59  ;;  %1515 = vmatpush3.bf16.msra.mxu1 %v1668_v60 }
 0x641   :  { %1104 = vmatprep.subr.bf16.mxu0 %v1669_v61  ;;  %1516 = vmatprep.subr.bf16.mxu1 %v1765_v0  ;;  %p1721_p0 = pnand %p1720_p13, %p1714_p10 }
 0x644   :  { %1105 = vmatpush1.bf16.msra.mxu0 %v1670_v62  ;;  %1517 = vmatpush3.bf16.msra.mxu1 %v1671_v63 }
 0x6e7   :  { %v1001_v52 = vpop.f32.mrf.mxu0  ;;  %v1042_v3 = vpop.f32.mrf.mxu1 }
 0x6e8   :  { %v1048_v4 = vadd.f32 %v1001_v52, %v963_v21  ;;  %v1062_v23 = vadd.f32 %v1947_v50, %v1042_v3  ;;  %v1084_v50 = vld [vmem:[#allocation3 + $0x54] sm:$0xff] }
 0x6e9   :  { %v1003_v5 = vpop.f32.mrf.mxu0  ;;  %v1500_v6 = vpop.f32.mrf.mxu1  ;;  %v1086_v37 = vunpack.c.l.bf16 %v1084_v50  ;;  %v1087_v2 = vunpack.c.h.bf16 %v1084_v50 }
 0x6ea   :  { %v1280_v7 = vmul.f32 -1.442695, %v1048_v4  ;;  %v1055_v13 = vadd.f32 %v1003_v5, %v964_v8 }
 0x6eb   :  { %v1005_v9 = vpop.f32.mrf.mxu0  ;;  %v1045_v10 = vpop.f32.mrf.mxu1 }
 0x6ec   :  { %1628 = vpow2.f32 %v1280_v7  ;;  %v1281_v0 = vmul.f32 -1.442695, %v1055_v13 }
 0x6ed   :  { %v1006_v11 = vpop.f32.mrf.mxu0  ;;  %v1501_v12 = vpop.f32.mrf.mxu1 }
 0x6ee   :  { %1630 = vpow2.f32 %v1281_v0 }
 0x6f9   :  { %v1629_v14 = vpop.eup %1628 }
 0x6fa   :  { %v1052_v15 = vadd.f32 1.0, %v1629_v14 }
 0x6fb   :  { %v1631_v17 = vpop.eup %1630 }
 0x6fc   :  { %1632 = vrcp.f32 %v1052_v15  ;;  %v1059_v19 = vadd.f32 1.0, %v1631_v17 }
 0x6fe   :  { %1634 = vrcp.f32 %v1059_v19 }
 0x709   :  { %v1633_v24 = vpop.eup %1632 }
 0x70a   :  { %v1063_v26 = vmul.f32 %v1633_v24, %v1062_v23 }
 0x70b   :  { %v1635_v29 = vpop.eup %1634 }
 0x70c   :  { %v1064_v27 = vadd.f32 %v1063_v26, %v965_v22  ;;  %v1066_v31 = vsub.f32 1.0, %v1635_v29  ;;  %v1068_v33 = vmul.f32 %v1635_v29, %v2179_v38 }
 0x70e   :  { %1636 = vtanh.f32 %v1064_v27 }
 0x71b   :  { %v1637_v28 = vpop.eup %1636 }
 0x71c   :  { %v1067_v30 = vmul.f32 %v1637_v28, %v1066_v31 }
 0x71e   :  { %v1069_v32 = vadd.f32 %v1068_v33, %v1067_v30 }
 0x720   :  { %v1078_v25 = vsel %vm1077_vm0, %v1069_v32, 0.0  ;;  %v1082_v34 = vsel %vm1077_vm0, %v1069_v32, %v2179_v38 }
 0x721   :  { %v1079_v35 = vpack.c.bf16 %v1078_v25, %v1078_v25  ;;  %v1089_v36 = vpack.c.bf16 %v1082_v34, %v1082_v34 }
 0x723   :  { %1081 = vst [vmem:[#allocation8 + $0x18] sm:$0xf] %v1079_v35  ;;  %1123 = vmatmul.mubr.bf16.vlgmr.msra.gmra.mxu0 %v1089_v36  ;;  %1519 = vmatmul.mubr.bf16.vlgmr.msra.gmra.mxu1 %v1089_v36 }
 0x7e3   :  { %v1124_v39 = vpop.f32.mrf.mxu0  ;;  %v1165_v40 = vpop.f32.mrf.mxu1 }
 0x7e4   :  { %v1171_v41 = vadd.f32 %v1124_v39, %v1086_v37  ;;  %v1185_v57 = vadd.f32 %v1672_v56, %v1165_v40 }
 0x7e5   :  { %v1126_v42 = vpop.f32.mrf.mxu0  ;;  %v1520_v43 = vpop.f32.mrf.mxu1 }
 0x7e6   :  { %v1282_v44 = vmul.f32 -1.442695, %v1171_v41  ;;  %v1178_v38 = vadd.f32 %v1126_v42, %v1087_v2 }
 0x7e7   :  { %v1128_v45 = vpop.f32.mrf.mxu0  ;;  %v1168_v46 = vpop.f32.mrf.mxu1 }
 0x7e8   :  { %1638 = vpow2.f32 %v1282_v44  ;;  %v1283_v1 = vmul.f32 -1.442695, %v1178_v38 }
 0x7e9   :  { %v1129_v47 = vpop.f32.mrf.mxu0  ;;  %v1521_v48 = vpop.f32.mrf.mxu1 }
 0x7ea   :  { %1640 = vpow2.f32 %v1283_v1 }
 0x7f5   :  { %v1639_v16 = vpop.eup %1638 }
 0x7f6   :  { %v1175_v49 = vadd.f32 1.0, %v1639_v16 }
 0x7f7   :  { %v1641_v53 = vpop.eup %1640 }
 0x7f8   :  { %1642 = vrcp.f32 %v1175_v49  ;;  %v1182_v54 = vadd.f32 1.0, %v1641_v53 }
 0x7fa   :  { %1644 = vrcp.f32 %v1182_v54 }
 0x805   :  { %v1643_v58 = vpop.eup %1642 }
 0x806   :  { %v1186_v59 = vmul.f32 %v1643_v58, %v1185_v57 }
 0x807   :  { %v1645_v61 = vpop.eup %1644 }
 0x808   :  { %v1187_v60 = vadd.f32 %v1186_v59, %v1088_v55  ;;  %v1189_v62 = vsub.f32 1.0, %v1645_v61  ;;  %v1191_v52 = vmul.f32 %v1645_v61, %v1082_v34 }
 0x80a   :  { %1646 = vtanh.f32 %v1187_v60 }
 0x817   :  { %v1647_v63 = vpop.eup %1646 }
 0x818   :  { %v1190_v21 = vmul.f32 %v1647_v63, %v1189_v62 }
 0x81a   :  { %v1192_v3 = vadd.f32 %v1191_v52, %v1190_v21 }
 0x81c   :  { %v1201_v4 = vsel %vm1200_vm1, %v1192_v3, 0.0  ;;  %v1205_v5 = vsel %vm1200_vm1, %v1192_v3, %v1082_v34 }
 0x81d   :  { %v1202_v6 = vpack.c.bf16 %v1201_v4, %v1201_v4  ;;  %1210 = vst [vmem:[#allocation9] sm:$0xff] %v1205_v5 }
 0x81e   :  { %1724 = shalt.err (!%p1721_p0)
}
 0x81f   :  { %1232 = dma.vmem_to_hbm [thread:$0]  %s1230_s9, 128, %s2210_s5, [#allocation10]   ;;  %1204 = vst [vmem:[#allocation8 + $0x1c] sm:$0xf] %v1202_v6 }
 0x820   :  { %s1733_s14 = scalar_lea.vmem %s1217_s11, 512  ;;  %p1738_p2 = scmp.lt.s32.totalorder %s1217_s11, %s1217_s11 }
 0x821   :  { %p1734_p1 = scmp.ne.s32.totalorder %s1217_s11, %s1733_s14  ;;  %p1739_p3 = scmp.lt.s32.totalorder %s1733_s14, %s1733_s14 }
 0x823   :  { %p1740_p4 = por %p1739_p3, %p1738_p2 }
 0x825   :  { %p1741_p5 = pnand %p1740_p4, %p1734_p1 }
 0x827   :  { %1744 = shalt.err (!%p1741_p5)
}
 0x828   :  { %s1771_s15 = smov 64   ;;  %s1772_s16 = smov 4  }
 0x829   :  { %1222 = dma.vmem_to_hbm [thread:$0]  %s1217_s11, 512, %s2209_s4, [#allocation5], %s1771_s15, %s1771_s15, %s1772_s16  }
 0x82a   :  { %1757 = dma.done.wait [#allocation5], 512  }
 0x82b   :  { %1758 = vsyncadd [#allocation5], 4294966784 }
 0x82c   :  { %1759 = dma.done.wait [#allocation10], 128  }
 0x82d   :  { %1760 = vsyncadd [#allocation10], 4294967168 }
 0x82e   :  { %1239 = vsyncpa [#allocation4], 1 }
 0x82f   :  { %1240 = vsyncpa [#allocation7], 1 }
 0x830   :  { %1241 = vsyncpa [#allocation5], 1 }
 0x831   :  { %1242 = vsyncpa [#allocation10], 1 }

// kernel: tpu_custom_call.1
= control target key start
LH: loop header
LB: loop body
LE: loop exit
PB: predicated region body
PF: predicated region fallthrough
CT: control target
= control target key end

     0   :  { %11 = vsyncpa [#allocation4], 0  ;;  %s2205_s0 = inlined_call_operand.hbm [shape: bf16[8,8,384], index: 0, kind: input, shape index: {}]   ;;  %s2206_s1 = inlined_call_operand.vmem [shape: s32[8,1], index: 1, kind: input, shape index: {}]   ;;  %s2207_s2 = inlined_call_operand.hbm [shape: bf16[128,384], index: 2, kind: input, shape index: {}]   ;;  %s2208_s3 = inlined_call_operand.vmem [shape: f32[1,128], index: 3, kind: input, shape index: {}]   ;;  %s2209_s4 = inlined_call_operand.hbm [shape: bf16[8,8,128], index: 4, kind: output, shape index: {0}]   ;;  %s2210_s5 = inlined_call_operand.hbm [shape: f32[1,8,128], index: 5, kind: output, shape index: {1}]  }
   0x1   :  { %12 = vsyncpa [#allocation7], 0 }
   0x2   :  { %13 = vsyncpa [#allocation5], 0 }
   0x3   :  { %14 = vsyncpa [#allocation10], 0  ;;  %s1761_s18 = smov [#allocation3]  }
   0x4   :  { %s20_s19 = sshll.u32 %s1761_s18, 4  ;;  %s21_s19 = int_to_ptr.vmem [resolvable:$true] %s20_s19 }
   0x5   :  { %s1681_s20 = scalar_lea.vmem %s21_s19, 1536  ;;  %p1686_p1 = scmp.lt.s32.totalorder %s21_s19, %s21_s19 }
   0x6   :  { %p1682_p0 = scmp.ne.s32.totalorder %s21_s19, %s1681_s20  ;;  %p1687_p2 = scmp.lt.s32.totalorder %s1681_s20, %s1681_s20 }
   0x8   :  { %p1688_p3 = por %p1687_p2, %p1686_p1 }
   0xa   :  { %p1689_p4 = pnand %p1688_p3, %p1682_p0 }
   0xc   :  { %1692 = shalt.err (!%p1689_p4)
}
   0xd   :  { %s1762_s21 = smov 192   ;;  %s1763_s22 = smov 12  }
   0xe   :  { %26 = dma.hbm_to_vmem [thread:$0]  %s2205_s0, 1536, %s21_s19, [#allocation4], %s1762_s21, %s1762_s21, %s1763_s22  }
   0xf   :  { %s1764_s25 = smov [#allocation6]  }
  0x10   :  { %s34_s26 = sshll.u32 %s1764_s25, 4  ;;  %s35_s26 = int_to_ptr.vmem [resolvable:$true] %s34_s26 }
  0x11   :  { %s1701_s27 = scalar_lea.vmem %s35_s26, 3072  ;;  %p1706_p6 = scmp.lt.s32.totalorder %s35_s26, %s35_s26 }
  0x12   :  { %p1702_p5 = scmp.ne.s32.totalorder %s35_s26, %s1701_s27  ;;  %p1707_p7 = scmp.lt.s32.totalorder %s1701_s27, %s1701_s27 }
  0x14   :  { %p1708_p8 = por %p1707_p7, %p1706_p6 }
  0x16   :  { %p1709_p9 = pnand %p1708_p8, %p1702_p5 }
  0x18   :  { %1712 = shalt.err (!%p1709_p9)
}
  0x19   :  { %40 = dma.hbm_to_vmem [thread:$0]  %s2207_s2, 3072, %s35_s26, [#allocation7], %s1762_s21, %s1762_s21, %s1763_s22  }
  0x1a   :  { %1753 = dma.done.wait [#allocation4], 1536  }
  0x1b   :  { %1754 = vsyncadd [#allocation4], 4294965760 }
  0x1c   :  { %1755 = dma.done.wait [#allocation7], 3072  }
  0x1d   :  { %1756 = vsyncadd [#allocation7], 4294964224  ;;  %v1765_v0 = vmov 0.0   ;;  %v1766_v1 = vmov 0   ;;  %vm1767_vm0 = vmmov 0   ;;  %v1859_v16 = vld [vmem:[%s2206_s1] sm:$0xff] }
  0x1e   :  { %1362 = vmatprep.subr.bf16.mxu1 %v1765_v0  ;;  %257 = vmatprep.mubr.bf16.mxu0 %v1766_v1  ;;  %v1815_v2 = vld [vmem:[#allocation6 + $0xac] ss:$12 sps:$4 sm:$0xff]   ;;  %v1817_v3 = vld [vmem:[#allocation6 + $0xa8] ss:$12 sps:$4 sm:$0xff]   ;;  %v1823_v5 = vld [vmem:[#allocation6 + $0x90] ss:$12 sps:$4 sm:$0xff]  }
  0x1f   :  { %1378 = vmatprep.mubr.msk.bf16.mxu1 %vm1767_vm0, %v1765_v0  ;;  %1534 = vset.pattern.permute.xlu0 %v1766_v1  ;;  %v1820_v4 = vld [vmem:[#allocation6 + $0x94] ss:$12 sps:$4 sm:$0xff]   ;;  %v1826_v6 = vld [vmem:[#allocation6 + $0x7c] ss:$12 sps:$4 sm:$0xff]   ;;  %v1829_v7 = vld [vmem:[#allocation6 + $0x78] ss:$12 sps:$4 sm:$0xff]  }
  0x20   :  { %1535 = vset.pattern.permute.xlu1 %v1766_v1  ;;  %225 = vmatprep.subr.bf16.mxu0 %v1815_v2  ;;  %v1832_v8 = vld [vmem:[#allocation6 + $0x64] ss:$12 sps:$4 sm:$0xff]   ;;  %v1837_v10 = vld [vmem:[#allocation6 + $0x60] ss:$12 sps:$4 sm:$0xff]   ;;  %v1846_v13 = vld [vmem:[#allocation6 + $0x48] ss:$12 sps:$4 sm:$0xff]  }
  0x21   :  { %226 = vmatpush1.bf16.msra.mxu0 %v1817_v3  ;;  %v1834_v9 = vld [vmem:[#allocation6 + $0xb0] ss:$12 sps:$4 sm:$0xff]   ;;  %v1839_v11 = vld [vmem:[#allocation6 + $0x4c] ss:$12 sps:$4 sm:$0xff]   ;;  %v1849_v14 = vld [vmem:[#allocation6 + $0x34] ss:$12 sps:$4 sm:$0xff]  }
  0x22   :  { %227 = vmatprep.subr.bf16.mxu0 %v1820_v4  ;;  %1363 = vmatpush3.bf16.msra.mxu1 %v1834_v9  ;;  %v1843_v12 = vld [vmem:[#allocation6 + $0x98] ss:$12 sps:$4 sm:$0xff]   ;;  %v1853_v15 = vld [vmem:[#allocation6 + $0x80] ss:$12 sps:$4 sm:$0xff]   ;;  %v1862_v17 = vld [vmem:[#allocation6 + $0x30] ss:$12 sps:$4 sm:$0xff]  }
  0x23   :  { %1364 = vmatprep.subr.bf16.mxu1 %v1765_v0  ;;  %vm335_vm1 = vcmp.gt.s32.totalorder %v1859_v16, 0  ;;  %vm457_vm2 = vcmp.gt.s32.totalorder %v1859_v16, 1  ;;  %v1867_v18 = vld [vmem:[#allocation6 + $0x1c] ss:$12 sps:$4 sm:$0xff]   ;;  %v1876_v22 = vld [vmem:[#allocation6 + $0x18] ss:$12 sps:$4 sm:$0xff]  }
  0x24   :  { %v1870_v19 = vld [vmem:[#allocation6 + $0x68] ss:$12 sps:$4 sm:$0xff]   ;;  %v336_v20 = vsel %vm335_vm1, 1, %v1766_v1  ;;  %v458_v21 = vsel %vm457_vm2, 1, %v1766_v1  ;;  %vm826_vm3 = vcmp.gt.s32.totalorder %v1859_v16, 4  ;;  %vm1072_vm4 = vcmp.gt.s32.totalorder %v1859_v16, 6 }
  0x25   :  { %228 = vmatpush1.bf16.msra.mxu0 %v1823_v5  ;;  %338 = vperm.xlu0 %1534, %v336_v20   ;;  %v1880_v23 = vld [vmem:[#allocation6 + $0x4] ss:$12 sps:$4 sm:$0xff]   ;;  %v827_v25 = vsel %vm826_vm3, 1, %v1766_v1  ;;  %v1888_v26 = vld [vmem:[#allocation6] ss:$12 sps:$4 sm:$0xff]   ;;  %v1073_v28 = vsel %vm1072_vm4, 1, %v1766_v1 }
  0x26   :  { %229 = vmatprep.subr.bf16.mxu0 %v1826_v6  ;;  %1365 = vmatpush3.bf16.msra.mxu1 %v1843_v12  ;;  %v1883_v24 = vld [vmem:[#allocation6 + $0x50] ss:$12 sps:$4 sm:$0xff]   ;;  %v1893_v27 = vld [vmem:[#allocation6 + $0x38] ss:$12 sps:$4 sm:$0xff]   ;;  %v1899_v29 = vld [vmem:[#allocation6 + $0x20] ss:$12 sps:$4 sm:$0xff]  }
  0x27   :  { %1366 = vmatprep.subr.bf16.mxu1 %v1765_v0  ;;  %v1768_v30 = vmov 0.0|0.0   ;;  %v1906_v31 = vld [vmem:[#allocation6 + $0x8] ss:$12 sps:$4 sm:$0xff]   ;;  %v91_v32 = vld [vmem:[#allocation3] sm:$0xff]  ;;  %vm580_vm7 = vcmp.gt.s32.totalorder %v1859_v16, 2  ;;  %vm703_vm8 = vcmp.gt.s32.totalorder %v1859_v16, 3 }
  0x28   :  { %v93_v33 = vunpack.c.l.bf16 %v91_v32  ;;  %v94_v38 = vunpack.c.h.bf16 %v91_v32  ;;  %v1947_v50 = vld [vmem:[%s2208_s3] ss:$0 sm:$0xff]  ;;  %v1949_v51 = vld [vmem:[#allocation3 + $0x8] ss:$12 sps:$4 sm:$0xff]   ;;  %v704_v32 = vsel %vm703_vm8, 1, %v1766_v1  ;;  %vm949_vm9 = vcmp.gt.s32.totalorder %v1859_v16, 5 }
  0x29   :  { %230 = vmatpush1.bf16.msra.mxu0 %v1829_v7  ;;  %460 = vperm.xlu0 %1534, %v458_v21   ;;  %v95_v54 = vunpack.c.l.bf16 %v1949_v51  ;;  %vm1195_vm10 = vcmp.gt.s32.totalorder %v1859_v16, 7  ;;  %s1769_s8 = smov [#allocation9]   ;;  %s1770_s10 = smov [#allocation8]  }
  0x2a   :  { %231 = vmatprep.subr.bf16.mxu0 %v1832_v8  ;;  %1367 = vmatpush3.bf16.msra.mxu1 %v1853_v15  ;;  %s1229_s9 = sshll.u32 %s1769_s8, 4  ;;  %s1216_s11 = sshll.u32 %s1770_s10, 4  ;;  %s1230_s9 = int_to_ptr.vmem [resolvable:$true] %s1229_s9  ;;  %s1217_s11 = int_to_ptr.vmem [resolvable:$true] %s1216_s11 }
  0x2b   :  { %1368 = vmatprep.subr.bf16.mxu1 %v1765_v0  ;;  %p1718_p11 = scmp.lt.s32.totalorder %s1230_s9, %s1230_s9 }
  0x2d   :  { %232 = vmatpush1.bf16.msra.mxu0 %v1837_v10  ;;  %829 = vperm.xlu0 %1534, %v827_v25  }
  0x2e   :  { %233 = vmatprep.subr.bf16.mxu0 %v1839_v11  ;;  %1369 = vmatpush3.bf16.msra.mxu1 %v1870_v19 }
  0x2f   :  { %1370 = vmatprep.subr.bf16.mxu1 %v1765_v0 }
  0x31   :  { %234 = vmatpush1.bf16.msra.mxu0 %v1846_v13  ;;  %1075 = vperm.xlu0 %1534, %v1073_v28  }
  0x32   :  { %235 = vmatprep.subr.bf16.mxu0 %v1849_v14  ;;  %1371 = vmatpush3.bf16.msra.mxu1 %v1883_v24 }
  0x33   :  { %1372 = vmatprep.subr.bf16.mxu1 %v1765_v0 }
  0x35   :  { %236 = vmatpush1.bf16.msra.mxu0 %v1862_v17 }
  0x36   :  { %237 = vmatprep.subr.bf16.mxu0 %v1867_v18  ;;  %1373 = vmatpush3.bf16.msra.mxu1 %v1893_v27 }
  0x37   :  { %1374 = vmatprep.subr.bf16.mxu1 %v1765_v0 }
  0x39   :  { %238 = vmatpush1.bf16.msra.mxu0 %v1876_v22 }
  0x3a   :  { %239 = vmatprep.subr.bf16.mxu0 %v1880_v23  ;;  %1375 = vmatpush3.bf16.msra.mxu1 %v1899_v29 }
  0x3b   :  { %1376 = vmatprep.subr.bf16.mxu1 %v1765_v0 }
  0x3d   :  { %240 = vmatpush1.bf16.msra.mxu0 %v1888_v26 }
  0x3e   :  { %352 = vmatprep.subr.bf16.mxu0 %v1815_v2  ;;  %1377 = vmatpush3.bf16.msra.mxu1 %v1906_v31 }
  0x3f   :  { %1382 = vmatprep.subr.bf16.mxu1 %v1765_v0 }
  0x40   :  { %258 = vmatmul.mubr.bf16.vlgmr.msra.gmra.mxu0 %v1768_v30 }
  0x41   :  { %353 = vmatpush1.bf16.msra.mxu0 %v1817_v3  ;;  %384 = vmatprep.mubr.bf16.mxu0 %v1766_v1 }
  0x42   :  { %354 = vmatprep.subr.bf16.mxu0 %v1820_v4  ;;  %1379 = vmatmul.mubr.bf16.vlgmr.msra.gmra.mxu1 %v1768_v30  ;;  %v581_v30 = vsel %vm580_vm7, 1, %v1766_v1 }
  0x43   :  { %1383 = vmatpush3.bf16.msra.mxu1 %v1834_v9  ;;  %1398 = vmatprep.mubr.msk.bf16.mxu1 %vm1767_vm0, %v1765_v0 }
  0x44   :  { %1384 = vmatprep.subr.bf16.mxu1 %v1765_v0  ;;  %583 = vperm.xlu1 %1535, %v581_v30  }
  0x45   :  { %355 = vmatpush1.bf16.msra.mxu0 %v1823_v5 }
  0x46   :  { %356 = vmatprep.subr.bf16.mxu0 %v1826_v6 }
  0x47   :  { %1385 = vmatpush3.bf16.msra.mxu1 %v1843_v12 }
  0x48   :  { %1386 = vmatprep.subr.bf16.mxu1 %v1765_v0  ;;  %706 = vperm.xlu1 %1535, %v704_v32  }
  0x49   :  { %357 = vmatpush1.bf16.msra.mxu0 %v1829_v7 }
  0x4a   :  { %358 = vmatprep.subr.bf16.mxu0 %v1832_v8 }
  0x4b   :  { %1387 = vmatpush3.bf16.msra.mxu1 %v1853_v15 }
  0x4c   :  { %1388 = vmatprep.subr.bf16.mxu1 %v1765_v0 }
  0x4d   :  { %359 = vmatpush1.bf16.msra.mxu0 %v1837_v10 }
  0x4e   :  { %360 = vmatprep.subr.bf16.mxu0 %v1839_v11 }
  0x4f   :  { %1389 = vmatpush3.bf16.msra.mxu1 %v1870_v19 }
  0x50   :  { %1390 = vmatprep.subr.bf16.mxu1 %v1765_v0 }
  0x51   :  { %361 = vmatpush1.bf16.msra.mxu0 %v1846_v13 }
  0x52   :  { %362 = vmatprep.subr.bf16.mxu0 %v1849_v14 }
  0x53   :  { %1391 = vmatpush3.bf16.msra.mxu1 %v1883_v24 }
  0x54   :  { %1392 = vmatprep.subr.bf16.mxu1 %v1765_v0 }
  0x55   :  { %363 = vmatpush1.bf16.msra.mxu0 %v1862_v17 }
  0x56   :  { %364 = vmatprep.subr.bf16.mxu0 %v1867_v18 }
  0x57   :  { %1393 = vmatpush3.bf16.msra.mxu1 %v1893_v27 }
  0x58   :  { %1394 = vmatprep.subr.bf16.mxu1 %v1765_v0 }
  0x59   :  { %365 = vmatpush1.bf16.msra.mxu0 %v1876_v22 }
  0x5a   :  { %366 = vmatprep.subr.bf16.mxu0 %v1880_v23 }
  0x5b   :  { %1395 = vmatpush3.bf16.msra.mxu1 %v1899_v29 }
  0x5c   :  { %1396 = vmatprep.subr.bf16.mxu1 %v1765_v0 }
  0x5d   :  { %367 = vmatpush1.bf16.msra.mxu0 %v1888_v26 }
  0x5e   :  { %475 = vmatprep.subr.bf16.mxu0 %v1815_v2 }
  0x5f   :  { %1397 = vmatpush3.bf16.msra.mxu1 %v1906_v31 }
  0x60   :  { %1402 = vmatprep.subr.bf16.mxu1 %v1765_v0 }
  0xa0   :  { %v339_v61 = vpop.permute.xlu0 %338 }
  0xa1   :  { %vm340_vm5 = vcmp.eq.s32.totalorder %v339_v61, 1 }
  0xa2   :  { %vm1284_vm6 = vmpackc.low %vm340_vm5, %vm340_vm5 }
 0x100   :  { %v259_v34 = vpop.f32.mrf.mxu0 }
 0x101   :  { %v306_v35 = vadd.f32 %v259_v34, %v93_v33  ;;  %v950_v33 = vsel %vm949_vm9, 1, %v1766_v1  ;;  %v1196_v34 = vsel %vm1195_vm10, 1, %v1766_v1 }
 0x102   :  { %v261_v36 = vpop.f32.mrf.mxu0  ;;  %v300_v42 = vpop.f32.mrf.mxu1  ;;  %952 = vperm.xlu1 %1535, %v950_v33  }
 0x103   :  { %v1267_v37 = vmul.f32 -1.442695, %v306_v35  ;;  %v313_v41 = vadd.f32 %v261_v36, %v94_v38  ;;  %v326_v53 = vadd.f32 %v1947_v50, %v300_v42  ;;  %v346_v35 = vld [vmem:[#allocation3 + $0xc] sm:$0xff] }
 0x104   :  { %v263_v39 = vpop.f32.mrf.mxu0  ;;  %v1380_v44 = vpop.f32.mrf.mxu1  ;;  %v348_v36 = vunpack.c.l.bf16 %v346_v35 }
 0x105   :  { %1568 = vpow2.f32 %v1267_v37  ;;  %v1268_v43 = vmul.f32 -1.442695, %v313_v41 }
 0x106   :  { %v264_v40 = vpop.f32.mrf.mxu0  ;;  %v303_v45 = vpop.f32.mrf.mxu1  ;;  %1198 = vperm.xlu1 %1535, %v1196_v34  }
 0x107   :  { %1570 = vpow2.f32 %v1268_v43  ;;  %v349_v43 = vunpack.c.h.bf16 %v346_v35 }
 0x108   :  { %v1381_v46 = vpop.f32.mrf.mxu1 }
 0x112   :  { %v1569_v47 = vpop.eup %1568 }
 0x113   :  { %v310_v48 = vadd.f32 1.0, %v1569_v47 }
 0x114   :  { %v1571_v49 = vpop.eup %1570 }
 0x115   :  { %1572 = vrcp.f32 %v310_v48  ;;  %v317_v52 = vadd.f32 1.0, %v1571_v49 }
 0x117   :  { %1574 = vrcp.f32 %v317_v52 }
 0x122   :  { %v1573_v55 = vpop.eup %1572 }
 0x123   :  { %v327_v56 = vmul.f32 %v1573_v55, %v326_v53  ;;  %v350_v55 = vunpack.c.h.bf16 %v1949_v51 }
 0x124   :  { %v1575_v58 = vpop.eup %1574 }
 0x125   :  { %v328_v57 = vadd.f32 %v327_v56, %v95_v54  ;;  %v330_v59 = vsub.f32 1.0, %v1575_v58  ;;  %v332_v63 = vmul.f32 0.0, %v1575_v58 }
 0x127   :  { %1576 = vtanh.f32 %v328_v57 }
 0x134   :  { %v1577_v60 = vpop.eup %1576 }
 0x135   :  { %v331_v62 = vmul.f32 %v1577_v60, %v330_v59 }
 0x137   :  { %v333_v20 = vadd.f32 %v332_v63, %v331_v62 }
 0x139   :  { %v1285_v21 = vpack.c.bf16 %v333_v20, %v333_v20  ;;  %v1953_v25 = vsel %vm340_vm5, %v333_v20, 0.0 }
 0x13a   :  { %v342_v28 = vpack.c.bf16 %v1953_v25, %v1953_v25 }
 0x13b   :  { %1286 = vmatmul.mubr.msk.bf16.vlgmr.msra.gmra.mxu0 %vm1284_vm6, %v1285_v21  ;;  %1399 = vmatmul.mubr.msk.bf16.vlgmr.msra.gmra.mxu1 %vm1284_vm6, %v1285_v21  ;;  %v461_v21 = vpop.permute.xlu0 %460 }
 0x13c   :  { %343 = vst [vmem:[#allocation8] sm:$0xf] %v342_v28  ;;  %476 = vmatpush1.bf16.msra.mxu0 %v1817_v3  ;;  %1403 = vmatpush3.bf16.msra.mxu1 %v1834_v9  ;;  %vm462_vm11 = vcmp.eq.s32.totalorder %v461_v21, 1 }
 0x13d   :  { %477 = vmatprep.subr.bf16.mxu0 %v1820_v4  ;;  %1404 = vmatprep.subr.bf16.mxu1 %v1765_v0 }
 0x13e   :  { %507 = vmatprep.mubr.bf16.mxu0 %v1766_v1  ;;  %1418 = vmatprep.mubr.msk.bf16.mxu1 %vm1767_vm0, %v1765_v0 }
 0x140   :  { %478 = vmatpush1.bf16.msra.mxu0 %v1823_v5  ;;  %1405 = vmatpush3.bf16.msra.mxu1 %v1843_v12 }
 0x141   :  { %479 = vmatprep.subr.bf16.mxu0 %v1826_v6  ;;  %1406 = vmatprep.subr.bf16.mxu1 %v1765_v0 }
 0x144   :  { %480 = vmatpush1.bf16.msra.mxu0 %v1829_v7  ;;  %1407 = vmatpush3.bf16.msra.mxu1 %v1853_v15 }
 0x145   :  { %481 = vmatprep.subr.bf16.mxu0 %v1832_v8  ;;  %1408 = vmatprep.subr.bf16.mxu1 %v1765_v0 }
 0x148   :  { %482 = vmatpush1.bf16.msra.mxu0 %v1837_v10  ;;  %1409 = vmatpush3.bf16.msra.mxu1 %v1870_v19 }
 0x149   :  { %483 = vmatprep.subr.bf16.mxu0 %v1839_v11  ;;  %1410 = vmatprep.subr.bf16.mxu1 %v1765_v0 }
 0x14c   :  { %484 = vmatpush1.bf16.msra.mxu0 %v1846_v13  ;;  %1411 = vmatpush3.bf16.msra.mxu1 %v1883_v24 }
 0x14d   :  { %485 = vmatprep.subr.bf16.mxu0 %v1849_v14  ;;  %1412 = vmatprep.subr.bf16.mxu1 %v1765_v0 }
 0x150   :  { %486 = vmatpush1.bf16.msra.mxu0 %v1862_v17  ;;  %1413 = vmatpush3.bf16.msra.mxu1 %v1893_v27 }
 0x151   :  { %487 = vmatprep.subr.bf16.mxu0 %v1867_v18  ;;  %1414 = vmatprep.subr.bf16.mxu1 %v1765_v0 }
 0x154   :  { %488 = vmatpush1.bf16.msra.mxu0 %v1876_v22  ;;  %1415 = vmatpush3.bf16.msra.mxu1 %v1899_v29 }
 0x155   :  { %489 = vmatprep.subr.bf16.mxu0 %v1880_v23  ;;  %1416 = vmatprep.subr.bf16.mxu1 %v1765_v0 }
 0x158   :  { %490 = vmatpush1.bf16.msra.mxu0 %v1888_v26  ;;  %1417 = vmatpush3.bf16.msra.mxu1 %v1906_v31 }
 0x159   :  { %598 = vmatprep.subr.bf16.mxu0 %v1815_v2  ;;  %1422 = vmatprep.subr.bf16.mxu1 %v1765_v0 }
 0x1fb   :  { %v386_v37 = vpop.f32.mrf.mxu0  ;;  %v427_v38 = vpop.f32.mrf.mxu1 }
 0x1fc   :  { %v433_v39 = vadd.f32 %v386_v37, %v348_v36  ;;  %v447_v56 = vadd.f32 %v1947_v50, %v427_v38 }
 0x1fd   :  { %v388_v40 = vpop.f32.mrf.mxu0  ;;  %v1400_v41 = vpop.f32.mrf.mxu1 }
 0x1fe   :  { %v1270_v42 = vmul.f32 -1.442695, %v433_v39  ;;  %v440_v48 = vadd.f32 %v388_v40, %v349_v43 }
 0x1ff   :  { %v390_v44 = vpop.f32.mrf.mxu0  ;;  %v430_v45 = vpop.f32.mrf.mxu1 }
 0x200   :  { %1578 = vpow2.f32 %v1270_v42  ;;  %v1271_v16 = vmul.f32 -1.442695, %v440_v48 }
 0x201   :  { %v391_v46 = vpop.f32.mrf.mxu0  ;;  %v1401_v47 = vpop.f32.mrf.mxu1 }
 0x202   :  { %1580 = vpow2.f32 %v1271_v16 }
 0x20d   :  { %v1579_v49 = vpop.eup %1578 }
 0x20e   :  { %v437_v52 = vadd.f32 1.0, %v1579_v49 }
 0x20f   :  { %v1581_v53 = vpop.eup %1580 }
 0x210   :  { %1582 = vrcp.f32 %v437_v52  ;;  %v444_v54 = vadd.f32 1.0, %v1581_v53  ;;  %v2043_v52 = vld [vmem:[#allocation3 + $0x20] ss:$12 sps:$4 sm:$0xff]  }
 0x212   :  { %1584 = vrcp.f32 %v444_v54  ;;  %v473_v54 = vunpack.c.l.bf16 %v2043_v52 }
 0x21d   :  { %v1583_v57 = vpop.eup %1582 }
 0x21e   :  { %v448_v58 = vmul.f32 %v1583_v57, %v447_v56 }
 0x21f   :  { %v1585_v60 = vpop.eup %1584 }
 0x220   :  { %v449_v59 = vadd.f32 %v448_v58, %v350_v55  ;;  %v451_v61 = vsub.f32 1.0, %v1585_v60  ;;  %v453_v20 = vmul.f32 %v1585_v60, %v1953_v25 }
 0x222   :  { %1586 = vtanh.f32 %v449_v59 }
 0x22f   :  { %v1587_v62 = vpop.eup %1586 }
 0x230   :  { %v452_v63 = vmul.f32 %v1587_v62, %v451_v61  ;;  %v584_v62 = vpop.permute.xlu1 %583 }
 0x231   :  { %vm585_vm12 = vcmp.eq.s32.totalorder %v584_v62, 1 }
 0x232   :  { %v454_v28 = vadd.f32 %v453_v20, %v452_v63 }
 0x234   :  { %v463_v30 = vsel %vm462_vm11, %v454_v28, 0.0  ;;  %v2004_v32 = vsel %vm462_vm11, %v454_v28, %v1953_v25  ;;  %v469_v25 = vld [vmem:[#allocation3 + $0x18] sm:$0xff] }
 0x235   :  { %v464_v51 = vpack.c.bf16 %v463_v30, %v463_v30  ;;  %v474_v33 = vpack.c.bf16 %v2004_v32, %v2004_v32  ;;  %v471_v34 = vunpack.c.l.bf16 %v469_v25  ;;  %v472_v41 = vunpack.c.h.bf16 %v469_v25 }
 0x237   :  { %466 = vst [vmem:[#allocation8 + $0x4] sm:$0xf] %v464_v51  ;;  %508 = vmatmul.mubr.bf16.vlgmr.msra.gmra.mxu0 %v474_v33  ;;  %1419 = vmatmul.mubr.bf16.vlgmr.msra.gmra.mxu1 %v474_v33 }
 0x238   :  { %599 = vmatpush1.bf16.msra.mxu0 %v1817_v3  ;;  %1423 = vmatpush3.bf16.msra.mxu1 %v1834_v9 }
 0x239   :  { %600 = vmatprep.subr.bf16.mxu0 %v1820_v4  ;;  %1424 = vmatprep.subr.bf16.mxu1 %v1765_v0 }
 0x23a   :  { %630 = vmatprep.mubr.bf16.mxu0 %v1766_v1  ;;  %1438 = vmatprep.mubr.msk.bf16.mxu1 %vm1767_vm0, %v1765_v0 }
 0x23c   :  { %601 = vmatpush1.bf16.msra.mxu0 %v1823_v5  ;;  %1425 = vmatpush3.bf16.msra.mxu1 %v1843_v12 }
 0x23d   :  { %602 = vmatprep.subr.bf16.mxu0 %v1826_v6  ;;  %1426 = vmatprep.subr.bf16.mxu1 %v1765_v0 }
 0x240   :  { %603 = vmatpush1.bf16.msra.mxu0 %v1829_v7  ;;  %1427 = vmatpush3.bf16.msra.mxu1 %v1853_v15 }
 0x241   :  { %604 = vmatprep.subr.bf16.mxu0 %v1832_v8  ;;  %1428 = vmatprep.subr.bf16.mxu1 %v1765_v0 }
 0x244   :  { %605 = vmatpush1.bf16.msra.mxu0 %v1837_v10  ;;  %1429 = vmatpush3.bf16.msra.mxu1 %v1870_v19 }
 0x245   :  { %606 = vmatprep.subr.bf16.mxu0 %v1839_v11  ;;  %1430 = vmatprep.subr.bf16.mxu1 %v1765_v0 }
 0x248   :  { %607 = vmatpush1.bf16.msra.mxu0 %v1846_v13  ;;  %1431 = vmatpush3.bf16.msra.mxu1 %v1883_v24 }
 0x249   :  { %608 = vmatprep.subr.bf16.mxu0 %v1849_v14  ;;  %1432 = vmatprep.subr.bf16.mxu1 %v1765_v0 }
 0x24c   :  { %609 = vmatpush1.bf16.msra.mxu0 %v1862_v17  ;;  %1433 = vmatpush3.bf16.msra.mxu1 %v1893_v27 }
 0x24d   :  { %610 = vmatprep.subr.bf16.mxu0 %v1867_v18  ;;  %1434 = vmatprep.subr.bf16.mxu1 %v1765_v0 }
 0x250   :  { %611 = vmatpush1.bf16.msra.mxu0 %v1876_v22  ;;  %1435 = vmatpush3.bf16.msra.mxu1 %v1899_v29 }
 0x251   :  { %612 = vmatprep.subr.bf16.mxu0 %v1880_v23  ;;  %1436 = vmatprep.subr.bf16.mxu1 %v1765_v0 }
 0x254   :  { %613 = vmatpush1.bf16.msra.mxu0 %v1888_v26  ;;  %1437 = vmatpush3.bf16.msra.mxu1 %v1906_v31 }
 0x255   :  { %721 = vmatprep.subr.bf16.mxu0 %v1815_v2  ;;  %1442 = vmatprep.subr.bf16.mxu1 %v1765_v0 }
 0x2f7   :  { %v509_v35 = vpop.f32.mrf.mxu0  ;;  %v550_v36 = vpop.f32.mrf.mxu1 }
 0x2f8   :  { %v556_v37 = vadd.f32 %v509_v35, %v471_v34  ;;  %v570_v55 = vadd.f32 %v1947_v50, %v550_v36 }
 0x2f9   :  { %v511_v38 = vpop.f32.mrf.mxu0  ;;  %v1420_v39 = vpop.f32.mrf.mxu1 }
 0x2fa   :  { %v1272_v40 = vmul.f32 -1.442695, %v556_v37  ;;  %v563_v46 = vadd.f32 %v511_v38, %v472_v41 }
 0x2fb   :  { %v513_v42 = vpop.f32.mrf.mxu0  ;;  %v553_v43 = vpop.f32.mrf.mxu1 }
 0x2fc   :  { %1588 = vpow2.f32 %v1272_v40  ;;  %v1273_v47 = vmul.f32 -1.442695, %v563_v46 }
 0x2fd   :  { %v514_v44 = vpop.f32.mrf.mxu0  ;;  %v1421_v45 = vpop.f32.mrf.mxu1 }
 0x2fe   :  { %1590 = vpow2.f32 %v1273_v47 }
 0x309   :  { %v1589_v48 = vpop.eup %1588 }
 0x30a   :  { %v560_v16 = vadd.f32 1.0, %v1589_v48 }
 0x30b   :  { %v1591_v49 = vpop.eup %1590 }
 0x30c   :  { %1592 = vrcp.f32 %v560_v16  ;;  %v567_v53 = vadd.f32 1.0, %v1591_v49 }
 0x30e   :  { %1594 = vrcp.f32 %v567_v53  ;;  %v596_v53 = vunpack.c.h.bf16 %v2043_v52 }
 0x319   :  { %v1593_v56 = vpop.eup %1592 }
 0x31a   :  { %v571_v57 = vmul.f32 %v1593_v56, %v570_v55 }
 0x31b   :  { %v1595_v59 = vpop.eup %1594 }
 0x31c   :  { %v572_v58 = vadd.f32 %v571_v57, %v473_v54  ;;  %v574_v60 = vsub.f32 1.0, %v1595_v59  ;;  %v576_v20 = vmul.f32 %v1595_v59, %v2004_v32 }
 0x31e   :  { %1596 = vtanh.f32 %v572_v58 }
 0x32b   :  { %v1597_v61 = vpop.eup %1596 }
 0x32c   :  { %v575_v63 = vmul.f32 %v1597_v61, %v574_v60 }
 0x32e   :  { %v577_v21 = vadd.f32 %v576_v20, %v575_v63  ;;  %v707_v63 = vpop.permute.xlu1 %706 }
 0x32f   :  { %vm708_vm13 = vcmp.eq.s32.totalorder %v707_v63, 1 }
 0x330   :  { %v586_v28 = vsel %vm585_vm12, %v577_v21, 0.0  ;;  %v2049_v30 = vsel %vm585_vm12, %v577_v21, %v2004_v32  ;;  %v592_v32 = vld [vmem:[#allocation3 + $0x24] sm:$0xff] }
 0x331   :  { %v587_v51 = vpack.c.bf16 %v586_v28, %v586_v28  ;;  %v597_v33 = vpack.c.bf16 %v2049_v30, %v2049_v30  ;;  %v594_v25 = vunpack.c.l.bf16 %v592_v32  ;;  %v595_v40 = vunpack.c.h.bf16 %v592_v32 }
 0x333   :  { %589 = vst [vmem:[#allocation8 + $0x8] sm:$0xf] %v587_v51  ;;  %631 = vmatmul.mubr.bf16.vlgmr.msra.gmra.mxu0 %v597_v33  ;;  %1439 = vmatmul.mubr.bf16.vlgmr.msra.gmra.mxu1 %v597_v33 }
 0x334   :  { %722 = vmatpush1.bf16.msra.mxu0 %v1817_v3  ;;  %1443 = vmatpush3.bf16.msra.mxu1 %v1834_v9 }
 0x335   :  { %723 = vmatprep.subr.bf16.mxu0 %v1820_v4  ;;  %1444 = vmatprep.subr.bf16.mxu1 %v1765_v0 }
 0x336   :  { %753 = vmatprep.mubr.bf16.mxu0 %v1766_v1  ;;  %1458 = vmatprep.mubr.msk.bf16.mxu1 %vm1767_vm0, %v1765_v0 }
 0x338   :  { %724 = vmatpush1.bf16.msra.mxu0 %v1823_v5  ;;  %1445 = vmatpush3.bf16.msra.mxu1 %v1843_v12 }
 0x339   :  { %725 = vmatprep.subr.bf16.mxu0 %v1826_v6  ;;  %1446 = vmatprep.subr.bf16.mxu1 %v1765_v0 }
 0x33c   :  { %726 = vmatpush1.bf16.msra.mxu0 %v1829_v7  ;;  %1447 = vmatpush3.bf16.msra.mxu1 %v1853_v15 }
 0x33d   :  { %727 = vmatprep.subr.bf16.mxu0 %v1832_v8  ;;  %1448 = vmatprep.subr.bf16.mxu1 %v1765_v0 }
 0x340   :  { %728 = vmatpush1.bf16.msra.mxu0 %v1837_v10  ;;  %1449 = vmatpush3.bf16.msra.mxu1 %v1870_v19 }
 0x341   :  { %729 = vmatprep.subr.bf16.mxu0 %v1839_v11  ;;  %1450 = vmatprep.subr.bf16.mxu1 %v1765_v0 }
 0x344   :  { %730 = vmatpush1.bf16.msra.mxu0 %v1846_v13  ;;  %1451 = vmatpush3.bf16.msra.mxu1 %v1883_v24 }
 0x345   :  { %731 = vmatprep.subr.bf16.mxu0 %v1849_v14  ;;  %1452 = vmatprep.subr.bf16.mxu1 %v1765_v0 }
 0x348   :  { %732 = vmatpush1.bf16.msra.mxu0 %v1862_v17  ;;  %1453 = vmatpush3.bf16.msra.mxu1 %v1893_v27 }
 0x349   :  { %733 = vmatprep.subr.bf16.mxu0 %v1867_v18  ;;  %1454 = vmatprep.subr.bf16.mxu1 %v1765_v0 }
 0x34c   :  { %734 = vmatpush1.bf16.msra.mxu0 %v1876_v22  ;;  %1455 = vmatpush3.bf16.msra.mxu1 %v1899_v29 }
 0x34d   :  { %735 = vmatprep.subr.bf16.mxu0 %v1880_v23  ;;  %1456 = vmatprep.subr.bf16.mxu1 %v1765_v0 }
 0x350   :  { %736 = vmatpush1.bf16.msra.mxu0 %v1888_v26  ;;  %1457 = vmatpush3.bf16.msra.mxu1 %v1906_v31 }
 0x351   :  { %844 = vmatprep.subr.bf16.mxu0 %v1815_v2  ;;  %1462 = vmatprep.subr.bf16.mxu1 %v1765_v0 }
 0x3f3   :  { %v632_v34 = vpop.f32.mrf.mxu0  ;;  %v673_v35 = vpop.f32.mrf.mxu1 }
 0x3f4   :  { %v679_v36 = vadd.f32 %v632_v34, %v594_v25  ;;  %v693_v54 = vadd.f32 %v1947_v50, %v673_v35 }
 0x3f5   :  { %v634_v37 = vpop.f32.mrf.mxu0  ;;  %v1440_v38 = vpop.f32.mrf.mxu1 }
 0x3f6   :  { %v1274_v39 = vmul.f32 -1.442695, %v679_v36  ;;  %v686_v45 = vadd.f32 %v634_v37, %v595_v40 }
 0x3f7   :  { %v636_v41 = vpop.f32.mrf.mxu0  ;;  %v676_v42 = vpop.f32.mrf.mxu1 }
 0x3f8   :  { %1598 = vpow2.f32 %v1274_v39  ;;  %v1275_v46 = vmul.f32 -1.442695, %v686_v45 }
 0x3f9   :  { %v637_v43 = vpop.f32.mrf.mxu0  ;;  %v1441_v44 = vpop.f32.mrf.mxu1 }
 0x3fa   :  { %1600 = vpow2.f32 %v1275_v46 }
 0x405   :  { %v1599_v47 = vpop.eup %1598 }
 0x406   :  { %v683_v48 = vadd.f32 1.0, %v1599_v47  ;;  %v2131_v47 = vld [vmem:[#allocation3 + $0x38] ss:$12 sps:$4 sm:$0xff]  }
 0x407   :  { %v1601_v16 = vpop.eup %1600 }
 0x408   :  { %1602 = vrcp.f32 %v683_v48  ;;  %v690_v49 = vadd.f32 1.0, %v1601_v16  ;;  %v719_v16 = vunpack.c.l.bf16 %v2131_v47 }
 0x40a   :  { %1604 = vrcp.f32 %v690_v49 }
 0x415   :  { %v1603_v55 = vpop.eup %1602 }
 0x416   :  { %v694_v56 = vmul.f32 %v1603_v55, %v693_v54 }
 0x417   :  { %v1605_v58 = vpop.eup %1604 }
 0x418   :  { %v695_v57 = vadd.f32 %v694_v56, %v596_v53  ;;  %v697_v59 = vsub.f32 1.0, %v1605_v58  ;;  %v699_v62 = vmul.f32 %v1605_v58, %v2049_v30 }
 0x41a   :  { %1606 = vtanh.f32 %v695_v57 }
 0x427   :  { %v1607_v60 = vpop.eup %1606 }
 0x428   :  { %v698_v61 = vmul.f32 %v1607_v60, %v697_v59 }
 0x42a   :  { %v700_v20 = vadd.f32 %v699_v62, %v698_v61  ;;  %v830_v61 = vpop.permute.xlu0 %829 }
 0x42b   :  { %vm831_vm14 = vcmp.eq.s32.totalorder %v830_v61, 1  ;;  %v1669_v61 = vld [vmem:[#allocation6 + $0x4] ss:$12 sps:$4 sm:$0xff]  }
 0x42c   :  { %v709_v21 = vsel %vm708_vm13, %v700_v20, 0.0  ;;  %v2092_v28 = vsel %vm708_vm13, %v700_v20, %v2049_v30  ;;  %v715_v30 = vld [vmem:[#allocation3 + $0x30] sm:$0xff] }
 0x42d   :  { %v710_v52 = vpack.c.bf16 %v709_v21, %v709_v21  ;;  %v720_v51 = vpack.c.bf16 %v2092_v28, %v2092_v28  ;;  %v717_v33 = vunpack.c.l.bf16 %v715_v30  ;;  %v718_v38 = vunpack.c.h.bf16 %v715_v30 }
 0x42f   :  { %712 = vst [vmem:[#allocation8 + $0xc] sm:$0xf] %v710_v52  ;;  %754 = vmatmul.mubr.bf16.vlgmr.msra.gmra.mxu0 %v720_v51  ;;  %1459 = vmatmul.mubr.bf16.vlgmr.msra.gmra.mxu1 %v720_v51 }
 0x430   :  { %845 = vmatpush1.bf16.msra.mxu0 %v1817_v3  ;;  %1463 = vmatpush3.bf16.msra.mxu1 %v1834_v9 }
 0x431   :  { %846 = vmatprep.subr.bf16.mxu0 %v1820_v4  ;;  %1464 = vmatprep.subr.bf16.mxu1 %v1765_v0 }
 0x432   :  { %876 = vmatprep.mubr.bf16.mxu0 %v1766_v1  ;;  %1478 = vmatprep.mubr.msk.bf16.mxu1 %vm1767_vm0, %v1765_v0 }
 0x434   :  { %847 = vmatpush1.bf16.msra.mxu0 %v1823_v5  ;;  %1465 = vmatpush3.bf16.msra.mxu1 %v1843_v12 }
 0x435   :  { %848 = vmatprep.subr.bf16.mxu0 %v1826_v6  ;;  %1466 = vmatprep.subr.bf16.mxu1 %v1765_v0 }
 0x438   :  { %849 = vmatpush1.bf16.msra.mxu0 %v1829_v7  ;;  %1467 = vmatpush3.bf16.msra.mxu1 %v1853_v15 }
 0x439   :  { %850 = vmatprep.subr.bf16.mxu0 %v1832_v8  ;;  %1468 = vmatprep.subr.bf16.mxu1 %v1765_v0 }
 0x43c   :  { %851 = vmatpush1.bf16.msra.mxu0 %v1837_v10  ;;  %1469 = vmatpush3.bf16.msra.mxu1 %v1870_v19 }
 0x43d   :  { %852 = vmatprep.subr.bf16.mxu0 %v1839_v11  ;;  %1470 = vmatprep.subr.bf16.mxu1 %v1765_v0 }
 0x440   :  { %853 = vmatpush1.bf16.msra.mxu0 %v1846_v13  ;;  %1471 = vmatpush3.bf16.msra.mxu1 %v1883_v24 }
 0x441   :  { %854 = vmatprep.subr.bf16.mxu0 %v1849_v14  ;;  %1472 = vmatprep.subr.bf16.mxu1 %v1765_v0 }
 0x444   :  { %855 = vmatpush1.bf16.msra.mxu0 %v1862_v17  ;;  %1473 = vmatpush3.bf16.msra.mxu1 %v1893_v27 }
 0x445   :  { %856 = vmatprep.subr.bf16.mxu0 %v1867_v18  ;;  %1474 = vmatprep.subr.bf16.mxu1 %v1765_v0 }
 0x448   :  { %857 = vmatpush1.bf16.msra.mxu0 %v1876_v22  ;;  %1475 = vmatpush3.bf16.msra.mxu1 %v1899_v29 }
 0x449   :  { %858 = vmatprep.subr.bf16.mxu0 %v1880_v23  ;;  %1476 = vmatprep.subr.bf16.mxu1 %v1765_v0 }
 0x44c   :  { %859 = vmatpush1.bf16.msra.mxu0 %v1888_v26  ;;  %1477 = vmatpush3.bf16.msra.mxu1 %v1906_v31 }
 0x44d   :  { %967 = vmatprep.subr.bf16.mxu0 %v1815_v2  ;;  %1482 = vmatprep.subr.bf16.mxu1 %v1765_v0 }
 0x4ef   :  { %v755_v32 = vpop.f32.mrf.mxu0  ;;  %v796_v25 = vpop.f32.mrf.mxu1 }
 0x4f0   :  { %v802_v34 = vadd.f32 %v755_v32, %v717_v33  ;;  %v816_v49 = vadd.f32 %v1947_v50, %v796_v25 }
 0x4f1   :  { %v757_v35 = vpop.f32.mrf.mxu0  ;;  %v1460_v36 = vpop.f32.mrf.mxu1 }
 0x4f2   :  { %v1276_v37 = vmul.f32 -1.442695, %v802_v34  ;;  %v809_v43 = vadd.f32 %v757_v35, %v718_v38  ;;  %v953_v35 = vpop.permute.xlu1 %952 }
 0x4f3   :  { %v759_v39 = vpop.f32.mrf.mxu0  ;;  %v799_v40 = vpop.f32.mrf.mxu1  ;;  %vm954_vm15 = vcmp.eq.s32.totalorder %v953_v35, 1 }
 0x4f4   :  { %1608 = vpow2.f32 %v1276_v37  ;;  %v1277_v44 = vmul.f32 -1.442695, %v809_v43  ;;  %v1651_v43 = vld [vmem:[#allocation6 + $0x94] ss:$12 sps:$4 sm:$0xff]  }
 0x4f5   :  { %v760_v41 = vpop.f32.mrf.mxu0  ;;  %v1461_v42 = vpop.f32.mrf.mxu1 }
 0x4f6   :  { %1610 = vpow2.f32 %v1277_v44  ;;  %v1649_v41 = vld [vmem:[#allocation6 + $0xa8] ss:$12 sps:$4 sm:$0xff]   ;;  %v1650_v42 = vld [vmem:[#allocation6 + $0xb0] ss:$12 sps:$4 sm:$0xff]  }
 0x4f7   :  { %v1652_v44 = vld [vmem:[#allocation6 + $0x90] ss:$12 sps:$4 sm:$0xff]  }
 0x501   :  { %v1609_v2 = vpop.eup %1608 }
 0x502   :  { %v806_v45 = vadd.f32 1.0, %v1609_v2  ;;  %v1653_v2 = vld [vmem:[#allocation6 + $0x98] ss:$12 sps:$4 sm:$0xff]  }
 0x503   :  { %v1611_v46 = vpop.eup %1610 }
 0x504   :  { %1612 = vrcp.f32 %v806_v45  ;;  %v813_v48 = vadd.f32 1.0, %v1611_v46  ;;  %v1654_v45 = vld [vmem:[#allocation6 + $0x7c] ss:$12 sps:$4 sm:$0xff]   ;;  %v1655_v46 = vld [vmem:[#allocation6 + $0x78] ss:$12 sps:$4 sm:$0xff]  }
 0x506   :  { %1614 = vrcp.f32 %v813_v48  ;;  %v1657_v48 = vld [vmem:[#allocation6 + $0x64] ss:$12 sps:$4 sm:$0xff]  }
 0x511   :  { %v1613_v53 = vpop.eup %1612 }
 0x512   :  { %v817_v54 = vmul.f32 %v1613_v53, %v816_v49  ;;  %v1660_v49 = vld [vmem:[#allocation6 + $0x4c] ss:$12 sps:$4 sm:$0xff]   ;;  %v1661_v53 = vld [vmem:[#allocation6 + $0x48] ss:$12 sps:$4 sm:$0xff]  }
 0x513   :  { %v1615_v56 = vpop.eup %1614 }
 0x514   :  { %v818_v55 = vadd.f32 %v817_v54, %v719_v16  ;;  %v820_v57 = vsub.f32 1.0, %v1615_v56  ;;  %v822_v60 = vmul.f32 %v1615_v56, %v2092_v28  ;;  %v1659_v16 = vld [vmem:[#allocation6 + $0x68] ss:$12 sps:$4 sm:$0xff]   ;;  %v1662_v54 = vld [vmem:[#allocation6 + $0x50] ss:$12 sps:$4 sm:$0xff]  }
 0x515   :  { %v1664_v56 = vld [vmem:[#allocation6 + $0x30] ss:$12 sps:$4 sm:$0xff]  }
 0x516   :  { %1616 = vtanh.f32 %v818_v55  ;;  %v1663_v55 = vld [vmem:[#allocation6 + $0x34] ss:$12 sps:$4 sm:$0xff]  }
 0x523   :  { %v1617_v58 = vpop.eup %1616 }
 0x524   :  { %v821_v59 = vmul.f32 %v1617_v58, %v820_v57  ;;  %v1665_v57 = vld [vmem:[#allocation6 + $0x38] ss:$12 sps:$4 sm:$0xff]   ;;  %v1666_v58 = vld [vmem:[#allocation6 + $0x1c] ss:$12 sps:$4 sm:$0xff]  }
 0x526   :  { %v823_v62 = vadd.f32 %v822_v60, %v821_v59  ;;  %v1667_v59 = vld [vmem:[#allocation6 + $0x18] ss:$12 sps:$4 sm:$0xff]   ;;  %v1668_v60 = vld [vmem:[#allocation6 + $0x20] ss:$12 sps:$4 sm:$0xff]  }
 0x528   :  { %v832_v63 = vsel %vm831_vm14, %v823_v62, 0.0  ;;  %v2137_v20 = vsel %vm831_vm14, %v823_v62, %v2092_v28  ;;  %v1670_v62 = vld [vmem:[#allocation6] ss:$12 sps:$4 sm:$0xff]  }
 0x529   :  { %v833_v21 = vpack.c.bf16 %v832_v63, %v832_v63  ;;  %v843_v52 = vpack.c.bf16 %v2137_v20, %v2137_v20  ;;  %v1671_v63 = vld [vmem:[#allocation6 + $0x8] ss:$12 sps:$4 sm:$0xff]  }
 0x52b   :  { %835 = vst [vmem:[#allocation8 + $0x10] sm:$0xf] %v833_v21  ;;  %877 = vmatmul.mubr.bf16.vlgmr.msra.gmra.mxu0 %v843_v52  ;;  %1479 = vmatmul.mubr.bf16.vlgmr.msra.gmra.mxu1 %v843_v52 }
 0x52c   :  { %968 = vmatpush1.bf16.msra.mxu0 %v1817_v3  ;;  %1483 = vmatpush3.bf16.msra.mxu1 %v1834_v9  ;;  %v1648_v3 = vld [vmem:[#allocation6 + $0xac] ss:$12 sps:$4 sm:$0xff]  }
 0x52d   :  { %969 = vmatprep.subr.bf16.mxu0 %v1820_v4  ;;  %1484 = vmatprep.subr.bf16.mxu1 %v1765_v0  ;;  %v838_v4 = vld [vmem:[#allocation3 + $0x3c] sm:$0xff] }
 0x52e   :  { %999 = vmatprep.mubr.bf16.mxu0 %v1766_v1  ;;  %1498 = vmatprep.mubr.msk.bf16.mxu1 %vm1767_vm0, %v1765_v0 }
 0x530   :  { %970 = vmatpush1.bf16.msra.mxu0 %v1823_v5  ;;  %1485 = vmatpush3.bf16.msra.mxu1 %v1843_v12  ;;  %v840_v5 = vunpack.c.l.bf16 %v838_v4  ;;  %v841_v12 = vunpack.c.h.bf16 %v838_v4 }
 0x531   :  { %971 = vmatprep.subr.bf16.mxu0 %v1826_v6  ;;  %1486 = vmatprep.subr.bf16.mxu1 %v1765_v0 }
 0x534   :  { %972 = vmatpush1.bf16.msra.mxu0 %v1829_v7  ;;  %1487 = vmatpush3.bf16.msra.mxu1 %v1853_v15 }
 0x535   :  { %973 = vmatprep.subr.bf16.mxu0 %v1832_v8  ;;  %1488 = vmatprep.subr.bf16.mxu1 %v1765_v0 }
 0x538   :  { %974 = vmatpush1.bf16.msra.mxu0 %v1837_v10  ;;  %1489 = vmatpush3.bf16.msra.mxu1 %v1870_v19 }
 0x539   :  { %975 = vmatprep.subr.bf16.mxu0 %v1839_v11  ;;  %1490 = vmatprep.subr.bf16.mxu1 %v1765_v0 }
 0x53c   :  { %976 = vmatpush1.bf16.msra.mxu0 %v1846_v13  ;;  %1491 = vmatpush3.bf16.msra.mxu1 %v1883_v24 }
 0x53d   :  { %977 = vmatprep.subr.bf16.mxu0 %v1849_v14  ;;  %1492 = vmatprep.subr.bf16.mxu1 %v1765_v0 }
 0x540   :  { %978 = vmatpush1.bf16.msra.mxu0 %v1862_v17  ;;  %1493 = vmatpush3.bf16.msra.mxu1 %v1893_v27  ;;  %v842_v27 = vunpack.c.h.bf16 %v2131_v47  ;;  %v1656_v47 = vld [vmem:[#allocation6 + $0x80] ss:$12 sps:$4 sm:$0xff]  }
 0x541   :  { %979 = vmatprep.subr.bf16.mxu0 %v1867_v18  ;;  %1494 = vmatprep.subr.bf16.mxu1 %v1765_v0 }
 0x544   :  { %980 = vmatpush1.bf16.msra.mxu0 %v1876_v22  ;;  %1495 = vmatpush3.bf16.msra.mxu1 %v1899_v29 }
 0x545   :  { %981 = vmatprep.subr.bf16.mxu0 %v1880_v23  ;;  %1496 = vmatprep.subr.bf16.mxu1 %v1765_v0 }
 0x548   :  { %982 = vmatpush1.bf16.msra.mxu0 %v1888_v26  ;;  %1497 = vmatpush3.bf16.msra.mxu1 %v1906_v31 }
 0x549   :  { %1090 = vmatprep.subr.bf16.mxu0 %v1648_v3  ;;  %1502 = vmatprep.subr.bf16.mxu1 %v1765_v0 }
 0x5eb   :  { %v878_v6 = vpop.f32.mrf.mxu0  ;;  %v919_v7 = vpop.f32.mrf.mxu1 }
 0x5ec   :  { %v925_v8 = vadd.f32 %v878_v6, %v840_v5  ;;  %v939_v29 = vadd.f32 %v1947_v50, %v919_v7 }
 0x5ed   :  { %v880_v9 = vpop.f32.mrf.mxu0  ;;  %v1480_v10 = vpop.f32.mrf.mxu1 }
 0x5ee   :  { %v1278_v11 = vmul.f32 -1.442695, %v925_v8  ;;  %v932_v18 = vadd.f32 %v880_v9, %v841_v12 }
 0x5ef   :  { %v882_v13 = vpop.f32.mrf.mxu0  ;;  %v922_v14 = vpop.f32.mrf.mxu1 }
 0x5f0   :  { %1618 = vpow2.f32 %v1278_v11  ;;  %v1279_v19 = vmul.f32 -1.442695, %v932_v18  ;;  %v962_v18 = vld [vmem:[#allocation3 + $0x50] ss:$12 sps:$4 sm:$0xff]  }
 0x5f1   :  { %v883_v15 = vpop.f32.mrf.mxu0  ;;  %v1481_v17 = vpop.f32.mrf.mxu1 }
 0x5f2   :  { %1620 = vpow2.f32 %v1279_v19 }
 0x5fd   :  { %v1619_v22 = vpop.eup %1618 }
 0x5fe   :  { %v929_v23 = vadd.f32 1.0, %v1619_v22  ;;  %v965_v22 = vunpack.c.l.bf16 %v962_v18 }
 0x5ff   :  { %v1621_v24 = vpop.eup %1620 }
 0x600   :  { %1622 = vrcp.f32 %v929_v23  ;;  %v936_v26 = vadd.f32 1.0, %v1621_v24 }
 0x602   :  { %1624 = vrcp.f32 %v936_v26 }
 0x60d   :  { %v1623_v31 = vpop.eup %1622 }
 0x60e   :  { %v940_v28 = vmul.f32 %v1623_v31, %v939_v29 }
 0x60f   :  { %v1625_v30 = vpop.eup %1624 }
 0x610   :  { %v941_v51 = vadd.f32 %v940_v28, %v842_v27  ;;  %v943_v33 = vsub.f32 1.0, %v1625_v30  ;;  %v945_v34 = vmul.f32 %v1625_v30, %v2137_v20 }
 0x612   :  { %1626 = vtanh.f32 %v941_v51  ;;  %v1076_v51 = vpop.permute.xlu0 %1075 }
 0x61f   :  { %v1627_v32 = vpop.eup %1626 }
 0x620   :  { %v944_v25 = vmul.f32 %v1627_v32, %v943_v33 }
 0x622   :  { %v946_v36 = vadd.f32 %v945_v34, %v944_v25 }
 0x624   :  { %v955_v37 = vsel %vm954_vm15, %v946_v36, 0.0  ;;  %v2179_v38 = vsel %vm954_vm15, %v946_v36, %v2137_v20  ;;  %v961_v20 = vld [vmem:[#allocation3 + $0x48] sm:$0xff] }
 0x625   :  { %v956_v39 = vpack.c.bf16 %v955_v37, %v955_v37  ;;  %v966_v40 = vpack.c.bf16 %v2179_v38, %v2179_v38  ;;  %v963_v21 = vunpack.c.l.bf16 %v961_v20  ;;  %v964_v8 = vunpack.c.h.bf16 %v961_v20  ;;  %v1199_v20 = vpop.permute.xlu1 %1198 }
 0x626   :  { %vm1200_vm1 = vcmp.eq.s32.totalorder %v1199_v20, 1 }
 0x627   :  { %958 = vst [vmem:[#allocation8 + $0x14] sm:$0xf] %v956_v39  ;;  %1000 = vmatmul.mubr.bf16.vlgmr.msra.gmra.mxu0 %v966_v40  ;;  %1499 = vmatmul.mubr.bf16.vlgmr.msra.gmra.mxu1 %v966_v40 }
 0x628   :  { %1091 = vmatpush1.bf16.msra.mxu0 %v1649_v41  ;;  %1503 = vmatpush3.bf16.msra.mxu1 %v1650_v42 }
 0x629   :  { %1092 = vmatprep.subr.bf16.mxu0 %v1651_v43  ;;  %1504 = vmatprep.subr.bf16.mxu1 %v1765_v0 }
 0x62a   :  { %1122 = vmatprep.mubr.bf16.mxu0 %v1766_v1  ;;  %1518 = vmatprep.mubr.msk.bf16.mxu1 %vm1767_vm0, %v1765_v0  ;;  %v1658_v1 = vld [vmem:[#allocation6 + $0x60] ss:$12 sps:$4 sm:$0xff]   ;;  %vm1077_vm0 = vcmp.eq.s32.totalorder %v1076_v51, 1 }
 0x62c   :  { %1093 = vmatpush1.bf16.msra.mxu0 %v1652_v44  ;;  %1505 = vmatpush3.bf16.msra.mxu1 %v1653_v2 }
 0x62d   :  { %1094 = vmatprep.subr.bf16.mxu0 %v1654_v45  ;;  %1506 = vmatprep.subr.bf16.mxu1 %v1765_v0 }
 0x630   :  { %1095 = vmatpush1.bf16.msra.mxu0 %v1655_v46  ;;  %1507 = vmatpush3.bf16.msra.mxu1 %v1656_v47 }
 0x631   :  { %1096 = vmatprep.subr.bf16.mxu0 %v1657_v48  ;;  %1508 = vmatprep.subr.bf16.mxu1 %v1765_v0 }
 0x634   :  { %1097 = vmatpush1.bf16.msra.mxu0 %v1658_v1  ;;  %1509 = vmatpush3.bf16.msra.mxu1 %v1659_v16 }
 0x635   :  { %1098 = vmatprep.subr.bf16.mxu0 %v1660_v49  ;;  %1510 = vmatprep.subr.bf16.mxu1 %v1765_v0 }
 0x638   :  { %1099 = vmatpush1.bf16.msra.mxu0 %v1661_v53  ;;  %1511 = vmatpush3.bf16.msra.mxu1 %v1662_v54 }
 0x639   :  { %1100 = vmatprep.subr.bf16.mxu0 %v1663_v55  ;;  %1512 = vmatprep.subr.bf16.mxu1 %v1765_v0  ;;  %v1088_v55 = vunpack.c.h.bf16 %v962_v18 }
 0x63c   :  { %1101 = vmatpush1.bf16.msra.mxu0 %v1664_v56  ;;  %1513 = vmatpush3.bf16.msra.mxu1 %v1665_v57  ;;  %v1672_v56 = vld [vmem:[%s2208_s3] ss:$0 sm:$0xff]  ;;  %s1713_s3 = scalar_lea.vmem %s1230_s9, 128 }
 0x63d   :  { %1102 = vmatprep.subr.bf16.mxu0 %v1666_v58  ;;  %1514 = vmatprep.subr.bf16.mxu1 %v1765_v0  ;;  %p1714_p10 = scmp.ne.s32.totalorder %s1230_s9, %s1713_s3  ;;  %p1719_p12 = scmp.lt.s32.totalorder %s1713_s3, %s1713_s3 }
 0x63f   :  { %p1720_p13 = por %p1719_p12, %p1718_p11 }
 0x640   :  { %1103 = vmatpush1.bf16.msra.mxu0 %v1667_v59  ;;  %1515 = vmatpush3.bf16.msra.mxu1 %v1668_v60 }
 0x641   :  { %1104 = vmatprep.subr.bf16.mxu0 %v1669_v61  ;;  %1516 = vmatprep.subr.bf16.mxu1 %v1765_v0  ;;  %p1721_p0 = pnand %p1720_p13, %p1714_p10 }
 0x644   :  { %1105 = vmatpush1.bf16.msra.mxu0 %v1670_v62  ;;  %1517 = vmatpush3.bf16.msra.mxu1 %v1671_v63 }
 0x6e7   :  { %v1001_v52 = vpop.f32.mrf.mxu0  ;;  %v1042_v3 = vpop.f32.mrf.mxu1 }
 0x6e8   :  { %v1048_v4 = vadd.f32 %v1001_v52, %v963_v21  ;;  %v1062_v23 = vadd.f32 %v1947_v50, %v1042_v3  ;;  %v1084_v50 = vld [vmem:[#allocation3 + $0x54] sm:$0xff] }
 0x6e9   :  { %v1003_v5 = vpop.f32.mrf.mxu0  ;;  %v1500_v6 = vpop.f32.mrf.mxu1  ;;  %v1086_v37 = vunpack.c.l.bf16 %v1084_v50  ;;  %v1087_v2 = vunpack.c.h.bf16 %v1084_v50 }
 0x6ea   :  { %v1280_v7 = vmul.f32 -1.442695, %v1048_v4  ;;  %v1055_v13 = vadd.f32 %v1003_v5, %v964_v8 }
 0x6eb   :  { %v1005_v9 = vpop.f32.mrf.mxu0  ;;  %v1045_v10 = vpop.f32.mrf.mxu1 }
 0x6ec   :  { %1628 = vpow2.f32 %v1280_v7  ;;  %v1281_v0 = vmul.f32 -1.442695, %v1055_v13 }
 0x6ed   :  { %v1006_v11 = vpop.f32.mrf.mxu0  ;;  %v1501_v12 = vpop.f32.mrf.mxu1 }
 0x6ee   :  { %1630 = vpow2.f32 %v1281_v0 }
 0x6f9   :  { %v1629_v14 = vpop.eup %1628 }
 0x6fa   :  { %v1052_v15 = vadd.f32 1.0, %v1629_v14 }
 0x6fb   :  { %v1631_v17 = vpop.eup %1630 }
 0x6fc   :  { %1632 = vrcp.f32 %v1052_v15  ;;  %v1059_v19 = vadd.f32 1.0, %v1631_v17 }
 0x6fe   :  { %1634 = vrcp.f32 %v1059_v19 }
 0x709   :  { %v1633_v24 = vpop.eup %1632 }
 0x70a   :  { %v1063_v26 = vmul.f32 %v1633_v24, %v1062_v23 }
 0x70b   :  { %v1635_v29 = vpop.eup %1634 }
 0x70c   :  { %v1064_v27 = vadd.f32 %v1063_v26, %v965_v22  ;;  %v1066_v31 = vsub.f32 1.0, %v1635_v29  ;;  %v1068_v33 = vmul.f32 %v1635_v29, %v2179_v38 }
 0x70e   :  { %1636 = vtanh.f32 %v1064_v27 }
 0x71b   :  { %v1637_v28 = vpop.eup %1636 }
 0x71c   :  { %v1067_v30 = vmul.f32 %v1637_v28, %v1066_v31 }
 0x71e   :  { %v1069_v32 = vadd.f32 %v1068_v33, %v1067_v30 }
 0x720   :  { %v1078_v25 = vsel %vm1077_vm0, %v1069_v32, 0.0  ;;  %v1082_v34 = vsel %vm1077_vm0, %v1069_v32, %v2179_v38 }
 0x721   :  { %v1079_v35 = vpack.c.bf16 %v1078_v25, %v1078_v25  ;;  %v1089_v36 = vpack.c.bf16 %v1082_v34, %v1082_v34 }
 0x723   :  { %1081 = vst [vmem:[#allocation8 + $0x18] sm:$0xf] %v1079_v35  ;;  %1123 = vmatmul.mubr.bf16.vlgmr.msra.gmra.mxu0 %v1089_v36  ;;  %1519 = vmatmul.mubr.bf16.vlgmr.msra.gmra.mxu1 %v1089_v36 }
 0x7e3   :  { %v1124_v39 = vpop.f32.mrf.mxu0  ;;  %v1165_v40 = vpop.f32.mrf.mxu1 }
 0x7e4   :  { %v1171_v41 = vadd.f32 %v1124_v39, %v1086_v37  ;;  %v1185_v57 = vadd.f32 %v1672_v56, %v1165_v40 }
 0x7e5   :  { %v1126_v42 = vpop.f32.mrf.mxu0  ;;  %v1520_v43 = vpop.f32.mrf.mxu1 }
 0x7e6   :  { %v1282_v44 = vmul.f32 -1.442695, %v1171_v41  ;;  %v1178_v38 = vadd.f32 %v1126_v42, %v1087_v2 }
 0x7e7   :  { %v1128_v45 = vpop.f32.mrf.mxu0  ;;  %v1168_v46 = vpop.f32.mrf.mxu1 }
 0x7e8   :  { %1638 = vpow2.f32 %v1282_v44  ;;  %v1283_v1 = vmul.f32 -1.442695, %v1178_v38 }
 0x7e9   :  { %v1129_v47 = vpop.f32.mrf.mxu0  ;;  %v1521_v48 = vpop.f32.mrf.mxu1 }
 0x7ea   :  { %1640 = vpow2.f32 %v1283_v1 }
 0x7f5   :  { %v1639_v16 = vpop.eup %1638 }
 0x7f6   :  { %v1175_v49 = vadd.f32 1.0, %v1639_v16 }
 0x7f7   :  { %v1641_v53 = vpop.eup %1640 }
 0x7f8   :  { %1642 = vrcp.f32 %v1175_v49  ;;  %v1182_v54 = vadd.f32 1.0, %v1641_v53 }
 0x7fa   :  { %1644 = vrcp.f32 %v1182_v54 }
 0x805   :  { %v1643_v58 = vpop.eup %1642 }
 0x806   :  { %v1186_v59 = vmul.f32 %v1643_v58, %v1185_v57 }
 0x807   :  { %v1645_v61 = vpop.eup %1644 }
 0x808   :  { %v1187_v60 = vadd.f32 %v1186_v59, %v1088_v55  ;;  %v1189_v62 = vsub.f32 1.0, %v1645_v61  ;;  %v1191_v52 = vmul.f32 %v1645_v61, %v1082_v34 }
 0x80a   :  { %1646 = vtanh.f32 %v1187_v60 }
 0x817   :  { %v1647_v63 = vpop.eup %1646 }
 0x818   :  { %v1190_v21 = vmul.f32 %v1647_v63, %v1189_v62 }
 0x81a   :  { %v1192_v3 = vadd.f32 %v1191_v52, %v1190_v21 }
 0x81c   :  { %v1201_v4 = vsel %vm1200_vm1, %v1192_v3, 0.0  ;;  %v1205_v5 = vsel %vm1200_vm1, %v1192_v3, %v1082_v34 }
 0x81d   :  { %v1202_v6 = vpack.c.bf16 %v1201_v4, %v1201_v4  ;;  %1210 = vst [vmem:[#allocation9] sm:$0xff] %v1205_v5 }
 0x81e   :  { %1724 = shalt.err (!%p1721_p0)
}
 0x81f   :  { %1232 = dma.vmem_to_hbm [thread:$0]  %s1230_s9, 128, %s2210_s5, [#allocation10]   ;;  %1204 = vst [vmem:[#allocation8 + $0x1c] sm:$0xf] %v1202_v6 }
 0x820   :  { %s1733_s14 = scalar_lea.vmem %s1217_s11, 512  ;;  %p1738_p2 = scmp.lt.s32.totalorder %s1217_s11, %s1217_s11 }
 0x821   :  { %p1734_p1 = scmp.ne.s32.totalorder %s1217_s11, %s1733_s14  ;;  %p1739_p3 = scmp.lt.s32.totalorder %s1733_s14, %s1733_s14 }
 0x823   :  { %p1740_p4 = por %p1739_p3, %p1738_p2 }
 0x825   :  { %p1741_p5 = pnand %p1740_p4, %p1734_p1 }
 0x827   :  { %1744 = shalt.err (!%p1741_p5)
}
 0x828   :  { %s1771_s15 = smov 64   ;;  %s1772_s16 = smov 4  }
 0x829   :  { %1222 = dma.vmem_to_hbm [thread:$0]  %s1217_s11, 512, %s2209_s4, [#allocation5], %s1771_s15, %s1771_s15, %s1772_s16  }
 0x82a   :  { %1757 = dma.done.wait [#allocation5], 512  }
 0x82b   :  { %1758 = vsyncadd [#allocation5], 4294966784 }
 0x82c   :  { %1759 = dma.done.wait [#allocation10], 128  }
 0x82d   :  { %1760 = vsyncadd [#allocation10], 4294967168 }
 0x82e   :  { %1239 = vsyncpa [#allocation4], 1 }
 0x82f   :  { %1240 = vsyncpa [#allocation7], 1 }
 0x830   :  { %1241 = vsyncpa [#allocation5], 1 }
 0x831   :  { %1242 = vsyncpa [#allocation10], 1 }

</bundles_post_ra>
